<compile_context>
chip_gen: v6e
topology: v6e:2x2x1
jax: 0.10.0
libtpu: 0.0.40
codegen_flags: <defaults>
</compile_context>

<pallas_src>
import functools
import math

import jax
import jax.numpy as jnp
from jax import lax
from jax.experimental import pallas as pl
from jax.experimental.pallas import tpu as pltpu

EPS_NORM = 1e-12
_LANE = 128
TILE_V = 256            # vertex tile for the conv / pool kernels
TILE_SQ = 256           # (V1, V2) tile for the pairwise-distance kernel
VMEM_LIMIT = 48 * 1024 * 1024   # leave headroom on v7x (64 MiB physical)


def _cparams(n_axes):
    return pltpu.CompilerParams(
        dimension_semantics=tuple("parallel" for _ in range(n_axes)),
        vmem_limit_bytes=VMEM_LIMIT,
    )


def _pick_tile(n, pref):
    return pref if (n >= pref and n % pref == 0) else n


def _pick_row_tile(m):
    # row tile for the flattened (B*V, Cin) matmul; prefer >=2 grid steps so
    # both v7x TensorCores get work even at the small pool_2 stage.
    for c in (256, 128, 64, 32, 16, 8):
        if m % c == 0 and m // c >= 2:
            return c
    return m


def _pad_lanes(x, width=_LANE):
    # zero-pad the last (lane) dim so kernel blocks / MXU operands are lane-dense
    d = x.shape[-1]
    if d >= width:
        return x
    pad = [(0, 0)] * (x.ndim - 1) + [(0, width - d)]
    return jnp.pad(x, pad)


# ----------------------------------------------------------------------------
# Pallas kernel: batched pairwise squared distance  d[i,j] = |a_i|^2+|b_j|^2-2<a_i,b_j>
# (hot path of gcn3d.get_neighbor_index / get_nearest_index / Pool_layer)
# ----------------------------------------------------------------------------
def _sqdist_kernel(a_ref, bt_ref, o_ref):
    a = a_ref[0]                                    # (tm, 128)  coords zero-padded
    bt = bt_ref[0]                                  # (128, tn)
    a2 = jnp.sum(a * a, axis=1, keepdims=True)      # (tm, 1)
    b2 = jnp.sum(bt * bt, axis=0, keepdims=True)    # (1, tn)
    ab = jnp.dot(a, bt, preferred_element_type=jnp.float32)   # MXU cross term
    o_ref[0] = (a2 + b2) - 2.0 * ab


def pairwise_sqdist(a, b):
    # a: (B, V1, D), b: (B, V2, D) -> (B, V1, V2) float32
    B, V1, _ = a.shape
    V2 = b.shape[1]
    ap = _pad_lanes(a.astype(jnp.float32))                            # (B, V1, 128)
    btp = jnp.transpose(_pad_lanes(b.astype(jnp.float32)), (0, 2, 1))  # (B, 128, V2)
    tm = _pick_tile(V1, TILE_SQ)
    tn = _pick_tile(V2, TILE_SQ)
    return pl.pallas_call(
        _sqdist_kernel,
        out_shape=jax.ShapeDtypeStruct((B, V1, V2), jnp.float32),
        grid=(B, V1 // tm, V2 // tn),
        in_specs=[pl.BlockSpec((1, tm, _LANE), lambda b_, i, j: (b_, i, 0)),
                  pl.BlockSpec((1, _LANE, tn), lambda b_, i, j: (b_, 0, j))],
        out_specs=pl.BlockSpec((1, tm, tn), lambda b_, i, j: (b_, i, j)),
        compiler_params=_cparams(3),
    )(ap, btp)


def get_neighbor_index(vertices, neighbor_num):
    # torch.topk(distance, k=n+1, largest=False)[1][:, :, 1:]
    d = pairwise_sqdist(vertices, vertices)
    _, idx = jax.lax.top_k(-d, neighbor_num + 1)       # TODO(synk): top_k kept in XLA
    return idx[:, :, 1:]


def get_nearest_index(target, source):
    d = pairwise_sqdist(target, source)                # (B, V1, V2)
    return jnp.argmin(d, axis=-1)[..., None]           # (B, V1, 1)


def indexing_neighbor(tensor, index):
    # tensor (B, V, C), index (B, V1, N) -> (B, V1, N, C)  (only used for the
    # cheap final nearest-index gathers; neighborhood gathers are fused in-kernel)
    return jax.vmap(lambda t, idx: t[idx])(tensor, index)


# ----------------------------------------------------------------------------
# Pallas kernel: gcn3d.Conv_surface core
#   theta = relu(dir_norm @ support_dirs); max over neighbors; sum over supports
#   Neighbor rows are gathered in-kernel via one-hot @ vertex-slab MXU matmuls.
# ----------------------------------------------------------------------------
def _conv_surface_kernel(idx_ref, verts_ref, cent_ref, sup_ref, o_ref,
                         *, support_num, kernel_num, neighbor_num):
    idx = idx_ref[0]                                 # (tv, N) int32
    verts = verts_ref[0]                             # (V, 128) full slab, lane-padded
    cent = cent_ref[0]                               # (tv, 128) lane-padded
    sup = sup_ref[...]                               # (128, S*K) zero rows beyond D
    V = verts.shape[0]
    iota_v = lax.broadcasted_iota(jnp.int32, (1, V), 1)
    eps2 = EPS_NORM * EPS_NORM
    tmax = None
    for n in range(neighbor_num):                    # static unroll (N is 2 or 8)
        onehot = jnp.where(idx[:, n:n + 1] == iota_v, 1.0, 0.0).astype(jnp.float32)
        nb = jnp.dot(onehot, verts, preferred_element_type=jnp.float32)   # gather (tv,128)
        d = nb - cent                                # zero in padded lanes
        dn = d * lax.rsqrt(jnp.maximum(jnp.sum(d * d, axis=-1, keepdims=True), eps2))
        theta = jnp.maximum(                         # (tv, S*K) on the MXU
            jnp.dot(dn, sup, preferred_element_type=jnp.float32), 0.0)
        tmax = theta if tmax is None else jnp.maximum(tmax, theta)
    acc = tmax[:, 0:kernel_num]
    for s in range(1, support_num):                  # sum over supports
        acc = acc + tmax[:, s * kernel_num:(s + 1) * kernel_num]
    o_ref[0] = acc


def conv_surface(neighbor_index, vertices, directions, support_num, kernel_num):
    B, V, D = vertices.shape
    N = neighbor_index.shape[2]
    sup = directions / jnp.maximum(
        jnp.linalg.norm(directions, axis=0, keepdims=True), EPS_NORM)
    sup_pad = jnp.pad(sup.astype(jnp.float32), ((0, _LANE - D), (0, 0)))
    vpad = _pad_lanes(vertices.astype(jnp.float32))           # (B, V, 128)
    tv = _pick_tile(V, TILE_V)
    sk = support_num * kernel_num
    kern = functools.partial(_conv_surface_kernel, support_num=support_num,
                             kernel_num=kernel_num, neighbor_num=N)
    return pl.pallas_call(
        kern,
        out_shape=jax.ShapeDtypeStruct((B, V, kernel_num), jnp.float32),
        grid=(B, V // tv),
        in_specs=[
            pl.BlockSpec((1, tv, N), lambda b_, v_: (b_, v_, 0)),      # neighbor index tile
            pl.BlockSpec((1, V, _LANE), lambda b_, v_: (b_, 0, 0)),    # full vertex slab
            pl.BlockSpec((1, tv, _LANE), lambda b_, v_: (b_, v_, 0)),  # center tile
            pl.BlockSpec((_LANE, sk), lambda b_, v_: (0, 0)),
        ],
        out_specs=pl.BlockSpec((1, tv, kernel_num), lambda b_, v_: (b_, v_, 0)),
        compiler_params=_cparams(2),
    )(neighbor_index.astype(jnp.int32), vpad, vpad, sup_pad)


# ----------------------------------------------------------------------------
# Pallas kernel: per-point linear (feature_map @ weights + bias) on the MXU,
# flattened over (B*V) rows so the weight stays resident across row tiles.
# ----------------------------------------------------------------------------
def _linear_kernel(x_ref, w_ref, b_ref, o_ref):
    o_ref[...] = jnp.dot(x_ref[...], w_ref[...],
                         preferred_element_type=jnp.float32) + b_ref[...]


def batched_linear(x, w, b):
    B, V, Cin = x.shape
    M = w.shape[1]
    BV = B * V
    tm = _pick_row_tile(BV)
    # bf16 MXU inputs, f32 accumulation (native MXU path on v5e/v6e/v7x)
    x2 = x.reshape(BV, Cin).astype(jnp.bfloat16)
    out = pl.pallas_call(
        _linear_kernel,
        out_shape=jax.ShapeDtypeStruct((BV, M), jnp.float32),
        grid=(BV // tm,),
        in_specs=[pl.BlockSpec((tm, Cin), lambda i: (i, 0)),
                  pl.BlockSpec((Cin, M), lambda i: (0, 0)),
                  pl.BlockSpec((1, M), lambda i: (0, 0))],
        out_specs=pl.BlockSpec((tm, M), lambda i: (i, 0)),
        compiler_params=_cparams(1),
    )(x2, w.astype(jnp.bfloat16), b.reshape(1, M).astype(jnp.float32))
    return out.reshape(B, V, M)


# ----------------------------------------------------------------------------
# Pallas kernel: gcn3d.Conv_layer fuse core
#   relu(theta) * gathered-support-features; max over neighbors; sum over
#   supports; + center feature.  Both the neighbor-vertex and neighbor-feature
#   gathers are done in-kernel with one-hot MXU matmuls against VMEM slabs.
# ----------------------------------------------------------------------------
def _conv_layer_kernel(idx_ref, verts_ref, cent_ref, sup_ref, fsupp_ref,
                       fcent_ref, o_ref, *, support_num, out_channel,
                       neighbor_num):
    idx = idx_ref[0]                                  # (tv, N) int32
    verts = verts_ref[0]                              # (V, 128) lane-padded coords
    cent = cent_ref[0]                                # (tv, 128)
    sup = sup_ref[...]                                # (128, S*C) zero rows beyond D
    fsupp = fsupp_ref[0]                              # (V, S*C) ungathered feature slab
    fcent = fcent_ref[0]                              # (tv, C)
    V = verts.shape[0]
    iota_v = lax.broadcasted_iota(jnp.int32, (1, V), 1)
    eps2 = EPS_NORM * EPS_NORM
    amax = None
    for n in range(neighbor_num):                     # static unroll
        onehot = jnp.where(idx[:, n:n + 1] == iota_v, 1.0, 0.0).astype(jnp.float32)
        nb = jnp.dot(onehot, verts, preferred_element_type=jnp.float32)   # (tv, 128)
        fs = jnp.dot(onehot, fsupp, preferred_element_type=jnp.float32)   # (tv, S*C)
        d = nb - cent
        dn = d * lax.rsqrt(jnp.maximum(jnp.sum(d * d, axis=-1, keepdims=True), eps2))
        theta = jnp.maximum(
            jnp.dot(dn, sup, preferred_element_type=jnp.float32), 0.0)
        act = theta * fs
        amax = act if amax is None else jnp.maximum(amax, act)
    acc = amax[:, 0:out_channel]
    for s in range(1, support_num):                   # sum over supports
        acc = acc + amax[:, s * out_channel:(s + 1) * out_channel]
    o_ref[0] = fcent + acc


def conv_layer(neighbor_index, vertices, feature_map, params, support_num,
               out_channel):
    """gcn3d.Conv_layer (and Conv_fuse_layer, see init TODO)."""
    B, V, D = vertices.shape
    N = neighbor_index.shape[2]
    w, bias, directions = params["weights"], params["bias"], params["directions"]
    sup = directions / jnp.maximum(
        jnp.linalg.norm(directions, axis=0, keepdims=True), EPS_NORM)
    sup_pad = jnp.pad(sup.astype(jnp.float32), ((0, _LANE - D), (0, 0)))
    feature_out = batched_linear(feature_map, w, bias)        # (B, V, (S+1)*C)
    fcent = feature_out[:, :, :out_channel]
    fsupp = feature_out[:, :, out_channel:]                   # ungathered (B, V, S*C)
    vpad = _pad_lanes(vertices.astype(jnp.float32))           # (B, V, 128)
    tv = _pick_tile(V, TILE_V)
    sc = support_num * out_channel
    kern = functools.partial(_conv_layer_kernel, support_num=support_num,
                             out_channel=out_channel, neighbor_num=N)
    return pl.pallas_call(
        kern,
        out_shape=jax.ShapeDtypeStruct((B, V, out_channel), jnp.float32),
        grid=(B, V // tv),
        in_specs=[
            pl.BlockSpec((1, tv, N), lambda b_, v_: (b_, v_, 0)),
            pl.BlockSpec((1, V, _LANE), lambda b_, v_: (b_, 0, 0)),
            pl.BlockSpec((1, tv, _LANE), lambda b_, v_: (b_, v_, 0)),
            pl.BlockSpec((_LANE, sc), lambda b_, v_: (0, 0)),
            pl.BlockSpec((1, V, sc), lambda b_, v_: (b_, 0, 0)),
            pl.BlockSpec((1, tv, out_channel), lambda b_, v_: (b_, v_, 0)),
        ],
        out_specs=pl.BlockSpec((1, tv, out_channel), lambda b_, v_: (b_, v_, 0)),
        compiler_params=_cparams(2),
    )(neighbor_index.astype(jnp.int32), vpad, vpad, sup_pad, fsupp, fcent)


# ----------------------------------------------------------------------------
# Pallas kernel: neighborhood max pooling (gcn3d.Pool_layer) with in-kernel
# one-hot gather from the ungathered feature slab.
# ----------------------------------------------------------------------------
def _pool_kernel(idx_ref, feat_ref, o_ref, *, neighbor_num):
    idx = idx_ref[0]                                  # (tv, nn) int32
    feat = feat_ref[0]                                # (V, C) full slab
    V = feat.shape[0]
    iota_v = lax.broadcasted_iota(jnp.int32, (1, V), 1)
    out = None
    for n in range(neighbor_num):                     # static unroll (nn = 4)
        onehot = jnp.where(idx[:, n:n + 1] == iota_v, 1.0, 0.0).astype(jnp.float32)
        g = jnp.dot(onehot, feat, preferred_element_type=jnp.float32)
        out = g if out is None else jnp.maximum(out, g)
    o_ref[0] = out


def pool_layer(vertices, feature_map, pooling_rate=4, neighbor_num=4):
    B, V, _ = vertices.shape
    C = feature_map.shape[2]
    ni = get_neighbor_index(vertices, neighbor_num)            # (B, V, nn)
    tv = _pick_tile(V, TILE_V)
    kern = functools.partial(_pool_kernel, neighbor_num=neighbor_num)
    pooled = pl.pallas_call(
        kern,
        out_shape=jax.ShapeDtypeStruct((B, V, C), jnp.float32),
        grid=(B, V // tv),
        in_specs=[pl.BlockSpec((1, tv, neighbor_num), lambda b_, v_: (b_, v_, 0)),
                  pl.BlockSpec((1, V, C), lambda b_, v_: (b_, 0, 0))],
        out_specs=pl.BlockSpec((1, tv, C), lambda b_, v_: (b_, v_, 0)),
        compiler_params=_cparams(2),
    )(ni.astype(jnp.int32), feature_map.astype(jnp.float32))
    pool_num = V // pooling_rate
    # TODO(synk): torch.randperm subsampling replaced with a deterministic
    # strided subsample (same cardinality: pool_num of V rows, shared across batch).
    sample_idx = jnp.arange(pool_num) * pooling_rate
    return vertices[:, sample_idx, :], pooled[:, sample_idx, :]


def batchnorm(x, p, eps=1e-5):
    # TODO(synk): nn.BatchNorm1d implemented in eval mode with default running
    # stats (mean=0, var=1, gamma=1, beta=0); the transpose(1,2) pair is folded
    # into this channel-wise affine.
    return (x - p["mean"]) * (p["gamma"] * jax.lax.rsqrt(p["var"] + eps)) + p["beta"]


# ----------------------------------------------------------------------------
# Deterministic parameter initialization (shapes from gcn3d module __init__s)
# ----------------------------------------------------------------------------
def _uniform(key, shape, stdv):
    return jax.random.uniform(key, shape, jnp.float32, -stdv, stdv)


def init_conv_surface(key, kernel_num, support_num, dim=3):
    stdv = 1.0 / math.sqrt(support_num * kernel_num)
    return {"directions": _uniform(key, (dim, support_num * kernel_num), stdv)}


def init_conv_layer(key, in_channel, out_channel, support_num, dim=3):
    stdv = 1.0 / math.sqrt(out_channel * (support_num + 1))
    k1, k2, k3 = jax.random.split(key, 3)
    return {
        "weights": _uniform(k1, (in_channel, (support_num + 1) * out_channel), stdv),
        "bias": _uniform(k2, ((support_num + 1) * out_channel,), stdv),
        "directions": _uniform(k3, (dim, support_num * out_channel), stdv),
    }


def init_bn(c):
    return {"gamma": jnp.ones((c,), jnp.float32),
            "beta": jnp.zeros((c,), jnp.float32),
            "mean": jnp.zeros((c,), jnp.float32),
            "var": jnp.ones((c,), jnp.float32)}


def init_params(key, support_num):
    keys = jax.random.split(key, 16)
    p = {}
    p["conv_0_v"] = init_conv_surface(keys[0], 128, support_num)
    p["conv_0_x"] = init_conv_surface(keys[1], 128, support_num)
    p["conv_0_n"] = init_conv_surface(keys[2], 128, support_num)
    p["conv_1_v"] = init_conv_layer(keys[3], 128, 128, support_num)
    p["conv_1_x"] = init_conv_layer(keys[4], 128, 128, support_num)
    p["conv_1_n"] = init_conv_layer(keys[5], 128, 128, support_num)
    p["conv_2_v"] = init_conv_layer(keys[6], 128, 128, support_num)
    p["conv_2_x"] = init_conv_layer(keys[7], 128, 128, support_num)
    p["conv_2_n"] = init_conv_layer(keys[8], 128, 128, support_num)
    # TODO(synk): gcn3d.Conv_fuse_layer source unavailable; modeled as Conv_layer
    # whose support directions live in the fused 9-D coordinate space of pool_2.
    p["conv_4"] = init_conv_layer(keys[9], 384, 512, support_num, dim=9)
    p["conv_5"] = init_conv_layer(keys[10], 512, 512, support_num, dim=9)
    for name in ["bn1_v", "bn1_x", "bn1_n", "bn2_v", "bn2_x", "bn2_n"]:
        p[name] = init_bn(128)
    return p


# ----------------------------------------------------------------------------
# FusionNetLite forward
# ----------------------------------------------------------------------------
def fusion_net_lite(params, vertices, xyz, normal, *, neighbor_num, support_num):
    relu = lambda t: jnp.maximum(t, 0.0)

    ni = get_neighbor_index(vertices, neighbor_num)
    fm_0_v = relu(conv_surface(ni, vertices, params["conv_0_v"]["directions"], support_num, 128))
    fm_0_x = relu(conv_surface(ni, xyz, params["conv_0_x"]["directions"], support_num, 128))
    fm_0_n = relu(conv_surface(ni, normal, params["conv_0_n"]["directions"], support_num, 128))

    fm_1_v = relu(batchnorm(conv_layer(ni, vertices, fm_0_v, params["conv_1_v"], support_num, 128), params["bn1_v"]))
    fm_1_x = relu(batchnorm(conv_layer(ni, xyz, fm_0_x, params["conv_1_x"], support_num, 128), params["bn1_x"]))
    fm_1_n = relu(batchnorm(conv_layer(ni, normal, fm_0_n, params["conv_1_n"], support_num, 128), params["bn1_n"]))

    feat_1 = jnp.concatenate([fm_1_v, fm_1_x, fm_1_n], axis=2)          # (B, V, 384)
    feat_feature = jnp.concatenate([vertices, xyz, normal], axis=2)     # (B, V, 9)

    v_pool_1, fm_pool_1_v = pool_layer(vertices, fm_1_v)
    x_pool_1, fm_pool_1_x = pool_layer(xyz, fm_1_x)
    n_pool_1, fm_pool_1_n = pool_layer(normal, fm_1_n)
    pool_1, _fm_pool_1 = pool_layer(feat_feature, feat_1)

    ni = get_neighbor_index(v_pool_1, min(neighbor_num, v_pool_1.shape[1] // 8))
    fm_2_v = relu(batchnorm(conv_layer(ni, v_pool_1, fm_pool_1_v, params["conv_2_v"], support_num, 128), params["bn2_v"]))
    fm_2_x = relu(batchnorm(conv_layer(ni, x_pool_1, fm_pool_1_x, params["conv_2_x"], support_num, 128), params["bn2_x"]))
    fm_2_n = relu(batchnorm(conv_layer(ni, n_pool_1, fm_pool_1_n, params["conv_2_n"], support_num, 128), params["bn2_n"]))
    feat_2 = jnp.concatenate([fm_2_v, fm_2_x, fm_2_n], axis=2)          # (B, V/4, 384)

    pool_2, fm_pool_2 = pool_layer(pool_1, feat_2)                      # (B, V/16, 9), (B, V/16, 384)

    ni = get_neighbor_index(pool_2, min(neighbor_num, pool_2.shape[1] // 8))
    fm_4 = conv_layer(ni, pool_2, fm_pool_2, params["conv_4"], support_num, 512)
    fm_5 = conv_layer(ni, pool_2, fm_4, params["conv_5"], support_num, 512)

    nearest_pool_1 = get_nearest_index(vertices, pool_1[..., :3])
    nearest_pool_2 = get_nearest_index(vertices, pool_2[..., :3])
    feat_1 = jnp.squeeze(indexing_neighbor(feat_1, nearest_pool_1), axis=2)
    feat_2 = jnp.squeeze(indexing_neighbor(feat_2, nearest_pool_1), axis=2)
    fm_5 = jnp.squeeze(indexing_neighbor(fm_5, nearest_pool_2), axis=2)
    feat = jnp.concatenate([fm_5, feat_1, feat_2], axis=2)              # (B, V, 1280)
    return feat


if __name__ == "__main__":
    B, V = 2, 256
    NEIGHBOR_NUM = 8     # cfg.Module.GCN3D.GCN_N_NUM  (synthetic, small)
    SUPPORT_NUM = 2      # cfg.Module.GCN3D.GCN_SUP_NUM (synthetic, small)

    key = jax.random.PRNGKey(0)
    kp, kv, kx, kn = jax.random.split(key, 4)
    params = init_params(kp, SUPPORT_NUM)

    vertices = jax.random.normal(kv, (B, V, 3), jnp.float32)
    xyz = jax.random.normal(kx, (B, V, 3), jnp.float32)
    normal = jax.random.normal(kn, (B, V, 3), jnp.float32)
    normal = normal / jnp.linalg.norm(normal, axis=-1, keepdims=True)

    fwd = jax.jit(functools.partial(fusion_net_lite,
                                    neighbor_num=NEIGHBOR_NUM,
                                    support_num=SUPPORT_NUM))
    feat = fwd(params, vertices, xyz, normal)
    feat = jax.block_until_ready(feat)

    assert feat.shape == (B, V, 512 + 384 + 384), feat.shape
    assert bool(jnp.all(jnp.isfinite(feat)))
    print("KERNEL_OK")
</pallas_src>

<mosaic_0001>
module attributes {stable_mosaic.version = 11 : i64} {
  func.func @_sqdist_kernel(%arg0: i32, %arg1: i32, %arg2: i32, %arg3: memref<1x256x128xf32, #tpu.memory_space<vmem>>, %arg4: memref<1x128x256xf32, #tpu.memory_space<vmem>>, %arg5: memref<1x256x256xf32, #tpu.memory_space<vmem>>) attributes {dimension_semantics = [#tpu.dimension_semantics<parallel>, #tpu.dimension_semantics<parallel>, #tpu.dimension_semantics<parallel>], iteration_bounds = array<i64: 2, 1, 1>, scalar_prefetch = 0 : i64, scratch_operands = 0 : i64, tpu.core_type = #tpu.core_type<tc>, window_params = [{transform_indices = @transform_0, window_bounds = array<i64: 1, 256, 128>}, {transform_indices = @transform_1, window_bounds = array<i64: 1, 128, 256>}, {transform_indices = @transform_2, window_bounds = array<i64: 1, 256, 256>}]} {
    %c0 = arith.constant 0 : index
    %c0_0 = arith.constant 0 : index
    %c0_1 = arith.constant 0 : index
    %0 = vector.load %arg3[%c0, %c0_0, %c0_1] : memref<1x256x128xf32, #tpu.memory_space<vmem>>, vector<1x256x128xf32>
    %1 = vector.shape_cast %0 : vector<1x256x128xf32> to vector<256x128xf32>
    %c0_2 = arith.constant 0 : index
    %c0_3 = arith.constant 0 : index
    %c0_4 = arith.constant 0 : index
    %2 = vector.load %arg4[%c0_2, %c0_3, %c0_4] : memref<1x128x256xf32, #tpu.memory_space<vmem>>, vector<1x128x256xf32>
    %3 = vector.shape_cast %2 : vector<1x128x256xf32> to vector<128x256xf32>
    %4 = arith.mulf %1, %1 : vector<256x128xf32>
    %cst = arith.constant dense<0.000000e+00> : vector<256xf32>
    %5 = vector.multi_reduction <add>, %4, %cst [1] : vector<256x128xf32> to vector<256xf32>
    %6 = vector.shape_cast %5 : vector<256xf32> to vector<256x1xf32>
    %7 = arith.mulf %3, %3 : vector<128x256xf32>
    %cst_5 = arith.constant dense<0.000000e+00> : vector<256xf32>
    %8 = vector.multi_reduction <add>, %7, %cst_5 [0] : vector<128x256xf32> to vector<256xf32>
    %9 = vector.shape_cast %8 : vector<256xf32> to vector<1x256xf32>
    %cst_6 = arith.constant dense<0.000000e+00> : vector<256x256xf32>
    %10 = tpu.matmul %1, %3, %cst_6 {dimension_numbers = #tpu.dot_dimension_numbers<[1], [0], [0], [1], [0, 0, 1, 1], [], []>} : vector<256x128xf32>, vector<128x256xf32>, vector<256x256xf32> -> vector<256x256xf32>
    %11 = vector.broadcast %6 : vector<256x1xf32> to vector<256x256xf32>
    %12 = vector.broadcast %9 : vector<1x256xf32> to vector<256x256xf32>
    %13 = arith.addf %11, %12 : vector<256x256xf32>
    %cst_7 = arith.constant 2.000000e+00 : f32
    %14 = vector.broadcast %cst_7 : f32 to vector<256x256xf32>
    %15 = arith.mulf %14, %10 : vector<256x256xf32>
    %16 = arith.subf %13, %15 : vector<256x256xf32>
    %c0_8 = arith.constant 0 : index
    %c0_9 = arith.constant 0 : index
    %c0_10 = arith.constant 0 : index
    %17 = vector.load %arg5[%c0_8, %c0_9, %c0_10] : memref<1x256x256xf32, #tpu.memory_space<vmem>>, vector<1x256x256xf32>
    %18 = vector.shape_cast %17 : vector<1x256x256xf32> to vector<256x256xf32>
    %19 = vector.shape_cast %16 : vector<256x256xf32> to vector<1x256x256xf32>
    tpu.vector_store %arg5[%c0_8, %c0_9, %c0_10], %19 {strides = array<i32>} : memref<1x256x256xf32, #tpu.memory_space<vmem>>, vector<1x256x256xf32>,
    return
  }
  func.func @transform_0(%arg0: i32, %arg1: i32, %arg2: i32) -> (i32, i32, i32) {
    %c0_i32 = arith.constant 0 : i32
    %c0_i32_0 = arith.constant 0 : i32
    return %arg0, %arg1, %c0_i32 : i32, i32, i32
  }
  func.func @transform_1(%arg0: i32, %arg1: i32, %arg2: i32) -> (i32, i32, i32) {
    %c0_i32 = arith.constant 0 : i32
    %c0_i32_0 = arith.constant 0 : i32
    return %arg0, %c0_i32, %arg2 : i32, i32, i32
  }
  func.func @transform_2(%arg0: i32, %arg1: i32, %arg2: i32) -> (i32, i32, i32) {
    %c0_i32 = arith.constant 0 : i32
    return %arg0, %arg1, %arg2 : i32, i32, i32
  }
}

module attributes {stable_mosaic.version = 11 : i64} {
  func.func @_conv_surface_kernel(%arg0: i32, %arg1: i32, %arg2: memref<1x256x8xi32, #tpu.memory_space<vmem>>, %arg3: memref<1x256x128xf32, #tpu.memory_space<vmem>>, %arg4: memref<1x256x128xf32, #tpu.memory_space<vmem>>, %arg5: memref<128x256xf32, #tpu.memory_space<vmem>>, %arg6: memref<1x256x128xf32, #tpu.memory_space<vmem>>) attributes {dimension_semantics = [#tpu.dimension_semantics<parallel>, #tpu.dimension_semantics<parallel>], iteration_bounds = array<i64: 2, 1>, scalar_prefetch = 0 : i64, scratch_operands = 0 : i64, tpu.core_type = #tpu.core_type<tc>, window_params = [{transform_indices = @transform_0, window_bounds = array<i64: 1, 256, 8>}, {transform_indices = @transform_1, window_bounds = array<i64: 1, 256, 128>}, {transform_indices = @transform_2, window_bounds = array<i64: 1, 256, 128>}, {pipeline_mode = #tpu.pipeline_mode<synchronous>, transform_indices = @transform_3, window_bounds = array<i64: 128, 256>}, {transform_indices = @transform_4, window_bounds = array<i64: 1, 256, 128>}]} {
    %c0 = arith.constant 0 : index
    %c0_0 = arith.constant 0 : index
    %c0_1 = arith.constant 0 : index
    %0 = vector.load %arg2[%c0, %c0_0, %c0_1] : memref<1x256x8xi32, #tpu.memory_space<vmem>>, vector<1x256x8xi32>
    %1 = vector.shape_cast %0 : vector<1x256x8xi32> to vector<256x8xi32>
    %c0_2 = arith.constant 0 : index
    %c0_3 = arith.constant 0 : index
    %c0_4 = arith.constant 0 : index
    %2 = vector.load %arg3[%c0_2, %c0_3, %c0_4] : memref<1x256x128xf32, #tpu.memory_space<vmem>>, vector<1x256x128xf32>
    %3 = vector.shape_cast %2 : vector<1x256x128xf32> to vector<256x128xf32>
    %c0_5 = arith.constant 0 : index
    %c0_6 = arith.constant 0 : index
    %c0_7 = arith.constant 0 : index
    %4 = vector.load %arg4[%c0_5, %c0_6, %c0_7] : memref<1x256x128xf32, #tpu.memory_space<vmem>>, vector<1x256x128xf32>
    %5 = vector.shape_cast %4 : vector<1x256x128xf32> to vector<256x128xf32>
    %c0_8 = arith.constant 0 : index
    %c0_9 = arith.constant 0 : index
    %6 = vector.load %arg5[%c0_8, %c0_9] : memref<128x256xf32, #tpu.memory_space<vmem>>, vector<128x256xf32>
    %7 = tpu.iota {dimensions = array<i32: 1>} : vector<1x256xi32>
    %8 = vector.extract_strided_slice %1 {offsets = [0, 0], sizes = [256, 1], strides = [1, 1]} : vector<256x8xi32> to vector<256x1xi32>
    %9 = vector.broadcast %8 : vector<256x1xi32> to vector<256x256xi32>
    %10 = vector.broadcast %7 : vector<1x256xi32> to vector<256x256xi32>
    %11 = arith.cmpi eq, %9, %10 : vector<256x256xi32>
    %cst = arith.constant 1.000000e+00 : f32
    %cst_10 = arith.constant 0.000000e+00 : f32
    %12 = vector.broadcast %cst : f32 to vector<256x256xf32>
    %13 = vector.broadcast %cst_10 : f32 to vector<256x256xf32>
    %14 = arith.select %11, %12, %13 : vector<256x256xi1>, vector<256x256xf32>
    %cst_11 = arith.constant dense<0.000000e+00> : vector<256x128xf32>
    %15 = tpu.matmul %14, %3, %cst_11 {dimension_numbers = #tpu.dot_dimension_numbers<[1], [0], [0], [1], [0, 0, 1, 1], [], []>} : vector<256x256xf32>, vector<256x128xf32>, vector<256x128xf32> -> vector<256x128xf32>
    %16 = arith.subf %15, %5 : vector<256x128xf32>
    %17 = arith.mulf %16, %16 : vector<256x128xf32>
    %cst_12 = arith.constant dense<0.000000e+00> : vector<256xf32>
    %18 = vector.multi_reduction <add>, %17, %cst_12 [1] : vector<256x128xf32> to vector<256xf32>
    %19 = vector.shape_cast %18 : vector<256xf32> to vector<256x1xf32>
    %cst_13 = arith.constant 1.000000e-24 : f32
    %20 = vector.broadcast %cst_13 : f32 to vector<256x1xf32>
    %21 = arith.maximumf %19, %20 : vector<256x1xf32>
    %22 = math.rsqrt %21 : vector<256x1xf32>
    %23 = vector.broadcast %22 : vector<256x1xf32> to vector<256x128xf32>
    %24 = arith.mulf %16, %23 : vector<256x128xf32>
    %cst_14 = arith.constant dense<0.000000e+00> : vector<256x256xf32>
    %25 = tpu.matmul %24, %6, %cst_14 {dimension_numbers = #tpu.dot_dimension_numbers<[1], [0], [0], [1], [0, 0, 1, 1], [], []>} : vector<256x128xf32>, vector<128x256xf32>, vector<256x256xf32> -> vector<256x256xf32>
    %cst_15 = arith.constant 0.000000e+00 : f32
    %26 = vector.broadcast %cst_15 : f32 to vector<256x256xf32>
    %27 = arith.maximumf %25, %26 : vector<256x256xf32>
    %28 = vector.extract_strided_slice %1 {offsets = [0, 1], sizes = [256, 1], strides = [1, 1]} : vector<256x8xi32> to vector<256x1xi32>
    %29 = vector.broadcast %28 : vector<256x1xi32> to vector<256x256xi32>
    %30 = vector.broadcast %7 : vector<1x256xi32> to vector<256x256xi32>
    %31 = arith.cmpi eq, %29, %30 : vector<256x256xi32>
    %cst_16 = arith.constant 1.000000e+00 : f32
    %cst_17 = arith.constant 0.000000e+00 : f32
    %32 = vector.broadcast %cst_16 : f32 to vector<256x256xf32>
    %33 = vector.broadcast %cst_17 : f32 to vector<256x256xf32>
    %34 = arith.select %31, %32, %33 : vector<256x256xi1>, vector<256x256xf32>
    %cst_18 = arith.constant dense<0.000000e+00> : vector<256x128xf32>
    %35 = tpu.matmul %34, %3, %cst_18 {dimension_numbers = #tpu.dot_dimension_numbers<[1], [0], [0], [1], [0, 0, 1, 1], [], []>} : vector<256x256xf32>, vector<256x128xf32>, vector<256x128xf32> -> vector<256x128xf32>
    %36 = arith.subf %35, %5 : vector<256x128xf32>
    %37 = arith.mulf %36, %36 : vector<256x128xf32>
    %cst_19 = arith.constant dense<0.000000e+00> : vector<256xf32>
    %38 = vector.multi_reduction <add>, %37, %cst_19 [1] : vector<256x128xf32> to vector<256xf32>
    %39 = vector.shape_cast %38 : vector<256xf32> to vector<256x1xf32>
    %cst_20 = arith.constant 1.000000e-24 : f32
    %40 = vector.broadcast %cst_20 : f32 to vector<256x1xf32>
    %41 = arith.maximumf %39, %40 : vector<256x1xf32>
    %42 = math.rsqrt %41 : vector<256x1xf32>
    %43 = vector.broadcast %42 : vector<256x1xf32> to vector<256x128xf32>
    %44 = arith.mulf %36, %43 : vector<256x128xf32>
    %cst_21 = arith.constant dense<0.000000e+00> : vector<256x256xf32>
    %45 = tpu.matmul %44, %6, %cst_21 {dimension_numbers = #tpu.dot_dimension_numbers<[1], [0], [0], [1], [0, 0, 1, 1], [], []>} : vector<256x128xf32>, vector<128x256xf32>, vector<256x256xf32> -> vector<256x256xf32>
    %cst_22 = arith.constant 0.000000e+00 : f32
    %46 = vector.broadcast %cst_22 : f32 to vector<256x256xf32>
    %47 = arith.maximumf %45, %46 : vector<256x256xf32>
    %48 = arith.maximumf %27, %47 : vector<256x256xf32>
    %49 = vector.extract_strided_slice %1 {offsets = [0, 2], sizes = [256, 1], strides = [1, 1]} : vector<256x8xi32> to vector<256x1xi32>
    %50 = vector.broadcast %49 : vector<256x1xi32> to vector<256x256xi32>
    %51 = vector.broadcast %7 : vector<1x256xi32> to vector<256x256xi32>
    %52 = arith.cmpi eq, %50, %51 : vector<256x256xi32>
    %cst_23 = arith.constant 1.000000e+00 : f32
    %cst_24 = arith.constant 0.000000e+00 : f32
    %53 = vector.broadcast %cst_23 : f32 to vector<256x256xf32>
    %54 = vector.broadcast %cst_24 : f32 to vector<256x256xf32>
    %55 = arith.select %52, %53, %54 : vector<256x256xi1>, vector<256x256xf32>
    %cst_25 = arith.constant dense<0.000000e+00> : vector<256x128xf32>
    %56 = tpu.matmul %55, %3, %cst_25 {dimension_numbers = #tpu.dot_dimension_numbers<[1], [0], [0], [1], [0, 0, 1, 1], [], []>} : vector<256x256xf32>, vector<256x128xf32>, vector<256x128xf32> -> vector<256x128xf32>
    %57 = arith.subf %56, %5 : vector<256x128xf32>
    %58 = arith.mulf %57, %57 : vector<256x128xf32>
    %cst_26 = arith.constant dense<0.000000e+00> : vector<256xf32>
    %59 = vector.multi_reduction <add>, %58, %cst_26 [1] : vector<256x128xf32> to vector<256xf32>
    %60 = vector.shape_cast %59 : vector<256xf32> to vector<256x1xf32>
    %cst_27 = arith.constant 1.000000e-24 : f32
    %61 = vector.broadcast %cst_27 : f32 to vector<256x1xf32>
    %62 = arith.maximumf %60, %61 : vector<256x1xf32>
    %63 = math.rsqrt %62 : vector<256x1xf32>
    %64 = vector.broadcast %63 : vector<256x1xf32> to vector<256x128xf32>
    %65 = arith.mulf %57, %64 : vector<256x128xf32>
    %cst_28 = arith.constant dense<0.000000e+00> : vector<256x256xf32>
    %66 = tpu.matmul %65, %6, %cst_28 {dimension_numbers = #tpu.dot_dimension_numbers<[1], [0], [0], [1], [0, 0, 1, 1], [], []>} : vector<256x128xf32>, vector<128x256xf32>, vector<256x256xf32> -> vector<256x256xf32>
    %cst_29 = arith.constant 0.000000e+00 : f32
    %67 = vector.broadcast %cst_29 : f32 to vector<256x256xf32>
    %68 = arith.maximumf %66, %67 : vector<256x256xf32>
    %69 = arith.maximumf %48, %68 : vector<256x256xf32>
    %70 = vector.extract_strided_slice %1 {offsets = [0, 3], sizes = [256, 1], strides = [1, 1]} : vector<256x8xi32> to vector<256x1xi32>
    %71 = vector.broadcast %70 : vector<256x1xi32> to vector<256x256xi32>
    %72 = vector.broadcast %7 : vector<1x256xi32> to vector<256x256xi32>
    %73 = arith.cmpi eq, %71, %72 : vector<256x256xi32>
    %cst_30 = arith.constant 1.000000e+00 : f32
    %cst_31 = arith.constant 0.000000e+00 : f32
    %74 = vector.broadcast %cst_30 : f32 to vector<256x256xf32>
    %75 = vector.broadcast %cst_31 : f32 to vector<256x256xf32>
    %76 = arith.select %73, %74, %75 : vector<256x256xi1>, vector<256x256xf32>
    %cst_32 = arith.constant dense<0.000000e+00> : vector<256x128xf32>
    %77 = tpu.matmul %76, %3, %cst_32 {dimension_numbers = #tpu.dot_dimension_numbers<[1], [0], [0], [1], [0, 0, 1, 1], [], []>} : vector<256x256xf32>, vector<256x128xf32>, vector<256x128xf32> -> vector<256x128xf32>
    %78 = arith.subf %77, %5 : vector<256x128xf32>
    %79 = arith.mulf %78, %78 : vector<256x128xf32>
    %cst_33 = arith.constant dense<0.000000e+00> : vector<256xf32>
    %80 = vector.multi_reduction <add>, %79, %cst_33 [1] : vector<256x128xf32> to vector<256xf32>
    %81 = vector.shape_cast %80 : vector<256xf32> to vector<256x1xf32>
    %cst_34 = arith.constant 1.000000e-24 : f32
    %82 = vector.broadcast %cst_34 : f32 to vector<256x1xf32>
    %83 = arith.maximumf %81, %82 : vector<256x1xf32>
    %84 = math.rsqrt %83 : vector<256x1xf32>
    %85 = vector.broadcast %84 : vector<256x1xf32> to vector<256x128xf32>
    %86 = arith.mulf %78, %85 : vector<256x128xf32>
    %cst_35 = arith.constant dense<0.000000e+00> : vector<256x256xf32>
    %87 = tpu.matmul %86, %6, %cst_35 {dimension_numbers = #tpu.dot_dimension_numbers<[1], [0], [0], [1], [0, 0, 1, 1], [], []>} : vector<256x128xf32>, vector<128x256xf32>, vector<256x256xf32> -> vector<256x256xf32>
    %cst_36 = arith.constant 0.000000e+00 : f32
    %88 = vector.broadcast %cst_36 : f32 to vector<256x256xf32>
    %89 = arith.maximumf %87, %88 : vector<256x256xf32>
    %90 = arith.maximumf %69, %89 : vector<256x256xf32>
    %91 = vector.extract_strided_slice %1 {offsets = [0, 4], sizes = [256, 1], strides = [1, 1]} : vector<256x8xi32> to vector<256x1xi32>
    %92 = vector.broadcast %91 : vector<256x1xi32> to vector<256x256xi32>
    %93 = vector.broadcast %7 : vector<1x256xi32> to vector<256x256xi32>
    %94 = arith.cmpi eq, %92, %93 : vector<256x256xi32>
    %cst_37 = arith.constant 1.000000e+00 : f32
    %cst_38 = arith.constant 0.000000e+00 : f32
    %95 = vector.broadcast %cst_37 : f32 to vector<256x256xf32>
    %96 = vector.broadcast %cst_38 : f32 to vector<256x256xf32>
    %97 = arith.select %94, %95, %96 : vector<256x256xi1>, vector<256x256xf32>
    %cst_39 = arith.constant dense<0.000000e+00> : vector<256x128xf32>
    %98 = tpu.matmul %97, %3, %cst_39 {dimension_numbers = #tpu.dot_dimension_numbers<[1], [0], [0], [1], [0, 0, 1, 1], [], []>} : vector<256x256xf32>, vector<256x128xf32>, vector<256x128xf32> -> vector<256x128xf32>
    %99 = arith.subf %98, %5 : vector<256x128xf32>
    %100 = arith.mulf %99, %99 : vector<256x128xf32>
    %cst_40 = arith.constant dense<0.000000e+00> : vector<256xf32>
    %101 = vector.multi_reduction <add>, %100, %cst_40 [1] : vector<256x128xf32> to vector<256xf32>
    %102 = vector.shape_cast %101 : vector<256xf32> to vector<256x1xf32>
    %cst_41 = arith.constant 1.000000e-24 : f32
    %103 = vector.broadcast %cst_41 : f32 to vector<256x1xf32>
    %104 = arith.maximumf %102, %103 : vector<256x1xf32>
    %105 = math.rsqrt %104 : vector<256x1xf32>
    %106 = vector.broadcast %105 : vector<256x1xf32> to vector<256x128xf32>
    %107 = arith.mulf %99, %106 : vector<256x128xf32>
    %cst_42 = arith.constant dense<0.000000e+00> : vector<256x256xf32>
    %108 = tpu.matmul %107, %6, %cst_42 {dimension_numbers = #tpu.dot_dimension_numbers<[1], [0], [0], [1], [0, 0, 1, 1], [], []>} : vector<256x128xf32>, vector<128x256xf32>, vector<256x256xf32> -> vector<256x256xf32>
    %cst_43 = arith.constant 0.000000e+00 : f32
    %109 = vector.broadcast %cst_43 : f32 to vector<256x256xf32>
    %110 = arith.maximumf %108, %109 : vector<256x256xf32>
    %111 = arith.maximumf %90, %110 : vector<256x256xf32>
    %112 = vector.extract_strided_slice %1 {offsets = [0, 5], sizes = [256, 1], strides = [1, 1]} : vector<256x8xi32> to vector<256x1xi32>
    %113 = vector.broadcast %112 : vector<256x1xi32> to vector<256x256xi32>
    %114 = vector.broadcast %7 : vector<1x256xi32> to vector<256x256xi32>
    %115 = arith.cmpi eq, %113, %114 : vector<256x256xi32>
    %cst_44 = arith.constant 1.000000e+00 : f32
    %cst_45 = arith.constant 0.000000e+00 : f32
    %116 = vector.broadcast %cst_44 : f32 to vector<256x256xf32>
    %117 = vector.broadcast %cst_45 : f32 to vector<256x256xf32>
    %118 = arith.select %115, %116, %117 : vector<256x256xi1>, vector<256x256xf32>
    %cst_46 = arith.constant dense<0.000000e+00> : vector<256x128xf32>
    %119 = tpu.matmul %118, %3, %cst_46 {dimension_numbers = #tpu.dot_dimension_numbers<[1], [0], [0], [1], [0, 0, 1, 1], [], []>} : vector<256x256xf32>, vector<256x128xf32>, vector<256x128xf32> -> vector<256x128xf32>
    %120 = arith.subf %119, %5 : vector<256x128xf32>
    %121 = arith.mulf %120, %120 : vector<256x128xf32>
    %cst_47 = arith.constant dense<0.000000e+00> : vector<256xf32>
    %122 = vector.multi_reduction <add>, %121, %cst_47 [1] : vector<256x128xf32> to vector<256xf32>
    %123 = vector.shape_cast %122 : vector<256xf32> to vector<256x1xf32>
    %cst_48 = arith.constant 1.000000e-24 : f32
    %124 = vector.broadcast %cst_48 : f32 to vector<256x1xf32>
    %125 = arith.maximumf %123, %124 : vector<256x1xf32>
    %126 = math.rsqrt %125 : vector<256x1xf32>
    %127 = vector.broadcast %126 : vector<256x1xf32> to vector<256x128xf32>
    %128 = arith.mulf %120, %127 : vector<256x128xf32>
    %cst_49 = arith.constant dense<0.000000e+00> : vector<256x256xf32>
    %129 = tpu.matmul %128, %6, %cst_49 {dimension_numbers = #tpu.dot_dimension_numbers<[1], [0], [0], [1], [0, 0, 1, 1], [], []>} : vector<256x128xf32>, vector<128x256xf32>, vector<256x256xf32> -> vector<256x256xf32>
    %cst_50 = arith.constant 0.000000e+00 : f32
    %130 = vector.broadcast %cst_50 : f32 to vector<256x256xf32>
    %131 = arith.maximumf %129, %130 : vector<256x256xf32>
    %132 = arith.maximumf %111, %131 : vector<256x256xf32>
    %133 = vector.extract_strided_slice %1 {offsets = [0, 6], sizes = [256, 1], strides = [1, 1]} : vector<256x8xi32> to vector<256x1xi32>
    %134 = vector.broadcast %133 : vector<256x1xi32> to vector<256x256xi32>
    %135 = vector.broadcast %7 : vector<1x256xi32> to vector<256x256xi32>
    %136 = arith.cmpi eq, %134, %135 : vector<256x256xi32>
    %cst_51 = arith.constant 1.000000e+00 : f32
    %cst_52 = arith.constant 0.000000e+00 : f32
    %137 = vector.broadcast %cst_51 : f32 to vector<256x256xf32>
    %138 = vector.broadcast %cst_52 : f32 to vector<256x256xf32>
    %139 = arith.select %136, %137, %138 : vector<256x256xi1>, vector<256x256xf32>
    %cst_53 = arith.constant dense<0.000000e+00> : vector<256x128xf32>
    %140 = tpu.matmul %139, %3, %cst_53 {dimension_numbers = #tpu.dot_dimension_numbers<[1], [0], [0], [1], [0, 0, 1, 1], [], []>} : vector<256x256xf32>, vector<256x128xf32>, vector<256x128xf32> -> vector<256x128xf32>
    %141 = arith.subf %140, %5 : vector<256x128xf32>
    %142 = arith.mulf %141, %141 : vector<256x128xf32>
    %cst_54 = arith.constant dense<0.000000e+00> : vector<256xf32>
    %143 = vector.multi_reduction <add>, %142, %cst_54 [1] : vector<256x128xf32> to vector<256xf32>
    %144 = vector.shape_cast %143 : vector<256xf32> to vector<256x1xf32>
    %cst_55 = arith.constant 1.000000e-24 : f32
    %145 = vector.broadcast %cst_55 : f32 to vector<256x1xf32>
    %146 = arith.maximumf %144, %145 : vector<256x1xf32>
    %147 = math.rsqrt %146 : vector<256x1xf32>
    %148 = vector.broadcast %147 : vector<256x1xf32> to vector<256x128xf32>
    %149 = arith.mulf %141, %148 : vector<256x128xf32>
    %cst_56 = arith.constant dense<0.000000e+00> : vector<256x256xf32>
    %150 = tpu.matmul %149, %6, %cst_56 {dimension_numbers = #tpu.dot_dimension_numbers<[1], [0], [0], [1], [0, 0, 1, 1], [], []>} : vector<256x128xf32>, vector<128x256xf32>, vector<256x256xf32> -> vector<256x256xf32>
    %cst_57 = arith.constant 0.000000e+00 : f32
    %151 = vector.broadcast %cst_57 : f32 to vector<256x256xf32>
    %152 = arith.maximumf %150, %151 : vector<256x256xf32>
    %153 = arith.maximumf %132, %152 : vector<256x256xf32>
    %154 = vector.extract_strided_slice %1 {offsets = [0, 7], sizes = [256, 1], strides = [1, 1]} : vector<256x8xi32> to vector<256x1xi32>
    %155 = vector.broadcast %154 : vector<256x1xi32> to vector<256x256xi32>
    %156 = vector.broadcast %7 : vector<1x256xi32> to vector<256x256xi32>
    %157 = arith.cmpi eq, %155, %156 : vector<256x256xi32>
    %cst_58 = arith.constant 1.000000e+00 : f32
    %cst_59 = arith.constant 0.000000e+00 : f32
    %158 = vector.broadcast %cst_58 : f32 to vector<256x256xf32>
    %159 = vector.broadcast %cst_59 : f32 to vector<256x256xf32>
    %160 = arith.select %157, %158, %159 : vector<256x256xi1>, vector<256x256xf32>
    %cst_60 = arith.constant dense<0.000000e+00> : vector<256x128xf32>
    %161 = tpu.matmul %160, %3, %cst_60 {dimension_numbers = #tpu.dot_dimension_numbers<[1], [0], [0], [1], [0, 0, 1, 1], [], []>} : vector<256x256xf32>, vector<256x128xf32>, vector<256x128xf32> -> vector<256x128xf32>
    %162 = arith.subf %161, %5 : vector<256x128xf32>
    %163 = arith.mulf %162, %162 : vector<256x128xf32>
    %cst_61 = arith.constant dense<0.000000e+00> : vector<256xf32>
    %164 = vector.multi_reduction <add>, %163, %cst_61 [1] : vector<256x128xf32> to vector<256xf32>
    %165 = vector.shape_cast %164 : vector<256xf32> to vector<256x1xf32>
    %cst_62 = arith.constant 1.000000e-24 : f32
    %166 = vector.broadcast %cst_62 : f32 to vector<256x1xf32>
    %167 = arith.maximumf %165, %166 : vector<256x1xf32>
    %168 = math.rsqrt %167 : vector<256x1xf32>
    %169 = vector.broadcast %168 : vector<256x1xf32> to vector<256x128xf32>
    %170 = arith.mulf %162, %169 : vector<256x128xf32>
    %cst_63 = arith.constant dense<0.000000e+00> : vector<256x256xf32>
    %171 = tpu.matmul %170, %6, %cst_63 {dimension_numbers = #tpu.dot_dimension_numbers<[1], [0], [0], [1], [0, 0, 1, 1], [], []>} : vector<256x128xf32>, vector<128x256xf32>, vector<256x256xf32> -> vector<256x256xf32>
    %cst_64 = arith.constant 0.000000e+00 : f32
    %172 = vector.broadcast %cst_64 : f32 to vector<256x256xf32>
    %173 = arith.maximumf %171, %172 : vector<256x256xf32>
    %174 = arith.maximumf %153, %173 : vector<256x256xf32>
    %175 = vector.extract_strided_slice %174 {offsets = [0, 0], sizes = [256, 128], strides = [1, 1]} : vector<256x256xf32> to vector<256x128xf32>
    %176 = vector.extract_strided_slice %174 {offsets = [0, 128], sizes = [256, 128], strides = [1, 1]} : vector<256x256xf32> to vector<256x128xf32>
    %177 = arith.addf %175, %176 : vector<256x128xf32>
    %c0_65 = arith.constant 0 : index
    %c0_66 = arith.constant 0 : index
    %c0_67 = arith.constant 0 : index
    %178 = vector.load %arg6[%c0_65, %c0_66, %c0_67] : memref<1x256x128xf32, #tpu.memory_space<vmem>>, vector<1x256x128xf32>
    %179 = vector.shape_cast %178 : vector<1x256x128xf32> to vector<256x128xf32>
    %180 = vector.shape_cast %177 : vector<256x128xf32> to vector<1x256x128xf32>
    tpu.vector_store %arg6[%c0_65, %c0_66, %c0_67], %180 {strides = array<i32>} : memref<1x256x128xf32, #tpu.memory_space<vmem>>, vector<1x256x128xf32>,
    return
  }
  func.func @transform_0(%arg0: i32, %arg1: i32) -> (i32, i32, i32) {
    %c0_i32 = arith.constant 0 : i32
    %c0_i32_0 = arith.constant 0 : i32
    return %arg0, %arg1, %c0_i32 : i32, i32, i32
  }
  func.func @transform_1(%arg0: i32, %arg1: i32) -> (i32, i32, i32) {
    %c0_i32 = arith.constant 0 : i32
    %c0_i32_0 = arith.constant 0 : i32
    %c0_i32_1 = arith.constant 0 : i32
    return %arg0, %c0_i32, %c0_i32_0 : i32, i32, i32
  }
  func.func @transform_2(%arg0: i32, %arg1: i32) -> (i32, i32, i32) {
    %c0_i32 = arith.constant 0 : i32
    %c0_i32_0 = arith.constant 0 : i32
    return %arg0, %arg1, %c0_i32 : i32, i32, i32
  }
  func.func @transform_3(%arg0: i32, %arg1: i32) -> (i32, i32) {
    %c0_i32 = arith.constant 0 : i32
    %c0_i32_0 = arith.constant 0 : i32
    %c0_i32_1 = arith.constant 0 : i32
    return %c0_i32, %c0_i32_0 : i32, i32
  }
  func.func @transform_4(%arg0: i32, %arg1: i32) -> (i32, i32, i32) {
    %c0_i32 = arith.constant 0 : i32
    %c0_i32_0 = arith.constant 0 : i32
    return %arg0, %arg1, %c0_i32 : i32, i32, i32
  }
}

module attributes {stable_mosaic.version = 11 : i64} {
  func.func @_linear_kernel(%arg0: i32, %arg1: memref<256x128xbf16, #tpu.memory_space<vmem>>, %arg2: memref<128x384xbf16, #tpu.memory_space<vmem>>, %arg3: memref<1x384xf32, #tpu.memory_space<vmem>>, %arg4: memref<256x384xf32, #tpu.memory_space<vmem>>) attributes {dimension_semantics = [#tpu.dimension_semantics<parallel>], iteration_bounds = array<i64: 2>, scalar_prefetch = 0 : i64, scratch_operands = 0 : i64, tpu.core_type = #tpu.core_type<tc>, window_params = [{transform_indices = @transform_0, window_bounds = array<i64: 256, 128>}, {pipeline_mode = #tpu.pipeline_mode<synchronous>, transform_indices = @transform_1, window_bounds = array<i64: 128, 384>}, {pipeline_mode = #tpu.pipeline_mode<synchronous>, transform_indices = @transform_2, window_bounds = array<i64: 1, 384>}, {transform_indices = @transform_3, window_bounds = array<i64: 256, 384>}]} {
    %c0 = arith.constant 0 : index
    %c0_0 = arith.constant 0 : index
    %0 = vector.load %arg1[%c0, %c0_0] : memref<256x128xbf16, #tpu.memory_space<vmem>>, vector<256x128xbf16>
    %c0_1 = arith.constant 0 : index
    %c0_2 = arith.constant 0 : index
    %1 = vector.load %arg2[%c0_1, %c0_2] : memref<128x384xbf16, #tpu.memory_space<vmem>>, vector<128x384xbf16>
    %cst = arith.constant dense<0.000000e+00> : vector<256x384xf32>
    %2 = tpu.matmul %0, %1, %cst {dimension_numbers = #tpu.dot_dimension_numbers<[1], [0], [0], [1], [0, 0, 1, 1], [], []>} : vector<256x128xbf16>, vector<128x384xbf16>, vector<256x384xf32> -> vector<256x384xf32>
    %c0_3 = arith.constant 0 : index
    %c0_4 = arith.constant 0 : index
    %3 = vector.load %arg3[%c0_3, %c0_4] : memref<1x384xf32, #tpu.memory_space<vmem>>, vector<1x384xf32>
    %4 = vector.broadcast %3 : vector<1x384xf32> to vector<256x384xf32>
    %5 = arith.addf %2, %4 : vector<256x384xf32>
    %c0_5 = arith.constant 0 : index
    %c0_6 = arith.constant 0 : index
    %6 = vector.load %arg4[%c0_5, %c0_6] : memref<256x384xf32, #tpu.memory_space<vmem>>, vector<256x384xf32>
    tpu.vector_store %arg4[%c0_5, %c0_6], %5 {strides = array<i32>} : memref<256x384xf32, #tpu.memory_space<vmem>>, vector<256x384xf32>,
    return
  }
  func.func @transform_0(%arg0: i32) -> (i32, i32) {
    %c0_i32 = arith.constant 0 : i32
    %c0_i32_0 = arith.constant 0 : i32
    return %arg0, %c0_i32 : i32, i32
  }
  func.func @transform_1(%arg0: i32) -> (i32, i32) {
    %c0_i32 = arith.constant 0 : i32
    %c0_i32_0 = arith.constant 0 : i32
    %c0_i32_1 = arith.constant 0 : i32
    return %c0_i32, %c0_i32_0 : i32, i32
  }
  func.func @transform_2(%arg0: i32) -> (i32, i32) {
    %c0_i32 = arith.constant 0 : i32
    %c0_i32_0 = arith.constant 0 : i32
    %c0_i32_1 = arith.constant 0 : i32
    return %c0_i32, %c0_i32_0 : i32, i32
  }
  func.func @transform_3(%arg0: i32) -> (i32, i32) {
    %c0_i32 = arith.constant 0 : i32
    %c0_i32_0 = arith.constant 0 : i32
    return %arg0, %c0_i32 : i32, i32
  }
}

module attributes {stable_mosaic.version = 11 : i64} {
  func.func @_conv_layer_kernel(%arg0: i32, %arg1: i32, %arg2: memref<1x256x8xi32, #tpu.memory_space<vmem>>, %arg3: memref<1x256x128xf32, #tpu.memory_space<vmem>>, %arg4: memref<1x256x128xf32, #tpu.memory_space<vmem>>, %arg5: memref<128x256xf32, #tpu.memory_space<vmem>>, %arg6: memref<1x256x256xf32, #tpu.memory_space<vmem>>, %arg7: memref<1x256x128xf32, #tpu.memory_space<vmem>>, %arg8: memref<1x256x128xf32, #tpu.memory_space<vmem>>) attributes {dimension_semantics = [#tpu.dimension_semantics<parallel>, #tpu.dimension_semantics<parallel>], iteration_bounds = array<i64: 2, 1>, scalar_prefetch = 0 : i64, scratch_operands = 0 : i64, tpu.core_type = #tpu.core_type<tc>, window_params = [{transform_indices = @transform_0, window_bounds = array<i64: 1, 256, 8>}, {transform_indices = @transform_1, window_bounds = array<i64: 1, 256, 128>}, {transform_indices = @transform_2, window_bounds = array<i64: 1, 256, 128>}, {pipeline_mode = #tpu.pipeline_mode<synchronous>, transform_indices = @transform_3, window_bounds = array<i64: 128, 256>}, {transform_indices = @transform_4, window_bounds = array<i64: 1, 256, 256>}, {transform_indices = @transform_5, window_bounds = array<i64: 1, 256, 128>}, {transform_indices = @transform_6, window_bounds = array<i64: 1, 256, 128>}]} {
    %c0 = arith.constant 0 : index
    %c0_0 = arith.constant 0 : index
    %c0_1 = arith.constant 0 : index
    %0 = vector.load %arg2[%c0, %c0_0, %c0_1] : memref<1x256x8xi32, #tpu.memory_space<vmem>>, vector<1x256x8xi32>
    %1 = vector.shape_cast %0 : vector<1x256x8xi32> to vector<256x8xi32>
    %c0_2 = arith.constant 0 : index
    %c0_3 = arith.constant 0 : index
    %c0_4 = arith.constant 0 : index
    %2 = vector.load %arg3[%c0_2, %c0_3, %c0_4] : memref<1x256x128xf32, #tpu.memory_space<vmem>>, vector<1x256x128xf32>
    %3 = vector.shape_cast %2 : vector<1x256x128xf32> to vector<256x128xf32>
    %c0_5 = arith.constant 0 : index
    %c0_6 = arith.constant 0 : index
    %c0_7 = arith.constant 0 : index
    %4 = vector.load %arg4[%c0_5, %c0_6, %c0_7] : memref<1x256x128xf32, #tpu.memory_space<vmem>>, vector<1x256x128xf32>
    %5 = vector.shape_cast %4 : vector<1x256x128xf32> to vector<256x128xf32>
    %c0_8 = arith.constant 0 : index
    %c0_9 = arith.constant 0 : index
    %6 = vector.load %arg5[%c0_8, %c0_9] : memref<128x256xf32, #tpu.memory_space<vmem>>, vector<128x256xf32>
    %c0_10 = arith.constant 0 : index
    %c0_11 = arith.constant 0 : index
    %c0_12 = arith.constant 0 : index
    %7 = vector.load %arg6[%c0_10, %c0_11, %c0_12] : memref<1x256x256xf32, #tpu.memory_space<vmem>>, vector<1x256x256xf32>
    %8 = vector.shape_cast %7 : vector<1x256x256xf32> to vector<256x256xf32>
    %c0_13 = arith.constant 0 : index
    %c0_14 = arith.constant 0 : index
    %c0_15 = arith.constant 0 : index
    %9 = vector.load %arg7[%c0_13, %c0_14, %c0_15] : memref<1x256x128xf32, #tpu.memory_space<vmem>>, vector<1x256x128xf32>
    %10 = vector.shape_cast %9 : vector<1x256x128xf32> to vector<256x128xf32>
    %11 = tpu.iota {dimensions = array<i32: 1>} : vector<1x256xi32>
    %12 = vector.extract_strided_slice %1 {offsets = [0, 0], sizes = [256, 1], strides = [1, 1]} : vector<256x8xi32> to vector<256x1xi32>
    %13 = vector.broadcast %12 : vector<256x1xi32> to vector<256x256xi32>
    %14 = vector.broadcast %11 : vector<1x256xi32> to vector<256x256xi32>
    %15 = arith.cmpi eq, %13, %14 : vector<256x256xi32>
    %cst = arith.constant 1.000000e+00 : f32
    %cst_16 = arith.constant 0.000000e+00 : f32
    %16 = vector.broadcast %cst : f32 to vector<256x256xf32>
    %17 = vector.broadcast %cst_16 : f32 to vector<256x256xf32>
    %18 = arith.select %15, %16, %17 : vector<256x256xi1>, vector<256x256xf32>
    %cst_17 = arith.constant dense<0.000000e+00> : vector<256x128xf32>
    %19 = tpu.matmul %18, %3, %cst_17 {dimension_numbers = #tpu.dot_dimension_numbers<[1], [0], [0], [1], [0, 0, 1, 1], [], []>} : vector<256x256xf32>, vector<256x128xf32>, vector<256x128xf32> -> vector<256x128xf32>
    %cst_18 = arith.constant dense<0.000000e+00> : vector<256x256xf32>
    %20 = tpu.matmul %18, %8, %cst_18 {dimension_numbers = #tpu.dot_dimension_numbers<[1], [0], [0], [1], [0, 0, 1, 1], [], []>} : vector<256x256xf32>, vector<256x256xf32>, vector<256x256xf32> -> vector<256x256xf32>
    %21 = arith.subf %19, %5 : vector<256x128xf32>
    %22 = arith.mulf %21, %21 : vector<256x128xf32>
    %cst_19 = arith.constant dense<0.000000e+00> : vector<256xf32>
    %23 = vector.multi_reduction <add>, %22, %cst_19 [1] : vector<256x128xf32> to vector<256xf32>
    %24 = vector.shape_cast %23 : vector<256xf32> to vector<256x1xf32>
    %cst_20 = arith.constant 1.000000e-24 : f32
    %25 = vector.broadcast %cst_20 : f32 to vector<256x1xf32>
    %26 = arith.maximumf %24, %25 : vector<256x1xf32>
    %27 = math.rsqrt %26 : vector<256x1xf32>
    %28 = vector.broadcast %27 : vector<256x1xf32> to vector<256x128xf32>
    %29 = arith.mulf %21, %28 : vector<256x128xf32>
    %cst_21 = arith.constant dense<0.000000e+00> : vector<256x256xf32>
    %30 = tpu.matmul %29, %6, %cst_21 {dimension_numbers = #tpu.dot_dimension_numbers<[1], [0], [0], [1], [0, 0, 1, 1], [], []>} : vector<256x128xf32>, vector<128x256xf32>, vector<256x256xf32> -> vector<256x256xf32>
    %cst_22 = arith.constant 0.000000e+00 : f32
    %31 = vector.broadcast %cst_22 : f32 to vector<256x256xf32>
    %32 = arith.maximumf %30, %31 : vector<256x256xf32>
    %33 = arith.mulf %32, %20 : vector<256x256xf32>
    %34 = vector.extract_strided_slice %1 {offsets = [0, 1], sizes = [256, 1], strides = [1, 1]} : vector<256x8xi32> to vector<256x1xi32>
    %35 = vector.broadcast %34 : vector<256x1xi32> to vector<256x256xi32>
    %36 = vector.broadcast %11 : vector<1x256xi32> to vector<256x256xi32>
    %37 = arith.cmpi eq, %35, %36 : vector<256x256xi32>
    %cst_23 = arith.constant 1.000000e+00 : f32
    %cst_24 = arith.constant 0.000000e+00 : f32
    %38 = vector.broadcast %cst_23 : f32 to vector<256x256xf32>
    %39 = vector.broadcast %cst_24 : f32 to vector<256x256xf32>
    %40 = arith.select %37, %38, %39 : vector<256x256xi1>, vector<256x256xf32>
    %cst_25 = arith.constant dense<0.000000e+00> : vector<256x128xf32>
    %41 = tpu.matmul %40, %3, %cst_25 {dimension_numbers = #tpu.dot_dimension_numbers<[1], [0], [0], [1], [0, 0, 1, 1], [], []>} : vector<256x256xf32>, vector<256x128xf32>, vector<256x128xf32> -> vector<256x128xf32>
    %cst_26 = arith.constant dense<0.000000e+00> : vector<256x256xf32>
    %42 = tpu.matmul %40, %8, %cst_26 {dimension_numbers = #tpu.dot_dimension_numbers<[1], [0], [0], [1], [0, 0, 1, 1], [], []>} : vector<256x256xf32>, vector<256x256xf32>, vector<256x256xf32> -> vector<256x256xf32>
    %43 = arith.subf %41, %5 : vector<256x128xf32>
    %44 = arith.mulf %43, %43 : vector<256x128xf32>
    %cst_27 = arith.constant dense<0.000000e+00> : vector<256xf32>
    %45 = vector.multi_reduction <add>, %44, %cst_27 [1] : vector<256x128xf32> to vector<256xf32>
    %46 = vector.shape_cast %45 : vector<256xf32> to vector<256x1xf32>
    %cst_28 = arith.constant 1.000000e-24 : f32
    %47 = vector.broadcast %cst_28 : f32 to vector<256x1xf32>
    %48 = arith.maximumf %46, %47 : vector<256x1xf32>
    %49 = math.rsqrt %48 : vector<256x1xf32>
    %50 = vector.broadcast %49 : vector<256x1xf32> to vector<256x128xf32>
    %51 = arith.mulf %43, %50 : vector<256x128xf32>
    %cst_29 = arith.constant dense<0.000000e+00> : vector<256x256xf32>
    %52 = tpu.matmul %51, %6, %cst_29 {dimension_numbers = #tpu.dot_dimension_numbers<[1], [0], [0], [1], [0, 0, 1, 1], [], []>} : vector<256x128xf32>, vector<128x256xf32>, vector<256x256xf32> -> vector<256x256xf32>
    %cst_30 = arith.constant 0.000000e+00 : f32
    %53 = vector.broadcast %cst_30 : f32 to vector<256x256xf32>
    %54 = arith.maximumf %52, %53 : vector<256x256xf32>
    %55 = arith.mulf %54, %42 : vector<256x256xf32>
    %56 = arith.maximumf %33, %55 : vector<256x256xf32>
    %57 = vector.extract_strided_slice %1 {offsets = [0, 2], sizes = [256, 1], strides = [1, 1]} : vector<256x8xi32> to vector<256x1xi32>
    %58 = vector.broadcast %57 : vector<256x1xi32> to vector<256x256xi32>
    %59 = vector.broadcast %11 : vector<1x256xi32> to vector<256x256xi32>
    %60 = arith.cmpi eq, %58, %59 : vector<256x256xi32>
    %cst_31 = arith.constant 1.000000e+00 : f32
    %cst_32 = arith.constant 0.000000e+00 : f32
    %61 = vector.broadcast %cst_31 : f32 to vector<256x256xf32>
    %62 = vector.broadcast %cst_32 : f32 to vector<256x256xf32>
    %63 = arith.select %60, %61, %62 : vector<256x256xi1>, vector<256x256xf32>
    %cst_33 = arith.constant dense<0.000000e+00> : vector<256x128xf32>
    %64 = tpu.matmul %63, %3, %cst_33 {dimension_numbers = #tpu.dot_dimension_numbers<[1], [0], [0], [1], [0, 0, 1, 1], [], []>} : vector<256x256xf32>, vector<256x128xf32>, vector<256x128xf32> -> vector<256x128xf32>
    %cst_34 = arith.constant dense<0.000000e+00> : vector<256x256xf32>
    %65 = tpu.matmul %63, %8, %cst_34 {dimension_numbers = #tpu.dot_dimension_numbers<[1], [0], [0], [1], [0, 0, 1, 1], [], []>} : vector<256x256xf32>, vector<256x256xf32>, vector<256x256xf32> -> vector<256x256xf32>
    %66 = arith.subf %64, %5 : vector<256x128xf32>
    %67 = arith.mulf %66, %66 : vector<256x128xf32>
    %cst_35 = arith.constant dense<0.000000e+00> : vector<256xf32>
    %68 = vector.multi_reduction <add>, %67, %cst_35 [1] : vector<256x128xf32> to vector<256xf32>
    %69 = vector.shape_cast %68 : vector<256xf32> to vector<256x1xf32>
    %cst_36 = arith.constant 1.000000e-24 : f32
    %70 = vector.broadcast %cst_36 : f32 to vector<256x1xf32>
    %71 = arith.maximumf %69, %70 : vector<256x1xf32>
    %72 = math.rsqrt %71 : vector<256x1xf32>
    %73 = vector.broadcast %72 : vector<256x1xf32> to vector<256x128xf32>
    %74 = arith.mulf %66, %73 : vector<256x128xf32>
    %cst_37 = arith.constant dense<0.000000e+00> : vector<256x256xf32>
    %75 = tpu.matmul %74, %6, %cst_37 {dimension_numbers = #tpu.dot_dimension_numbers<[1], [0], [0], [1], [0, 0, 1, 1], [], []>} : vector<256x128xf32>, vector<128x256xf32>, vector<256x256xf32> -> vector<256x256xf32>
    %cst_38 = arith.constant 0.000000e+00 : f32
    %76 = vector.broadcast %cst_38 : f32 to vector<256x256xf32>
    %77 = arith.maximumf %75, %76 : vector<256x256xf32>
    %78 = arith.mulf %77, %65 : vector<256x256xf32>
    %79 = arith.maximumf %56, %78 : vector<256x256xf32>
    %80 = vector.extract_strided_slice %1 {offsets = [0, 3], sizes = [256, 1], strides = [1, 1]} : vector<256x8xi32> to vector<256x1xi32>
    %81 = vector.broadcast %80 : vector<256x1xi32> to vector<256x256xi32>
    %82 = vector.broadcast %11 : vector<1x256xi32> to vector<256x256xi32>
    %83 = arith.cmpi eq, %81, %82 : vector<256x256xi32>
    %cst_39 = arith.constant 1.000000e+00 : f32
    %cst_40 = arith.constant 0.000000e+00 : f32
    %84 = vector.broadcast %cst_39 : f32 to vector<256x256xf32>
    %85 = vector.broadcast %cst_40 : f32 to vector<256x256xf32>
    %86 = arith.select %83, %84, %85 : vector<256x256xi1>, vector<256x256xf32>
    %cst_41 = arith.constant dense<0.000000e+00> : vector<256x128xf32>
    %87 = tpu.matmul %86, %3, %cst_41 {dimension_numbers = #tpu.dot_dimension_numbers<[1], [0], [0], [1], [0, 0, 1, 1], [], []>} : vector<256x256xf32>, vector<256x128xf32>, vector<256x128xf32> -> vector<256x128xf32>
    %cst_42 = arith.constant dense<0.000000e+00> : vector<256x256xf32>
    %88 = tpu.matmul %86, %8, %cst_42 {dimension_numbers = #tpu.dot_dimension_numbers<[1], [0], [0], [1], [0, 0, 1, 1], [], []>} : vector<256x256xf32>, vector<256x256xf32>, vector<256x256xf32> -> vector<256x256xf32>
    %89 = arith.subf %87, %5 : vector<256x128xf32>
    %90 = arith.mulf %89, %89 : vector<256x128xf32>
    %cst_43 = arith.constant dense<0.000000e+00> : vector<256xf32>
    %91 = vector.multi_reduction <add>, %90, %cst_43 [1] : vector<256x128xf32> to vector<256xf32>
    %92 = vector.shape_cast %91 : vector<256xf32> to vector<256x1xf32>
    %cst_44 = arith.constant 1.000000e-24 : f32
    %93 = vector.broadcast %cst_44 : f32 to vector<256x1xf32>
    %94 = arith.maximumf %92, %93 : vector<256x1xf32>
    %95 = math.rsqrt %94 : vector<256x1xf32>
    %96 = vector.broadcast %95 : vector<256x1xf32> to vector<256x128xf32>
    %97 = arith.mulf %89, %96 : vector<256x128xf32>
    %cst_45 = arith.constant dense<0.000000e+00> : vector<256x256xf32>
    %98 = tpu.matmul %97, %6, %cst_45 {dimension_numbers = #tpu.dot_dimension_numbers<[1], [0], [0], [1], [0, 0, 1, 1], [], []>} : vector<256x128xf32>, vector<128x256xf32>, vector<256x256xf32> -> vector<256x256xf32>
    %cst_46 = arith.constant 0.000000e+00 : f32
    %99 = vector.broadcast %cst_46 : f32 to vector<256x256xf32>
    %100 = arith.maximumf %98, %99 : vector<256x256xf32>
    %101 = arith.mulf %100, %88 : vector<256x256xf32>
    %102 = arith.maximumf %79, %101 : vector<256x256xf32>
    %103 = vector.extract_strided_slice %1 {offsets = [0, 4], sizes = [256, 1], strides = [1, 1]} : vector<256x8xi32> to vector<256x1xi32>
    %104 = vector.broadcast %103 : vector<256x1xi32> to vector<256x256xi32>
    %105 = vector.broadcast %11 : vector<1x256xi32> to vector<256x256xi32>
    %106 = arith.cmpi eq, %104, %105 : vector<256x256xi32>
    %cst_47 = arith.constant 1.000000e+00 : f32
    %cst_48 = arith.constant 0.000000e+00 : f32
    %107 = vector.broadcast %cst_47 : f32 to vector<256x256xf32>
    %108 = vector.broadcast %cst_48 : f32 to vector<256x256xf32>
    %109 = arith.select %106, %107, %108 : vector<256x256xi1>, vector<256x256xf32>
    %cst_49 = arith.constant dense<0.000000e+00> : vector<256x128xf32>
    %110 = tpu.matmul %109, %3, %cst_49 {dimension_numbers = #tpu.dot_dimension_numbers<[1], [0], [0], [1], [0, 0, 1, 1], [], []>} : vector<256x256xf32>, vector<256x128xf32>, vector<256x128xf32> -> vector<256x128xf32>
    %cst_50 = arith.constant dense<0.000000e+00> : vector<256x256xf32>
    %111 = tpu.matmul %109, %8, %cst_50 {dimension_numbers = #tpu.dot_dimension_numbers<[1], [0], [0], [1], [0, 0, 1, 1], [], []>} : vector<256x256xf32>, vector<256x256xf32>, vector<256x256xf32> -> vector<256x256xf32>
    %112 = arith.subf %110, %5 : vector<256x128xf32>
    %113 = arith.mulf %112, %112 : vector<256x128xf32>
    %cst_51 = arith.constant dense<0.000000e+00> : vector<256xf32>
    %114 = vector.multi_reduction <add>, %113, %cst_51 [1] : vector<256x128xf32> to vector<256xf32>
    %115 = vector.shape_cast %114 : vector<256xf32> to vector<256x1xf32>
    %cst_52 = arith.constant 1.000000e-24 : f32
    %116 = vector.broadcast %cst_52 : f32 to vector<256x1xf32>
    %117 = arith.maximumf %115, %116 : vector<256x1xf32>
    %118 = math.rsqrt %117 : vector<256x1xf32>
    %119 = vector.broadcast %118 : vector<256x1xf32> to vector<256x128xf32>
    %120 = arith.mulf %112, %119 : vector<256x128xf32>
    %cst_53 = arith.constant dense<0.000000e+00> : vector<256x256xf32>
    %121 = tpu.matmul %120, %6, %cst_53 {dimension_numbers = #tpu.dot_dimension_numbers<[1], [0], [0], [1], [0, 0, 1, 1], [], []>} : vector<256x128xf32>, vector<128x256xf32>, vector<256x256xf32> -> vector<256x256xf32>
    %cst_54 = arith.constant 0.000000e+00 : f32
    %122 = vector.broadcast %cst_54 : f32 to vector<256x256xf32>
    %123 = arith.maximumf %121, %122 : vector<256x256xf32>
    %124 = arith.mulf %123, %111 : vector<256x256xf32>
    %125 = arith.maximumf %102, %124 : vector<256x256xf32>
    %126 = vector.extract_strided_slice %1 {offsets = [0, 5], sizes = [256, 1], strides = [1, 1]} : vector<256x8xi32> to vector<256x1xi32>
    %127 = vector.broadcast %126 : vector<256x1xi32> to vector<256x256xi32>
    %128 = vector.broadcast %11 : vector<1x256xi32> to vector<256x256xi32>
    %129 = arith.cmpi eq, %127, %128 : vector<256x256xi32>
    %cst_55 = arith.constant 1.000000e+00 : f32
    %cst_56 = arith.constant 0.000000e+00 : f32
    %130 = vector.broadcast %cst_55 : f32 to vector<256x256xf32>
    %131 = vector.broadcast %cst_56 : f32 to vector<256x256xf32>
    %132 = arith.select %129, %130, %131 : vector<256x256xi1>, vector<256x256xf32>
    %cst_57 = arith.constant dense<0.000000e+00> : vector<256x128xf32>
    %133 = tpu.matmul %132, %3, %cst_57 {dimension_numbers = #tpu.dot_dimension_numbers<[1], [0], [0], [1], [0, 0, 1, 1], [], []>} : vector<256x256xf32>, vector<256x128xf32>, vector<256x128xf32> -> vector<256x128xf32>
    %cst_58 = arith.constant dense<0.000000e+00> : vector<256x256xf32>
    %134 = tpu.matmul %132, %8, %cst_58 {dimension_numbers = #tpu.dot_dimension_numbers<[1], [0], [0], [1], [0, 0, 1, 1], [], []>} : vector<256x256xf32>, vector<256x256xf32>, vector<256x256xf32> -> vector<256x256xf32>
    %135 = arith.subf %133, %5 : vector<256x128xf32>
    %136 = arith.mulf %135, %135 : vector<256x128xf32>
    %cst_59 = arith.constant dense<0.000000e+00> : vector<256xf32>
    %137 = vector.multi_reduction <add>, %136, %cst_59 [1] : vector<256x128xf32> to vector<256xf32>
    %138 = vector.shape_cast %137 : vector<256xf32> to vector<256x1xf32>
    %cst_60 = arith.constant 1.000000e-24 : f32
    %139 = vector.broadcast %cst_60 : f32 to vector<256x1xf32>
    %140 = arith.maximumf %138, %139 : vector<256x1xf32>
    %141 = math.rsqrt %140 : vector<256x1xf32>
    %142 = vector.broadcast %141 : vector<256x1xf32> to vector<256x128xf32>
    %143 = arith.mulf %135, %142 : vector<256x128xf32>
    %cst_61 = arith.constant dense<0.000000e+00> : vector<256x256xf32>
    %144 = tpu.matmul %143, %6, %cst_61 {dimension_numbers = #tpu.dot_dimension_numbers<[1], [0], [0], [1], [0, 0, 1, 1], [], []>} : vector<256x128xf32>, vector<128x256xf32>, vector<256x256xf32> -> vector<256x256xf32>
    %cst_62 = arith.constant 0.000000e+00 : f32
    %145 = vector.broadcast %cst_62 : f32 to vector<256x256xf32>
    %146 = arith.maximumf %144, %145 : vector<256x256xf32>
    %147 = arith.mulf %146, %134 : vector<256x256xf32>
    %148 = arith.maximumf %125, %147 : vector<256x256xf32>
    %149 = vector.extract_strided_slice %1 {offsets = [0, 6], sizes = [256, 1], strides = [1, 1]} : vector<256x8xi32> to vector<256x1xi32>
    %150 = vector.broadcast %149 : vector<256x1xi32> to vector<256x256xi32>
    %151 = vector.broadcast %11 : vector<1x256xi32> to vector<256x256xi32>
    %152 = arith.cmpi eq, %150, %151 : vector<256x256xi32>
    %cst_63 = arith.constant 1.000000e+00 : f32
    %cst_64 = arith.constant 0.000000e+00 : f32
    %153 = vector.broadcast %cst_63 : f32 to vector<256x256xf32>
    %154 = vector.broadcast %cst_64 : f32 to vector<256x256xf32>
    %155 = arith.select %152, %153, %154 : vector<256x256xi1>, vector<256x256xf32>
    %cst_65 = arith.constant dense<0.000000e+00> : vector<256x128xf32>
    %156 = tpu.matmul %155, %3, %cst_65 {dimension_numbers = #tpu.dot_dimension_numbers<[1], [0], [0], [1], [0, 0, 1, 1], [], []>} : vector<256x256xf32>, vector<256x128xf32>, vector<256x128xf32> -> vector<256x128xf32>
    %cst_66 = arith.constant dense<0.000000e+00> : vector<256x256xf32>
    %157 = tpu.matmul %155, %8, %cst_66 {dimension_numbers = #tpu.dot_dimension_numbers<[1], [0], [0], [1], [0, 0, 1, 1], [], []>} : vector<256x256xf32>, vector<256x256xf32>, vector<256x256xf32> -> vector<256x256xf32>
    %158 = arith.subf %156, %5 : vector<256x128xf32>
    %159 = arith.mulf %158, %158 : vector<256x128xf32>
    %cst_67 = arith.constant dense<0.000000e+00> : vector<256xf32>
    %160 = vector.multi_reduction <add>, %159, %cst_67 [1] : vector<256x128xf32> to vector<256xf32>
    %161 = vector.shape_cast %160 : vector<256xf32> to vector<256x1xf32>
    %cst_68 = arith.constant 1.000000e-24 : f32
    %162 = vector.broadcast %cst_68 : f32 to vector<256x1xf32>
    %163 = arith.maximumf %161, %162 : vector<256x1xf32>
    %164 = math.rsqrt %163 : vector<256x1xf32>
    %165 = vector.broadcast %164 : vector<256x1xf32> to vector<256x128xf32>
    %166 = arith.mulf %158, %165 : vector<256x128xf32>
    %cst_69 = arith.constant dense<0.000000e+00> : vector<256x256xf32>
    %167 = tpu.matmul %166, %6, %cst_69 {dimension_numbers = #tpu.dot_dimension_numbers<[1], [0], [0], [1], [0, 0, 1, 1], [], []>} : vector<256x128xf32>, vector<128x256xf32>, vector<256x256xf32> -> vector<256x256xf32>
    %cst_70 = arith.constant 0.000000e+00 : f32
    %168 = vector.broadcast %cst_70 : f32 to vector<256x256xf32>
    %169 = arith.maximumf %167, %168 : vector<256x256xf32>
    %170 = arith.mulf %169, %157 : vector<256x256xf32>
    %171 = arith.maximumf %148, %170 : vector<256x256xf32>
    %172 = vector.extract_strided_slice %1 {offsets = [0, 7], sizes = [256, 1], strides = [1, 1]} : vector<256x8xi32> to vector<256x1xi32>
    %173 = vector.broadcast %172 : vector<256x1xi32> to vector<256x256xi32>
    %174 = vector.broadcast %11 : vector<1x256xi32> to vector<256x256xi32>
    %175 = arith.cmpi eq, %173, %174 : vector<256x256xi32>
    %cst_71 = arith.constant 1.000000e+00 : f32
    %cst_72 = arith.constant 0.000000e+00 : f32
    %176 = vector.broadcast %cst_71 : f32 to vector<256x256xf32>
    %177 = vector.broadcast %cst_72 : f32 to vector<256x256xf32>
    %178 = arith.select %175, %176, %177 : vector<256x256xi1>, vector<256x256xf32>
    %cst_73 = arith.constant dense<0.000000e+00> : vector<256x128xf32>
    %179 = tpu.matmul %178, %3, %cst_73 {dimension_numbers = #tpu.dot_dimension_numbers<[1], [0], [0], [1], [0, 0, 1, 1], [], []>} : vector<256x256xf32>, vector<256x128xf32>, vector<256x128xf32> -> vector<256x128xf32>
    %cst_74 = arith.constant dense<0.000000e+00> : vector<256x256xf32>
    %180 = tpu.matmul %178, %8, %cst_74 {dimension_numbers = #tpu.dot_dimension_numbers<[1], [0], [0], [1], [0, 0, 1, 1], [], []>} : vector<256x256xf32>, vector<256x256xf32>, vector<256x256xf32> -> vector<256x256xf32>
    %181 = arith.subf %179, %5 : vector<256x128xf32>
    %182 = arith.mulf %181, %181 : vector<256x128xf32>
    %cst_75 = arith.constant dense<0.000000e+00> : vector<256xf32>
    %183 = vector.multi_reduction <add>, %182, %cst_75 [1] : vector<256x128xf32> to vector<256xf32>
    %184 = vector.shape_cast %183 : vector<256xf32> to vector<256x1xf32>
    %cst_76 = arith.constant 1.000000e-24 : f32
    %185 = vector.broadcast %cst_76 : f32 to vector<256x1xf32>
    %186 = arith.maximumf %184, %185 : vector<256x1xf32>
    %187 = math.rsqrt %186 : vector<256x1xf32>
    %188 = vector.broadcast %187 : vector<256x1xf32> to vector<256x128xf32>
    %189 = arith.mulf %181, %188 : vector<256x128xf32>
    %cst_77 = arith.constant dense<0.000000e+00> : vector<256x256xf32>
    %190 = tpu.matmul %189, %6, %cst_77 {dimension_numbers = #tpu.dot_dimension_numbers<[1], [0], [0], [1], [0, 0, 1, 1], [], []>} : vector<256x128xf32>, vector<128x256xf32>, vector<256x256xf32> -> vector<256x256xf32>
    %cst_78 = arith.constant 0.000000e+00 : f32
    %191 = vector.broadcast %cst_78 : f32 to vector<256x256xf32>
    %192 = arith.maximumf %190, %191 : vector<256x256xf32>
    %193 = arith.mulf %192, %180 : vector<256x256xf32>
    %194 = arith.maximumf %171, %193 : vector<256x256xf32>
    %195 = vector.extract_strided_slice %194 {offsets = [0, 0], sizes = [256, 128], strides = [1, 1]} : vector<256x256xf32> to vector<256x128xf32>
    %196 = vector.extract_strided_slice %194 {offsets = [0, 128], sizes = [256, 128], strides = [1, 1]} : vector<256x256xf32> to vector<256x128xf32>
    %197 = arith.addf %195, %196 : vector<256x128xf32>
    %198 = arith.addf %10, %197 : vector<256x128xf32>
    %c0_79 = arith.constant 0 : index
    %c0_80 = arith.constant 0 : index
    %c0_81 = arith.constant 0 : index
    %199 = vector.load %arg8[%c0_79, %c0_80, %c0_81] : memref<1x256x128xf32, #tpu.memory_space<vmem>>, vector<1x256x128xf32>
    %200 = vector.shape_cast %199 : vector<1x256x128xf32> to vector<256x128xf32>
    %201 = vector.shape_cast %198 : vector<256x128xf32> to vector<1x256x128xf32>
    tpu.vector_store %arg8[%c0_79, %c0_80, %c0_81], %201 {strides = array<i32>} : memref<1x256x128xf32, #tpu.memory_space<vmem>>, vector<1x256x128xf32>,
    return
  }
  func.func @transform_0(%arg0: i32, %arg1: i32) -> (i32, i32, i32) {
    %c0_i32 = arith.constant 0 : i32
    %c0_i32_0 = arith.constant 0 : i32
    return %arg0, %arg1, %c0_i32 : i32, i32, i32
  }
  func.func @transform_1(%arg0: i32, %arg1: i32) -> (i32, i32, i32) {
    %c0_i32 = arith.constant 0 : i32
    %c0_i32_0 = arith.constant 0 : i32
    %c0_i32_1 = arith.constant 0 : i32
    return %arg0, %c0_i32, %c0_i32_0 : i32, i32, i32
  }
  func.func @transform_2(%arg0: i32, %arg1: i32) -> (i32, i32, i32) {
    %c0_i32 = arith.constant 0 : i32
    %c0_i32_0 = arith.constant 0 : i32
    return %arg0, %arg1, %c0_i32 : i32, i32, i32
  }
  func.func @transform_3(%arg0: i32, %arg1: i32) -> (i32, i32) {
    %c0_i32 = arith.constant 0 : i32
    %c0_i32_0 = arith.constant 0 : i32
    %c0_i32_1 = arith.constant 0 : i32
    return %c0_i32, %c0_i32_0 : i32, i32
  }
  func.func @transform_4(%arg0: i32, %arg1: i32) -> (i32, i32, i32) {
    %c0_i32 = arith.constant 0 : i32
    %c0_i32_0 = arith.constant 0 : i32
    %c0_i32_1 = arith.constant 0 : i32
    return %arg0, %c0_i32, %c0_i32_0 : i32, i32, i32
  }
  func.func @transform_5(%arg0: i32, %arg1: i32) -> (i32, i32, i32) {
    %c0_i32 = arith.constant 0 : i32
    %c0_i32_0 = arith.constant 0 : i32
    return %arg0, %arg1, %c0_i32 : i32, i32, i32
  }
  func.func @transform_6(%arg0: i32, %arg1: i32) -> (i32, i32, i32) {
    %c0_i32 = arith.constant 0 : i32
    %c0_i32_0 = arith.constant 0 : i32
    return %arg0, %arg1, %c0_i32 : i32, i32, i32
  }
}

module attributes {stable_mosaic.version = 11 : i64} {
  func.func @_pool_kernel(%arg0: i32, %arg1: i32, %arg2: memref<1x256x4xi32, #tpu.memory_space<vmem>>, %arg3: memref<1x256x128xf32, #tpu.memory_space<vmem>>, %arg4: memref<1x256x128xf32, #tpu.memory_space<vmem>>) attributes {dimension_semantics = [#tpu.dimension_semantics<parallel>, #tpu.dimension_semantics<parallel>], iteration_bounds = array<i64: 2, 1>, scalar_prefetch = 0 : i64, scratch_operands = 0 : i64, tpu.core_type = #tpu.core_type<tc>, window_params = [{transform_indices = @transform_0, window_bounds = array<i64: 1, 256, 4>}, {transform_indices = @transform_1, window_bounds = array<i64: 1, 256, 128>}, {transform_indices = @transform_2, window_bounds = array<i64: 1, 256, 128>}]} {
    %c0 = arith.constant 0 : index
    %c0_0 = arith.constant 0 : index
    %c0_1 = arith.constant 0 : index
    %0 = vector.load %arg2[%c0, %c0_0, %c0_1] : memref<1x256x4xi32, #tpu.memory_space<vmem>>, vector<1x256x4xi32>
    %1 = vector.shape_cast %0 : vector<1x256x4xi32> to vector<256x4xi32>
    %c0_2 = arith.constant 0 : index
    %c0_3 = arith.constant 0 : index
    %c0_4 = arith.constant 0 : index
    %2 = vector.load %arg3[%c0_2, %c0_3, %c0_4] : memref<1x256x128xf32, #tpu.memory_space<vmem>>, vector<1x256x128xf32>
    %3 = vector.shape_cast %2 : vector<1x256x128xf32> to vector<256x128xf32>
    %4 = tpu.iota {dimensions = array<i32: 1>} : vector<1x256xi32>
    %5 = vector.extract_strided_slice %1 {offsets = [0, 0], sizes = [256, 1], strides = [1, 1]} : vector<256x4xi32> to vector<256x1xi32>
    %6 = vector.broadcast %5 : vector<256x1xi32> to vector<256x256xi32>
    %7 = vector.broadcast %4 : vector<1x256xi32> to vector<256x256xi32>
    %8 = arith.cmpi eq, %6, %7 : vector<256x256xi32>
    %cst = arith.constant 1.000000e+00 : f32
    %cst_5 = arith.constant 0.000000e+00 : f32
    %9 = vector.broadcast %cst : f32 to vector<256x256xf32>
    %10 = vector.broadcast %cst_5 : f32 to vector<256x256xf32>
    %11 = arith.select %8, %9, %10 : vector<256x256xi1>, vector<256x256xf32>
    %cst_6 = arith.constant dense<0.000000e+00> : vector<256x128xf32>
    %12 = tpu.matmul %11, %3, %cst_6 {dimension_numbers = #tpu.dot_dimension_numbers<[1], [0], [0], [1], [0, 0, 1, 1], [], []>} : vector<256x256xf32>, vector<256x128xf32>, vector<256x128xf32> -> vector<256x128xf32>
    %13 = vector.extract_strided_slice %1 {offsets = [0, 1], sizes = [256, 1], strides = [1, 1]} : vector<256x4xi32> to vector<256x1xi32>
    %14 = vector.broadcast %13 : vector<256x1xi32> to vector<256x256xi32>
    %15 = vector.broadcast %4 : vector<1x256xi32> to vector<256x256xi32>
    %16 = arith.cmpi eq, %14, %15 : vector<256x256xi32>
    %cst_7 = arith.constant 1.000000e+00 : f32
    %cst_8 = arith.constant 0.000000e+00 : f32
    %17 = vector.broadcast %cst_7 : f32 to vector<256x256xf32>
    %18 = vector.broadcast %cst_8 : f32 to vector<256x256xf32>
    %19 = arith.select %16, %17, %18 : vector<256x256xi1>, vector<256x256xf32>
    %cst_9 = arith.constant dense<0.000000e+00> : vector<256x128xf32>
    %20 = tpu.matmul %19, %3, %cst_9 {dimension_numbers = #tpu.dot_dimension_numbers<[1], [0], [0], [1], [0, 0, 1, 1], [], []>} : vector<256x256xf32>, vector<256x128xf32>, vector<256x128xf32> -> vector<256x128xf32>
    %21 = arith.maximumf %12, %20 : vector<256x128xf32>
    %22 = vector.extract_strided_slice %1 {offsets = [0, 2], sizes = [256, 1], strides = [1, 1]} : vector<256x4xi32> to vector<256x1xi32>
    %23 = vector.broadcast %22 : vector<256x1xi32> to vector<256x256xi32>
    %24 = vector.broadcast %4 : vector<1x256xi32> to vector<256x256xi32>
    %25 = arith.cmpi eq, %23, %24 : vector<256x256xi32>
    %cst_10 = arith.constant 1.000000e+00 : f32
    %cst_11 = arith.constant 0.000000e+00 : f32
    %26 = vector.broadcast %cst_10 : f32 to vector<256x256xf32>
    %27 = vector.broadcast %cst_11 : f32 to vector<256x256xf32>
    %28 = arith.select %25, %26, %27 : vector<256x256xi1>, vector<256x256xf32>
    %cst_12 = arith.constant dense<0.000000e+00> : vector<256x128xf32>
    %29 = tpu.matmul %28, %3, %cst_12 {dimension_numbers = #tpu.dot_dimension_numbers<[1], [0], [0], [1], [0, 0, 1, 1], [], []>} : vector<256x256xf32>, vector<256x128xf32>, vector<256x128xf32> -> vector<256x128xf32>
    %30 = arith.maximumf %21, %29 : vector<256x128xf32>
    %31 = vector.extract_strided_slice %1 {offsets = [0, 3], sizes = [256, 1], strides = [1, 1]} : vector<256x4xi32> to vector<256x1xi32>
    %32 = vector.broadcast %31 : vector<256x1xi32> to vector<256x256xi32>
    %33 = vector.broadcast %4 : vector<1x256xi32> to vector<256x256xi32>
    %34 = arith.cmpi eq, %32, %33 : vector<256x256xi32>
    %cst_13 = arith.constant 1.000000e+00 : f32
    %cst_14 = arith.constant 0.000000e+00 : f32
    %35 = vector.broadcast %cst_13 : f32 to vector<256x256xf32>
    %36 = vector.broadcast %cst_14 : f32 to vector<256x256xf32>
    %37 = arith.select %34, %35, %36 : vector<256x256xi1>, vector<256x256xf32>
    %cst_15 = arith.constant dense<0.000000e+00> : vector<256x128xf32>
    %38 = tpu.matmul %37, %3, %cst_15 {dimension_numbers = #tpu.dot_dimension_numbers<[1], [0], [0], [1], [0, 0, 1, 1], [], []>} : vector<256x256xf32>, vector<256x128xf32>, vector<256x128xf32> -> vector<256x128xf32>
    %39 = arith.maximumf %30, %38 : vector<256x128xf32>
    %c0_16 = arith.constant 0 : index
    %c0_17 = arith.constant 0 : index
    %c0_18 = arith.constant 0 : index
    %40 = vector.load %arg4[%c0_16, %c0_17, %c0_18] : memref<1x256x128xf32, #tpu.memory_space<vmem>>, vector<1x256x128xf32>
    %41 = vector.shape_cast %40 : vector<1x256x128xf32> to vector<256x128xf32>
    %42 = vector.shape_cast %39 : vector<256x128xf32> to vector<1x256x128xf32>
    tpu.vector_store %arg4[%c0_16, %c0_17, %c0_18], %42 {strides = array<i32>} : memref<1x256x128xf32, #tpu.memory_space<vmem>>, vector<1x256x128xf32>,
    return
  }
  func.func @transform_0(%arg0: i32, %arg1: i32) -> (i32, i32, i32) {
    %c0_i32 = arith.constant 0 : i32
    %c0_i32_0 = arith.constant 0 : i32
    return %arg0, %arg1, %c0_i32 : i32, i32, i32
  }
  func.func @transform_1(%arg0: i32, %arg1: i32) -> (i32, i32, i32) {
    %c0_i32 = arith.constant 0 : i32
    %c0_i32_0 = arith.constant 0 : i32
    %c0_i32_1 = arith.constant 0 : i32
    return %arg0, %c0_i32, %c0_i32_0 : i32, i32, i32
  }
  func.func @transform_2(%arg0: i32, %arg1: i32) -> (i32, i32, i32) {
    %c0_i32 = arith.constant 0 : i32
    %c0_i32_0 = arith.constant 0 : i32
    return %arg0, %arg1, %c0_i32 : i32, i32, i32
  }
}

module attributes {stable_mosaic.version = 11 : i64} {
  func.func @_linear_kernel(%arg0: i32, %arg1: memref<64x128xbf16, #tpu.memory_space<vmem>>, %arg2: memref<128x384xbf16, #tpu.memory_space<vmem>>, %arg3: memref<1x384xf32, #tpu.memory_space<vmem>>, %arg4: memref<64x384xf32, #tpu.memory_space<vmem>>) attributes {dimension_semantics = [#tpu.dimension_semantics<parallel>], iteration_bounds = array<i64: 2>, scalar_prefetch = 0 : i64, scratch_operands = 0 : i64, tpu.core_type = #tpu.core_type<tc>, window_params = [{transform_indices = @transform_0, window_bounds = array<i64: 64, 128>}, {pipeline_mode = #tpu.pipeline_mode<synchronous>, transform_indices = @transform_1, window_bounds = array<i64: 128, 384>}, {pipeline_mode = #tpu.pipeline_mode<synchronous>, transform_indices = @transform_2, window_bounds = array<i64: 1, 384>}, {transform_indices = @transform_3, window_bounds = array<i64: 64, 384>}]} {
    %c0 = arith.constant 0 : index
    %c0_0 = arith.constant 0 : index
    %0 = vector.load %arg1[%c0, %c0_0] : memref<64x128xbf16, #tpu.memory_space<vmem>>, vector<64x128xbf16>
    %c0_1 = arith.constant 0 : index
    %c0_2 = arith.constant 0 : index
    %1 = vector.load %arg2[%c0_1, %c0_2] : memref<128x384xbf16, #tpu.memory_space<vmem>>, vector<128x384xbf16>
    %cst = arith.constant dense<0.000000e+00> : vector<64x384xf32>
    %2 = tpu.matmul %0, %1, %cst {dimension_numbers = #tpu.dot_dimension_numbers<[1], [0], [0], [1], [0, 0, 1, 1], [], []>} : vector<64x128xbf16>, vector<128x384xbf16>, vector<64x384xf32> -> vector<64x384xf32>
    %c0_3 = arith.constant 0 : index
    %c0_4 = arith.constant 0 : index
    %3 = vector.load %arg3[%c0_3, %c0_4] : memref<1x384xf32, #tpu.memory_space<vmem>>, vector<1x384xf32>
    %4 = vector.broadcast %3 : vector<1x384xf32> to vector<64x384xf32>
    %5 = arith.addf %2, %4 : vector<64x384xf32>
    %c0_5 = arith.constant 0 : index
    %c0_6 = arith.constant 0 : index
    %6 = vector.load %arg4[%c0_5, %c0_6] : memref<64x384xf32, #tpu.memory_space<vmem>>, vector<64x384xf32>
    tpu.vector_store %arg4[%c0_5, %c0_6], %5 {strides = array<i32>} : memref<64x384xf32, #tpu.memory_space<vmem>>, vector<64x384xf32>,
    return
  }
  func.func @transform_0(%arg0: i32) -> (i32, i32) {
    %c0_i32 = arith.constant 0 : i32
    %c0_i32_0 = arith.constant 0 : i32
    return %arg0, %c0_i32 : i32, i32
  }
  func.func @transform_1(%arg0: i32) -> (i32, i32) {
    %c0_i32 = arith.constant 0 : i32
    %c0_i32_0 = arith.constant 0 : i32
    %c0_i32_1 = arith.constant 0 : i32
    return %c0_i32, %c0_i32_0 : i32, i32
  }
  func.func @transform_2(%arg0: i32) -> (i32, i32) {
    %c0_i32 = arith.constant 0 : i32
    %c0_i32_0 = arith.constant 0 : i32
    %c0_i32_1 = arith.constant 0 : i32
    return %c0_i32, %c0_i32_0 : i32, i32
  }
  func.func @transform_3(%arg0: i32) -> (i32, i32) {
    %c0_i32 = arith.constant 0 : i32
    %c0_i32_0 = arith.constant 0 : i32
    return %arg0, %c0_i32 : i32, i32
  }
}

module attributes {stable_mosaic.version = 11 : i64} {
  func.func @_sqdist_kernel(%arg0: i32, %arg1: i32, %arg2: i32, %arg3: memref<1x64x128xf32, #tpu.memory_space<vmem>>, %arg4: memref<1x128x64xf32, #tpu.memory_space<vmem>>, %arg5: memref<1x64x64xf32, #tpu.memory_space<vmem>>) attributes {dimension_semantics = [#tpu.dimension_semantics<parallel>, #tpu.dimension_semantics<parallel>, #tpu.dimension_semantics<parallel>], iteration_bounds = array<i64: 2, 1, 1>, scalar_prefetch = 0 : i64, scratch_operands = 0 : i64, tpu.core_type = #tpu.core_type<tc>, window_params = [{transform_indices = @transform_0, window_bounds = array<i64: 1, 64, 128>}, {transform_indices = @transform_1, window_bounds = array<i64: 1, 128, 64>}, {transform_indices = @transform_2, window_bounds = array<i64: 1, 64, 64>}]} {
    %c0 = arith.constant 0 : index
    %c0_0 = arith.constant 0 : index
    %c0_1 = arith.constant 0 : index
    %0 = vector.load %arg3[%c0, %c0_0, %c0_1] : memref<1x64x128xf32, #tpu.memory_space<vmem>>, vector<1x64x128xf32>
    %1 = vector.shape_cast %0 : vector<1x64x128xf32> to vector<64x128xf32>
    %c0_2 = arith.constant 0 : index
    %c0_3 = arith.constant 0 : index
    %c0_4 = arith.constant 0 : index
    %2 = vector.load %arg4[%c0_2, %c0_3, %c0_4] : memref<1x128x64xf32, #tpu.memory_space<vmem>>, vector<1x128x64xf32>
    %3 = vector.shape_cast %2 : vector<1x128x64xf32> to vector<128x64xf32>
    %4 = arith.mulf %1, %1 : vector<64x128xf32>
    %cst = arith.constant dense<0.000000e+00> : vector<64xf32>
    %5 = vector.multi_reduction <add>, %4, %cst [1] : vector<64x128xf32> to vector<64xf32>
    %6 = vector.shape_cast %5 : vector<64xf32> to vector<64x1xf32>
    %7 = arith.mulf %3, %3 : vector<128x64xf32>
    %cst_5 = arith.constant dense<0.000000e+00> : vector<64xf32>
    %8 = vector.multi_reduction <add>, %7, %cst_5 [0] : vector<128x64xf32> to vector<64xf32>
    %9 = vector.shape_cast %8 : vector<64xf32> to vector<1x64xf32>
    %cst_6 = arith.constant dense<0.000000e+00> : vector<64x64xf32>
    %10 = tpu.matmul %1, %3, %cst_6 {dimension_numbers = #tpu.dot_dimension_numbers<[1], [0], [0], [1], [0, 0, 1, 1], [], []>} : vector<64x128xf32>, vector<128x64xf32>, vector<64x64xf32> -> vector<64x64xf32>
    %11 = vector.broadcast %6 : vector<64x1xf32> to vector<64x64xf32>
    %12 = vector.broadcast %9 : vector<1x64xf32> to vector<64x64xf32>
    %13 = arith.addf %11, %12 : vector<64x64xf32>
    %cst_7 = arith.constant 2.000000e+00 : f32
    %14 = vector.broadcast %cst_7 : f32 to vector<64x64xf32>
    %15 = arith.mulf %14, %10 : vector<64x64xf32>
    %16 = arith.subf %13, %15 : vector<64x64xf32>
    %c0_8 = arith.constant 0 : index
    %c0_9 = arith.constant 0 : index
    %c0_10 = arith.constant 0 : index
    %17 = vector.load %arg5[%c0_8, %c0_9, %c0_10] : memref<1x64x64xf32, #tpu.memory_space<vmem>>, vector<1x64x64xf32>
    %18 = vector.shape_cast %17 : vector<1x64x64xf32> to vector<64x64xf32>
    %19 = vector.shape_cast %16 : vector<64x64xf32> to vector<1x64x64xf32>
    tpu.vector_store %arg5[%c0_8, %c0_9, %c0_10], %19 {strides = array<i32>} : memref<1x64x64xf32, #tpu.memory_space<vmem>>, vector<1x64x64xf32>,
    return
  }
  func.func @transform_0(%arg0: i32, %arg1: i32, %arg2: i32) -> (i32, i32, i32) {
    %c0_i32 = arith.constant 0 : i32
    %c0_i32_0 = arith.constant 0 : i32
    return %arg0, %arg1, %c0_i32 : i32, i32, i32
  }
  func.func @transform_1(%arg0: i32, %arg1: i32, %arg2: i32) -> (i32, i32, i32) {
    %c0_i32 = arith.constant 0 : i32
    %c0_i32_0 = arith.constant 0 : i32
    return %arg0, %c0_i32, %arg2 : i32, i32, i32
  }
  func.func @transform_2(%arg0: i32, %arg1: i32, %arg2: i32) -> (i32, i32, i32) {
    %c0_i32 = arith.constant 0 : i32
    return %arg0, %arg1, %arg2 : i32, i32, i32
  }
}

module attributes {stable_mosaic.version = 11 : i64} {
  func.func @_conv_layer_kernel(%arg0: i32, %arg1: i32, %arg2: memref<1x64x8xi32, #tpu.memory_space<vmem>>, %arg3: memref<1x64x128xf32, #tpu.memory_space<vmem>>, %arg4: memref<1x64x128xf32, #tpu.memory_space<vmem>>, %arg5: memref<128x256xf32, #tpu.memory_space<vmem>>, %arg6: memref<1x64x256xf32, #tpu.memory_space<vmem>>, %arg7: memref<1x64x128xf32, #tpu.memory_space<vmem>>, %arg8: memref<1x64x128xf32, #tpu.memory_space<vmem>>) attributes {dimension_semantics = [#tpu.dimension_semantics<parallel>, #tpu.dimension_semantics<parallel>], iteration_bounds = array<i64: 2, 1>, scalar_prefetch = 0 : i64, scratch_operands = 0 : i64, tpu.core_type = #tpu.core_type<tc>, window_params = [{transform_indices = @transform_0, window_bounds = array<i64: 1, 64, 8>}, {transform_indices = @transform_1, window_bounds = array<i64: 1, 64, 128>}, {transform_indices = @transform_2, window_bounds = array<i64: 1, 64, 128>}, {pipeline_mode = #tpu.pipeline_mode<synchronous>, transform_indices = @transform_3, window_bounds = array<i64: 128, 256>}, {transform_indices = @transform_4, window_bounds = array<i64: 1, 64, 256>}, {transform_indices = @transform_5, window_bounds = array<i64: 1, 64, 128>}, {transform_indices = @transform_6, window_bounds = array<i64: 1, 64, 128>}]} {
    %c0 = arith.constant 0 : index
    %c0_0 = arith.constant 0 : index
    %c0_1 = arith.constant 0 : index
    %0 = vector.load %arg2[%c0, %c0_0, %c0_1] : memref<1x64x8xi32, #tpu.memory_space<vmem>>, vector<1x64x8xi32>
    %1 = vector.shape_cast %0 : vector<1x64x8xi32> to vector<64x8xi32>
    %c0_2 = arith.constant 0 : index
    %c0_3 = arith.constant 0 : index
    %c0_4 = arith.constant 0 : index
    %2 = vector.load %arg3[%c0_2, %c0_3, %c0_4] : memref<1x64x128xf32, #tpu.memory_space<vmem>>, vector<1x64x128xf32>
    %3 = vector.shape_cast %2 : vector<1x64x128xf32> to vector<64x128xf32>
    %c0_5 = arith.constant 0 : index
    %c0_6 = arith.constant 0 : index
    %c0_7 = arith.constant 0 : index
    %4 = vector.load %arg4[%c0_5, %c0_6, %c0_7] : memref<1x64x128xf32, #tpu.memory_space<vmem>>, vector<1x64x128xf32>
    %5 = vector.shape_cast %4 : vector<1x64x128xf32> to vector<64x128xf32>
    %c0_8 = arith.constant 0 : index
    %c0_9 = arith.constant 0 : index
    %6 = vector.load %arg5[%c0_8, %c0_9] : memref<128x256xf32, #tpu.memory_space<vmem>>, vector<128x256xf32>
    %c0_10 = arith.constant 0 : index
    %c0_11 = arith.constant 0 : index
    %c0_12 = arith.constant 0 : index
    %7 = vector.load %arg6[%c0_10, %c0_11, %c0_12] : memref<1x64x256xf32, #tpu.memory_space<vmem>>, vector<1x64x256xf32>
    %8 = vector.shape_cast %7 : vector<1x64x256xf32> to vector<64x256xf32>
    %c0_13 = arith.constant 0 : index
    %c0_14 = arith.constant 0 : index
    %c0_15 = arith.constant 0 : index
    %9 = vector.load %arg7[%c0_13, %c0_14, %c0_15] : memref<1x64x128xf32, #tpu.memory_space<vmem>>, vector<1x64x128xf32>
    %10 = vector.shape_cast %9 : vector<1x64x128xf32> to vector<64x128xf32>
    %11 = tpu.iota {dimensions = array<i32: 1>} : vector<1x64xi32>
    %12 = vector.extract_strided_slice %1 {offsets = [0, 0], sizes = [64, 1], strides = [1, 1]} : vector<64x8xi32> to vector<64x1xi32>
    %13 = vector.broadcast %12 : vector<64x1xi32> to vector<64x64xi32>
    %14 = vector.broadcast %11 : vector<1x64xi32> to vector<64x64xi32>
    %15 = arith.cmpi eq, %13, %14 : vector<64x64xi32>
    %cst = arith.constant 1.000000e+00 : f32
    %cst_16 = arith.constant 0.000000e+00 : f32
    %16 = vector.broadcast %cst : f32 to vector<64x64xf32>
    %17 = vector.broadcast %cst_16 : f32 to vector<64x64xf32>
    %18 = arith.select %15, %16, %17 : vector<64x64xi1>, vector<64x64xf32>
    %cst_17 = arith.constant dense<0.000000e+00> : vector<64x128xf32>
    %19 = tpu.matmul %18, %3, %cst_17 {dimension_numbers = #tpu.dot_dimension_numbers<[1], [0], [0], [1], [0, 0, 1, 1], [], []>} : vector<64x64xf32>, vector<64x128xf32>, vector<64x128xf32> -> vector<64x128xf32>
    %cst_18 = arith.constant dense<0.000000e+00> : vector<64x256xf32>
    %20 = tpu.matmul %18, %8, %cst_18 {dimension_numbers = #tpu.dot_dimension_numbers<[1], [0], [0], [1], [0, 0, 1, 1], [], []>} : vector<64x64xf32>, vector<64x256xf32>, vector<64x256xf32> -> vector<64x256xf32>
    %21 = arith.subf %19, %5 : vector<64x128xf32>
    %22 = arith.mulf %21, %21 : vector<64x128xf32>
    %cst_19 = arith.constant dense<0.000000e+00> : vector<64xf32>
    %23 = vector.multi_reduction <add>, %22, %cst_19 [1] : vector<64x128xf32> to vector<64xf32>
    %24 = vector.shape_cast %23 : vector<64xf32> to vector<64x1xf32>
    %cst_20 = arith.constant 1.000000e-24 : f32
    %25 = vector.broadcast %cst_20 : f32 to vector<64x1xf32>
    %26 = arith.maximumf %24, %25 : vector<64x1xf32>
    %27 = math.rsqrt %26 : vector<64x1xf32>
    %28 = vector.broadcast %27 : vector<64x1xf32> to vector<64x128xf32>
    %29 = arith.mulf %21, %28 : vector<64x128xf32>
    %cst_21 = arith.constant dense<0.000000e+00> : vector<64x256xf32>
    %30 = tpu.matmul %29, %6, %cst_21 {dimension_numbers = #tpu.dot_dimension_numbers<[1], [0], [0], [1], [0, 0, 1, 1], [], []>} : vector<64x128xf32>, vector<128x256xf32>, vector<64x256xf32> -> vector<64x256xf32>
    %cst_22 = arith.constant 0.000000e+00 : f32
    %31 = vector.broadcast %cst_22 : f32 to vector<64x256xf32>
    %32 = arith.maximumf %30, %31 : vector<64x256xf32>
    %33 = arith.mulf %32, %20 : vector<64x256xf32>
    %34 = vector.extract_strided_slice %1 {offsets = [0, 1], sizes = [64, 1], strides = [1, 1]} : vector<64x8xi32> to vector<64x1xi32>
    %35 = vector.broadcast %34 : vector<64x1xi32> to vector<64x64xi32>
    %36 = vector.broadcast %11 : vector<1x64xi32> to vector<64x64xi32>
    %37 = arith.cmpi eq, %35, %36 : vector<64x64xi32>
    %cst_23 = arith.constant 1.000000e+00 : f32
    %cst_24 = arith.constant 0.000000e+00 : f32
    %38 = vector.broadcast %cst_23 : f32 to vector<64x64xf32>
    %39 = vector.broadcast %cst_24 : f32 to vector<64x64xf32>
    %40 = arith.select %37, %38, %39 : vector<64x64xi1>, vector<64x64xf32>
    %cst_25 = arith.constant dense<0.000000e+00> : vector<64x128xf32>
    %41 = tpu.matmul %40, %3, %cst_25 {dimension_numbers = #tpu.dot_dimension_numbers<[1], [0], [0], [1], [0, 0, 1, 1], [], []>} : vector<64x64xf32>, vector<64x128xf32>, vector<64x128xf32> -> vector<64x128xf32>
    %cst_26 = arith.constant dense<0.000000e+00> : vector<64x256xf32>
    %42 = tpu.matmul %40, %8, %cst_26 {dimension_numbers = #tpu.dot_dimension_numbers<[1], [0], [0], [1], [0, 0, 1, 1], [], []>} : vector<64x64xf32>, vector<64x256xf32>, vector<64x256xf32> -> vector<64x256xf32>
    %43 = arith.subf %41, %5 : vector<64x128xf32>
    %44 = arith.mulf %43, %43 : vector<64x128xf32>
    %cst_27 = arith.constant dense<0.000000e+00> : vector<64xf32>
    %45 = vector.multi_reduction <add>, %44, %cst_27 [1] : vector<64x128xf32> to vector<64xf32>
    %46 = vector.shape_cast %45 : vector<64xf32> to vector<64x1xf32>
    %cst_28 = arith.constant 1.000000e-24 : f32
    %47 = vector.broadcast %cst_28 : f32 to vector<64x1xf32>
    %48 = arith.maximumf %46, %47 : vector<64x1xf32>
    %49 = math.rsqrt %48 : vector<64x1xf32>
    %50 = vector.broadcast %49 : vector<64x1xf32> to vector<64x128xf32>
    %51 = arith.mulf %43, %50 : vector<64x128xf32>
    %cst_29 = arith.constant dense<0.000000e+00> : vector<64x256xf32>
    %52 = tpu.matmul %51, %6, %cst_29 {dimension_numbers = #tpu.dot_dimension_numbers<[1], [0], [0], [1], [0, 0, 1, 1], [], []>} : vector<64x128xf32>, vector<128x256xf32>, vector<64x256xf32> -> vector<64x256xf32>
    %cst_30 = arith.constant 0.000000e+00 : f32
    %53 = vector.broadcast %cst_30 : f32 to vector<64x256xf32>
    %54 = arith.maximumf %52, %53 : vector<64x256xf32>
    %55 = arith.mulf %54, %42 : vector<64x256xf32>
    %56 = arith.maximumf %33, %55 : vector<64x256xf32>
    %57 = vector.extract_strided_slice %1 {offsets = [0, 2], sizes = [64, 1], strides = [1, 1]} : vector<64x8xi32> to vector<64x1xi32>
    %58 = vector.broadcast %57 : vector<64x1xi32> to vector<64x64xi32>
    %59 = vector.broadcast %11 : vector<1x64xi32> to vector<64x64xi32>
    %60 = arith.cmpi eq, %58, %59 : vector<64x64xi32>
    %cst_31 = arith.constant 1.000000e+00 : f32
    %cst_32 = arith.constant 0.000000e+00 : f32
    %61 = vector.broadcast %cst_31 : f32 to vector<64x64xf32>
    %62 = vector.broadcast %cst_32 : f32 to vector<64x64xf32>
    %63 = arith.select %60, %61, %62 : vector<64x64xi1>, vector<64x64xf32>
    %cst_33 = arith.constant dense<0.000000e+00> : vector<64x128xf32>
    %64 = tpu.matmul %63, %3, %cst_33 {dimension_numbers = #tpu.dot_dimension_numbers<[1], [0], [0], [1], [0, 0, 1, 1], [], []>} : vector<64x64xf32>, vector<64x128xf32>, vector<64x128xf32> -> vector<64x128xf32>
    %cst_34 = arith.constant dense<0.000000e+00> : vector<64x256xf32>
    %65 = tpu.matmul %63, %8, %cst_34 {dimension_numbers = #tpu.dot_dimension_numbers<[1], [0], [0], [1], [0, 0, 1, 1], [], []>} : vector<64x64xf32>, vector<64x256xf32>, vector<64x256xf32> -> vector<64x256xf32>
    %66 = arith.subf %64, %5 : vector<64x128xf32>
    %67 = arith.mulf %66, %66 : vector<64x128xf32>
    %cst_35 = arith.constant dense<0.000000e+00> : vector<64xf32>
    %68 = vector.multi_reduction <add>, %67, %cst_35 [1] : vector<64x128xf32> to vector<64xf32>
    %69 = vector.shape_cast %68 : vector<64xf32> to vector<64x1xf32>
    %cst_36 = arith.constant 1.000000e-24 : f32
    %70 = vector.broadcast %cst_36 : f32 to vector<64x1xf32>
    %71 = arith.maximumf %69, %70 : vector<64x1xf32>
    %72 = math.rsqrt %71 : vector<64x1xf32>
    %73 = vector.broadcast %72 : vector<64x1xf32> to vector<64x128xf32>
    %74 = arith.mulf %66, %73 : vector<64x128xf32>
    %cst_37 = arith.constant dense<0.000000e+00> : vector<64x256xf32>
    %75 = tpu.matmul %74, %6, %cst_37 {dimension_numbers = #tpu.dot_dimension_numbers<[1], [0], [0], [1], [0, 0, 1, 1], [], []>} : vector<64x128xf32>, vector<128x256xf32>, vector<64x256xf32> -> vector<64x256xf32>
    %cst_38 = arith.constant 0.000000e+00 : f32
    %76 = vector.broadcast %cst_38 : f32 to vector<64x256xf32>
    %77 = arith.maximumf %75, %76 : vector<64x256xf32>
    %78 = arith.mulf %77, %65 : vector<64x256xf32>
    %79 = arith.maximumf %56, %78 : vector<64x256xf32>
    %80 = vector.extract_strided_slice %1 {offsets = [0, 3], sizes = [64, 1], strides = [1, 1]} : vector<64x8xi32> to vector<64x1xi32>
    %81 = vector.broadcast %80 : vector<64x1xi32> to vector<64x64xi32>
    %82 = vector.broadcast %11 : vector<1x64xi32> to vector<64x64xi32>
    %83 = arith.cmpi eq, %81, %82 : vector<64x64xi32>
    %cst_39 = arith.constant 1.000000e+00 : f32
    %cst_40 = arith.constant 0.000000e+00 : f32
    %84 = vector.broadcast %cst_39 : f32 to vector<64x64xf32>
    %85 = vector.broadcast %cst_40 : f32 to vector<64x64xf32>
    %86 = arith.select %83, %84, %85 : vector<64x64xi1>, vector<64x64xf32>
    %cst_41 = arith.constant dense<0.000000e+00> : vector<64x128xf32>
    %87 = tpu.matmul %86, %3, %cst_41 {dimension_numbers = #tpu.dot_dimension_numbers<[1], [0], [0], [1], [0, 0, 1, 1], [], []>} : vector<64x64xf32>, vector<64x128xf32>, vector<64x128xf32> -> vector<64x128xf32>
    %cst_42 = arith.constant dense<0.000000e+00> : vector<64x256xf32>
    %88 = tpu.matmul %86, %8, %cst_42 {dimension_numbers = #tpu.dot_dimension_numbers<[1], [0], [0], [1], [0, 0, 1, 1], [], []>} : vector<64x64xf32>, vector<64x256xf32>, vector<64x256xf32> -> vector<64x256xf32>
    %89 = arith.subf %87, %5 : vector<64x128xf32>
    %90 = arith.mulf %89, %89 : vector<64x128xf32>
    %cst_43 = arith.constant dense<0.000000e+00> : vector<64xf32>
    %91 = vector.multi_reduction <add>, %90, %cst_43 [1] : vector<64x128xf32> to vector<64xf32>
    %92 = vector.shape_cast %91 : vector<64xf32> to vector<64x1xf32>
    %cst_44 = arith.constant 1.000000e-24 : f32
    %93 = vector.broadcast %cst_44 : f32 to vector<64x1xf32>
    %94 = arith.maximumf %92, %93 : vector<64x1xf32>
    %95 = math.rsqrt %94 : vector<64x1xf32>
    %96 = vector.broadcast %95 : vector<64x1xf32> to vector<64x128xf32>
    %97 = arith.mulf %89, %96 : vector<64x128xf32>
    %cst_45 = arith.constant dense<0.000000e+00> : vector<64x256xf32>
    %98 = tpu.matmul %97, %6, %cst_45 {dimension_numbers = #tpu.dot_dimension_numbers<[1], [0], [0], [1], [0, 0, 1, 1], [], []>} : vector<64x128xf32>, vector<128x256xf32>, vector<64x256xf32> -> vector<64x256xf32>
    %cst_46 = arith.constant 0.000000e+00 : f32
    %99 = vector.broadcast %cst_46 : f32 to vector<64x256xf32>
    %100 = arith.maximumf %98, %99 : vector<64x256xf32>
    %101 = arith.mulf %100, %88 : vector<64x256xf32>
    %102 = arith.maximumf %79, %101 : vector<64x256xf32>
    %103 = vector.extract_strided_slice %1 {offsets = [0, 4], sizes = [64, 1], strides = [1, 1]} : vector<64x8xi32> to vector<64x1xi32>
    %104 = vector.broadcast %103 : vector<64x1xi32> to vector<64x64xi32>
    %105 = vector.broadcast %11 : vector<1x64xi32> to vector<64x64xi32>
    %106 = arith.cmpi eq, %104, %105 : vector<64x64xi32>
    %cst_47 = arith.constant 1.000000e+00 : f32
    %cst_48 = arith.constant 0.000000e+00 : f32
    %107 = vector.broadcast %cst_47 : f32 to vector<64x64xf32>
    %108 = vector.broadcast %cst_48 : f32 to vector<64x64xf32>
    %109 = arith.select %106, %107, %108 : vector<64x64xi1>, vector<64x64xf32>
    %cst_49 = arith.constant dense<0.000000e+00> : vector<64x128xf32>
    %110 = tpu.matmul %109, %3, %cst_49 {dimension_numbers = #tpu.dot_dimension_numbers<[1], [0], [0], [1], [0, 0, 1, 1], [], []>} : vector<64x64xf32>, vector<64x128xf32>, vector<64x128xf32> -> vector<64x128xf32>
    %cst_50 = arith.constant dense<0.000000e+00> : vector<64x256xf32>
    %111 = tpu.matmul %109, %8, %cst_50 {dimension_numbers = #tpu.dot_dimension_numbers<[1], [0], [0], [1], [0, 0, 1, 1], [], []>} : vector<64x64xf32>, vector<64x256xf32>, vector<64x256xf32> -> vector<64x256xf32>
    %112 = arith.subf %110, %5 : vector<64x128xf32>
    %113 = arith.mulf %112, %112 : vector<64x128xf32>
    %cst_51 = arith.constant dense<0.000000e+00> : vector<64xf32>
    %114 = vector.multi_reduction <add>, %113, %cst_51 [1] : vector<64x128xf32> to vector<64xf32>
    %115 = vector.shape_cast %114 : vector<64xf32> to vector<64x1xf32>
    %cst_52 = arith.constant 1.000000e-24 : f32
    %116 = vector.broadcast %cst_52 : f32 to vector<64x1xf32>
    %117 = arith.maximumf %115, %116 : vector<64x1xf32>
    %118 = math.rsqrt %117 : vector<64x1xf32>
    %119 = vector.broadcast %118 : vector<64x1xf32> to vector<64x128xf32>
    %120 = arith.mulf %112, %119 : vector<64x128xf32>
    %cst_53 = arith.constant dense<0.000000e+00> : vector<64x256xf32>
    %121 = tpu.matmul %120, %6, %cst_53 {dimension_numbers = #tpu.dot_dimension_numbers<[1], [0], [0], [1], [0, 0, 1, 1], [], []>} : vector<64x128xf32>, vector<128x256xf32>, vector<64x256xf32> -> vector<64x256xf32>
    %cst_54 = arith.constant 0.000000e+00 : f32
    %122 = vector.broadcast %cst_54 : f32 to vector<64x256xf32>
    %123 = arith.maximumf %121, %122 : vector<64x256xf32>
    %124 = arith.mulf %123, %111 : vector<64x256xf32>
    %125 = arith.maximumf %102, %124 : vector<64x256xf32>
    %126 = vector.extract_strided_slice %1 {offsets = [0, 5], sizes = [64, 1], strides = [1, 1]} : vector<64x8xi32> to vector<64x1xi32>
    %127 = vector.broadcast %126 : vector<64x1xi32> to vector<64x64xi32>
    %128 = vector.broadcast %11 : vector<1x64xi32> to vector<64x64xi32>
    %129 = arith.cmpi eq, %127, %128 : vector<64x64xi32>
    %cst_55 = arith.constant 1.000000e+00 : f32
    %cst_56 = arith.constant 0.000000e+00 : f32
    %130 = vector.broadcast %cst_55 : f32 to vector<64x64xf32>
    %131 = vector.broadcast %cst_56 : f32 to vector<64x64xf32>
    %132 = arith.select %129, %130, %131 : vector<64x64xi1>, vector<64x64xf32>
    %cst_57 = arith.constant dense<0.000000e+00> : vector<64x128xf32>
    %133 = tpu.matmul %132, %3, %cst_57 {dimension_numbers = #tpu.dot_dimension_numbers<[1], [0], [0], [1], [0, 0, 1, 1], [], []>} : vector<64x64xf32>, vector<64x128xf32>, vector<64x128xf32> -> vector<64x128xf32>
    %cst_58 = arith.constant dense<0.000000e+00> : vector<64x256xf32>
    %134 = tpu.matmul %132, %8, %cst_58 {dimension_numbers = #tpu.dot_dimension_numbers<[1], [0], [0], [1], [0, 0, 1, 1], [], []>} : vector<64x64xf32>, vector<64x256xf32>, vector<64x256xf32> -> vector<64x256xf32>
    %135 = arith.subf %133, %5 : vector<64x128xf32>
    %136 = arith.mulf %135, %135 : vector<64x128xf32>
    %cst_59 = arith.constant dense<0.000000e+00> : vector<64xf32>
    %137 = vector.multi_reduction <add>, %136, %cst_59 [1] : vector<64x128xf32> to vector<64xf32>
    %138 = vector.shape_cast %137 : vector<64xf32> to vector<64x1xf32>
    %cst_60 = arith.constant 1.000000e-24 : f32
    %139 = vector.broadcast %cst_60 : f32 to vector<64x1xf32>
    %140 = arith.maximumf %138, %139 : vector<64x1xf32>
    %141 = math.rsqrt %140 : vector<64x1xf32>
    %142 = vector.broadcast %141 : vector<64x1xf32> to vector<64x128xf32>
    %143 = arith.mulf %135, %142 : vector<64x128xf32>
    %cst_61 = arith.constant dense<0.000000e+00> : vector<64x256xf32>
    %144 = tpu.matmul %143, %6, %cst_61 {dimension_numbers = #tpu.dot_dimension_numbers<[1], [0], [0], [1], [0, 0, 1, 1], [], []>} : vector<64x128xf32>, vector<128x256xf32>, vector<64x256xf32> -> vector<64x256xf32>
    %cst_62 = arith.constant 0.000000e+00 : f32
    %145 = vector.broadcast %cst_62 : f32 to vector<64x256xf32>
    %146 = arith.maximumf %144, %145 : vector<64x256xf32>
    %147 = arith.mulf %146, %134 : vector<64x256xf32>
    %148 = arith.maximumf %125, %147 : vector<64x256xf32>
    %149 = vector.extract_strided_slice %1 {offsets = [0, 6], sizes = [64, 1], strides = [1, 1]} : vector<64x8xi32> to vector<64x1xi32>
    %150 = vector.broadcast %149 : vector<64x1xi32> to vector<64x64xi32>
    %151 = vector.broadcast %11 : vector<1x64xi32> to vector<64x64xi32>
    %152 = arith.cmpi eq, %150, %151 : vector<64x64xi32>
    %cst_63 = arith.constant 1.000000e+00 : f32
    %cst_64 = arith.constant 0.000000e+00 : f32
    %153 = vector.broadcast %cst_63 : f32 to vector<64x64xf32>
    %154 = vector.broadcast %cst_64 : f32 to vector<64x64xf32>
    %155 = arith.select %152, %153, %154 : vector<64x64xi1>, vector<64x64xf32>
    %cst_65 = arith.constant dense<0.000000e+00> : vector<64x128xf32>
    %156 = tpu.matmul %155, %3, %cst_65 {dimension_numbers = #tpu.dot_dimension_numbers<[1], [0], [0], [1], [0, 0, 1, 1], [], []>} : vector<64x64xf32>, vector<64x128xf32>, vector<64x128xf32> -> vector<64x128xf32>
    %cst_66 = arith.constant dense<0.000000e+00> : vector<64x256xf32>
    %157 = tpu.matmul %155, %8, %cst_66 {dimension_numbers = #tpu.dot_dimension_numbers<[1], [0], [0], [1], [0, 0, 1, 1], [], []>} : vector<64x64xf32>, vector<64x256xf32>, vector<64x256xf32> -> vector<64x256xf32>
    %158 = arith.subf %156, %5 : vector<64x128xf32>
    %159 = arith.mulf %158, %158 : vector<64x128xf32>
    %cst_67 = arith.constant dense<0.000000e+00> : vector<64xf32>
    %160 = vector.multi_reduction <add>, %159, %cst_67 [1] : vector<64x128xf32> to vector<64xf32>
    %161 = vector.shape_cast %160 : vector<64xf32> to vector<64x1xf32>
    %cst_68 = arith.constant 1.000000e-24 : f32
    %162 = vector.broadcast %cst_68 : f32 to vector<64x1xf32>
    %163 = arith.maximumf %161, %162 : vector<64x1xf32>
    %164 = math.rsqrt %163 : vector<64x1xf32>
    %165 = vector.broadcast %164 : vector<64x1xf32> to vector<64x128xf32>
    %166 = arith.mulf %158, %165 : vector<64x128xf32>
    %cst_69 = arith.constant dense<0.000000e+00> : vector<64x256xf32>
    %167 = tpu.matmul %166, %6, %cst_69 {dimension_numbers = #tpu.dot_dimension_numbers<[1], [0], [0], [1], [0, 0, 1, 1], [], []>} : vector<64x128xf32>, vector<128x256xf32>, vector<64x256xf32> -> vector<64x256xf32>
    %cst_70 = arith.constant 0.000000e+00 : f32
    %168 = vector.broadcast %cst_70 : f32 to vector<64x256xf32>
    %169 = arith.maximumf %167, %168 : vector<64x256xf32>
    %170 = arith.mulf %169, %157 : vector<64x256xf32>
    %171 = arith.maximumf %148, %170 : vector<64x256xf32>
    %172 = vector.extract_strided_slice %1 {offsets = [0, 7], sizes = [64, 1], strides = [1, 1]} : vector<64x8xi32> to vector<64x1xi32>
    %173 = vector.broadcast %172 : vector<64x1xi32> to vector<64x64xi32>
    %174 = vector.broadcast %11 : vector<1x64xi32> to vector<64x64xi32>
    %175 = arith.cmpi eq, %173, %174 : vector<64x64xi32>
    %cst_71 = arith.constant 1.000000e+00 : f32
    %cst_72 = arith.constant 0.000000e+00 : f32
    %176 = vector.broadcast %cst_71 : f32 to vector<64x64xf32>
    %177 = vector.broadcast %cst_72 : f32 to vector<64x64xf32>
    %178 = arith.select %175, %176, %177 : vector<64x64xi1>, vector<64x64xf32>
    %cst_73 = arith.constant dense<0.000000e+00> : vector<64x128xf32>
    %179 = tpu.matmul %178, %3, %cst_73 {dimension_numbers = #tpu.dot_dimension_numbers<[1], [0], [0], [1], [0, 0, 1, 1], [], []>} : vector<64x64xf32>, vector<64x128xf32>, vector<64x128xf32> -> vector<64x128xf32>
    %cst_74 = arith.constant dense<0.000000e+00> : vector<64x256xf32>
    %180 = tpu.matmul %178, %8, %cst_74 {dimension_numbers = #tpu.dot_dimension_numbers<[1], [0], [0], [1], [0, 0, 1, 1], [], []>} : vector<64x64xf32>, vector<64x256xf32>, vector<64x256xf32> -> vector<64x256xf32>
    %181 = arith.subf %179, %5 : vector<64x128xf32>
    %182 = arith.mulf %181, %181 : vector<64x128xf32>
    %cst_75 = arith.constant dense<0.000000e+00> : vector<64xf32>
    %183 = vector.multi_reduction <add>, %182, %cst_75 [1] : vector<64x128xf32> to vector<64xf32>
    %184 = vector.shape_cast %183 : vector<64xf32> to vector<64x1xf32>
    %cst_76 = arith.constant 1.000000e-24 : f32
    %185 = vector.broadcast %cst_76 : f32 to vector<64x1xf32>
    %186 = arith.maximumf %184, %185 : vector<64x1xf32>
    %187 = math.rsqrt %186 : vector<64x1xf32>
    %188 = vector.broadcast %187 : vector<64x1xf32> to vector<64x128xf32>
    %189 = arith.mulf %181, %188 : vector<64x128xf32>
    %cst_77 = arith.constant dense<0.000000e+00> : vector<64x256xf32>
    %190 = tpu.matmul %189, %6, %cst_77 {dimension_numbers = #tpu.dot_dimension_numbers<[1], [0], [0], [1], [0, 0, 1, 1], [], []>} : vector<64x128xf32>, vector<128x256xf32>, vector<64x256xf32> -> vector<64x256xf32>
    %cst_78 = arith.constant 0.000000e+00 : f32
    %191 = vector.broadcast %cst_78 : f32 to vector<64x256xf32>
    %192 = arith.maximumf %190, %191 : vector<64x256xf32>
    %193 = arith.mulf %192, %180 : vector<64x256xf32>
    %194 = arith.maximumf %171, %193 : vector<64x256xf32>
    %195 = vector.extract_strided_slice %194 {offsets = [0, 0], sizes = [64, 128], strides = [1, 1]} : vector<64x256xf32> to vector<64x128xf32>
    %196 = vector.extract_strided_slice %194 {offsets = [0, 128], sizes = [64, 128], strides = [1, 1]} : vector<64x256xf32> to vector<64x128xf32>
    %197 = arith.addf %195, %196 : vector<64x128xf32>
    %198 = arith.addf %10, %197 : vector<64x128xf32>
    %c0_79 = arith.constant 0 : index
    %c0_80 = arith.constant 0 : index
    %c0_81 = arith.constant 0 : index
    %199 = vector.load %arg8[%c0_79, %c0_80, %c0_81] : memref<1x64x128xf32, #tpu.memory_space<vmem>>, vector<1x64x128xf32>
    %200 = vector.shape_cast %199 : vector<1x64x128xf32> to vector<64x128xf32>
    %201 = vector.shape_cast %198 : vector<64x128xf32> to vector<1x64x128xf32>
    tpu.vector_store %arg8[%c0_79, %c0_80, %c0_81], %201 {strides = array<i32>} : memref<1x64x128xf32, #tpu.memory_space<vmem>>, vector<1x64x128xf32>,
    return
  }
  func.func @transform_0(%arg0: i32, %arg1: i32) -> (i32, i32, i32) {
    %c0_i32 = arith.constant 0 : i32
    %c0_i32_0 = arith.constant 0 : i32
    return %arg0, %arg1, %c0_i32 : i32, i32, i32
  }
  func.func @transform_1(%arg0: i32, %arg1: i32) -> (i32, i32, i32) {
    %c0_i32 = arith.constant 0 : i32
    %c0_i32_0 = arith.constant 0 : i32
    %c0_i32_1 = arith.constant 0 : i32
    return %arg0, %c0_i32, %c0_i32_0 : i32, i32, i32
  }
  func.func @transform_2(%arg0: i32, %arg1: i32) -> (i32, i32, i32) {
    %c0_i32 = arith.constant 0 : i32
    %c0_i32_0 = arith.constant 0 : i32
    return %arg0, %arg1, %c0_i32 : i32, i32, i32
  }
  func.func @transform_3(%arg0: i32, %arg1: i32) -> (i32, i32) {
    %c0_i32 = arith.constant 0 : i32
    %c0_i32_0 = arith.constant 0 : i32
    %c0_i32_1 = arith.constant 0 : i32
    return %c0_i32, %c0_i32_0 : i32, i32
  }
  func.func @transform_4(%arg0: i32, %arg1: i32) -> (i32, i32, i32) {
    %c0_i32 = arith.constant 0 : i32
    %c0_i32_0 = arith.constant 0 : i32
    %c0_i32_1 = arith.constant 0 : i32
    return %arg0, %c0_i32, %c0_i32_0 : i32, i32, i32
  }
  func.func @transform_5(%arg0: i32, %arg1: i32) -> (i32, i32, i32) {
    %c0_i32 = arith.constant 0 : i32
    %c0_i32_0 = arith.constant 0 : i32
    return %arg0, %arg1, %c0_i32 : i32, i32, i32
  }
  func.func @transform_6(%arg0: i32, %arg1: i32) -> (i32, i32, i32) {
    %c0_i32 = arith.constant 0 : i32
    %c0_i32_0 = arith.constant 0 : i32
    return %arg0, %arg1, %c0_i32 : i32, i32, i32
  }
}

module attributes {stable_mosaic.version = 11 : i64} {
  func.func @_pool_kernel(%arg0: i32, %arg1: i32, %arg2: memref<1x64x4xi32, #tpu.memory_space<vmem>>, %arg3: memref<1x64x384xf32, #tpu.memory_space<vmem>>, %arg4: memref<1x64x384xf32, #tpu.memory_space<vmem>>) attributes {dimension_semantics = [#tpu.dimension_semantics<parallel>, #tpu.dimension_semantics<parallel>], iteration_bounds = array<i64: 2, 1>, scalar_prefetch = 0 : i64, scratch_operands = 0 : i64, tpu.core_type = #tpu.core_type<tc>, window_params = [{transform_indices = @transform_0, window_bounds = array<i64: 1, 64, 4>}, {transform_indices = @transform_1, window_bounds = array<i64: 1, 64, 384>}, {transform_indices = @transform_2, window_bounds = array<i64: 1, 64, 384>}]} {
    %c0 = arith.constant 0 : index
    %c0_0 = arith.constant 0 : index
    %c0_1 = arith.constant 0 : index
    %0 = vector.load %arg2[%c0, %c0_0, %c0_1] : memref<1x64x4xi32, #tpu.memory_space<vmem>>, vector<1x64x4xi32>
    %1 = vector.shape_cast %0 : vector<1x64x4xi32> to vector<64x4xi32>
    %c0_2 = arith.constant 0 : index
    %c0_3 = arith.constant 0 : index
    %c0_4 = arith.constant 0 : index
    %2 = vector.load %arg3[%c0_2, %c0_3, %c0_4] : memref<1x64x384xf32, #tpu.memory_space<vmem>>, vector<1x64x384xf32>
    %3 = vector.shape_cast %2 : vector<1x64x384xf32> to vector<64x384xf32>
    %4 = tpu.iota {dimensions = array<i32: 1>} : vector<1x64xi32>
    %5 = vector.extract_strided_slice %1 {offsets = [0, 0], sizes = [64, 1], strides = [1, 1]} : vector<64x4xi32> to vector<64x1xi32>
    %6 = vector.broadcast %5 : vector<64x1xi32> to vector<64x64xi32>
    %7 = vector.broadcast %4 : vector<1x64xi32> to vector<64x64xi32>
    %8 = arith.cmpi eq, %6, %7 : vector<64x64xi32>
    %cst = arith.constant 1.000000e+00 : f32
    %cst_5 = arith.constant 0.000000e+00 : f32
    %9 = vector.broadcast %cst : f32 to vector<64x64xf32>
    %10 = vector.broadcast %cst_5 : f32 to vector<64x64xf32>
    %11 = arith.select %8, %9, %10 : vector<64x64xi1>, vector<64x64xf32>
    %cst_6 = arith.constant dense<0.000000e+00> : vector<64x384xf32>
    %12 = tpu.matmul %11, %3, %cst_6 {dimension_numbers = #tpu.dot_dimension_numbers<[1], [0], [0], [1], [0, 0, 1, 1], [], []>} : vector<64x64xf32>, vector<64x384xf32>, vector<64x384xf32> -> vector<64x384xf32>
    %13 = vector.extract_strided_slice %1 {offsets = [0, 1], sizes = [64, 1], strides = [1, 1]} : vector<64x4xi32> to vector<64x1xi32>
    %14 = vector.broadcast %13 : vector<64x1xi32> to vector<64x64xi32>
    %15 = vector.broadcast %4 : vector<1x64xi32> to vector<64x64xi32>
    %16 = arith.cmpi eq, %14, %15 : vector<64x64xi32>
    %cst_7 = arith.constant 1.000000e+00 : f32
    %cst_8 = arith.constant 0.000000e+00 : f32
    %17 = vector.broadcast %cst_7 : f32 to vector<64x64xf32>
    %18 = vector.broadcast %cst_8 : f32 to vector<64x64xf32>
    %19 = arith.select %16, %17, %18 : vector<64x64xi1>, vector<64x64xf32>
    %cst_9 = arith.constant dense<0.000000e+00> : vector<64x384xf32>
    %20 = tpu.matmul %19, %3, %cst_9 {dimension_numbers = #tpu.dot_dimension_numbers<[1], [0], [0], [1], [0, 0, 1, 1], [], []>} : vector<64x64xf32>, vector<64x384xf32>, vector<64x384xf32> -> vector<64x384xf32>
    %21 = arith.maximumf %12, %20 : vector<64x384xf32>
    %22 = vector.extract_strided_slice %1 {offsets = [0, 2], sizes = [64, 1], strides = [1, 1]} : vector<64x4xi32> to vector<64x1xi32>
    %23 = vector.broadcast %22 : vector<64x1xi32> to vector<64x64xi32>
    %24 = vector.broadcast %4 : vector<1x64xi32> to vector<64x64xi32>
    %25 = arith.cmpi eq, %23, %24 : vector<64x64xi32>
    %cst_10 = arith.constant 1.000000e+00 : f32
    %cst_11 = arith.constant 0.000000e+00 : f32
    %26 = vector.broadcast %cst_10 : f32 to vector<64x64xf32>
    %27 = vector.broadcast %cst_11 : f32 to vector<64x64xf32>
    %28 = arith.select %25, %26, %27 : vector<64x64xi1>, vector<64x64xf32>
    %cst_12 = arith.constant dense<0.000000e+00> : vector<64x384xf32>
    %29 = tpu.matmul %28, %3, %cst_12 {dimension_numbers = #tpu.dot_dimension_numbers<[1], [0], [0], [1], [0, 0, 1, 1], [], []>} : vector<64x64xf32>, vector<64x384xf32>, vector<64x384xf32> -> vector<64x384xf32>
    %30 = arith.maximumf %21, %29 : vector<64x384xf32>
    %31 = vector.extract_strided_slice %1 {offsets = [0, 3], sizes = [64, 1], strides = [1, 1]} : vector<64x4xi32> to vector<64x1xi32>
    %32 = vector.broadcast %31 : vector<64x1xi32> to vector<64x64xi32>
    %33 = vector.broadcast %4 : vector<1x64xi32> to vector<64x64xi32>
    %34 = arith.cmpi eq, %32, %33 : vector<64x64xi32>
    %cst_13 = arith.constant 1.000000e+00 : f32
    %cst_14 = arith.constant 0.000000e+00 : f32
    %35 = vector.broadcast %cst_13 : f32 to vector<64x64xf32>
    %36 = vector.broadcast %cst_14 : f32 to vector<64x64xf32>
    %37 = arith.select %34, %35, %36 : vector<64x64xi1>, vector<64x64xf32>
    %cst_15 = arith.constant dense<0.000000e+00> : vector<64x384xf32>
    %38 = tpu.matmul %37, %3, %cst_15 {dimension_numbers = #tpu.dot_dimension_numbers<[1], [0], [0], [1], [0, 0, 1, 1], [], []>} : vector<64x64xf32>, vector<64x384xf32>, vector<64x384xf32> -> vector<64x384xf32>
    %39 = arith.maximumf %30, %38 : vector<64x384xf32>
    %c0_16 = arith.constant 0 : index
    %c0_17 = arith.constant 0 : index
    %c0_18 = arith.constant 0 : index
    %40 = vector.load %arg4[%c0_16, %c0_17, %c0_18] : memref<1x64x384xf32, #tpu.memory_space<vmem>>, vector<1x64x384xf32>
    %41 = vector.shape_cast %40 : vector<1x64x384xf32> to vector<64x384xf32>
    %42 = vector.shape_cast %39 : vector<64x384xf32> to vector<1x64x384xf32>
    tpu.vector_store %arg4[%c0_16, %c0_17, %c0_18], %42 {strides = array<i32>} : memref<1x64x384xf32, #tpu.memory_space<vmem>>, vector<1x64x384xf32>,
    return
  }
  func.func @transform_0(%arg0: i32, %arg1: i32) -> (i32, i32, i32) {
    %c0_i32 = arith.constant 0 : i32
    %c0_i32_0 = arith.constant 0 : i32
    return %arg0, %arg1, %c0_i32 : i32, i32, i32
  }
  func.func @transform_1(%arg0: i32, %arg1: i32) -> (i32, i32, i32) {
    %c0_i32 = arith.constant 0 : i32
    %c0_i32_0 = arith.constant 0 : i32
    %c0_i32_1 = arith.constant 0 : i32
    return %arg0, %c0_i32, %c0_i32_0 : i32, i32, i32
  }
  func.func @transform_2(%arg0: i32, %arg1: i32) -> (i32, i32, i32) {
    %c0_i32 = arith.constant 0 : i32
    %c0_i32_0 = arith.constant 0 : i32
    return %arg0, %arg1, %c0_i32 : i32, i32, i32
  }
}

module attributes {stable_mosaic.version = 11 : i64} {
  func.func @_linear_kernel(%arg0: i32, %arg1: memref<16x384xbf16, #tpu.memory_space<vmem>>, %arg2: memref<384x1536xbf16, #tpu.memory_space<vmem>>, %arg3: memref<1x1536xf32, #tpu.memory_space<vmem>>, %arg4: memref<16x1536xf32, #tpu.memory_space<vmem>>) attributes {dimension_semantics = [#tpu.dimension_semantics<parallel>], iteration_bounds = array<i64: 2>, scalar_prefetch = 0 : i64, scratch_operands = 0 : i64, tpu.core_type = #tpu.core_type<tc>, window_params = [{transform_indices = @transform_0, window_bounds = array<i64: 16, 384>}, {pipeline_mode = #tpu.pipeline_mode<synchronous>, transform_indices = @transform_1, window_bounds = array<i64: 384, 1536>}, {pipeline_mode = #tpu.pipeline_mode<synchronous>, transform_indices = @transform_2, window_bounds = array<i64: 1, 1536>}, {transform_indices = @transform_3, window_bounds = array<i64: 16, 1536>}]} {
    %c0 = arith.constant 0 : index
    %c0_0 = arith.constant 0 : index
    %0 = vector.load %arg1[%c0, %c0_0] : memref<16x384xbf16, #tpu.memory_space<vmem>>, vector<16x384xbf16>
    %c0_1 = arith.constant 0 : index
    %c0_2 = arith.constant 0 : index
    %1 = vector.load %arg2[%c0_1, %c0_2] : memref<384x1536xbf16, #tpu.memory_space<vmem>>, vector<384x1536xbf16>
    %cst = arith.constant dense<0.000000e+00> : vector<16x1536xf32>
    %2 = tpu.matmul %0, %1, %cst {dimension_numbers = #tpu.dot_dimension_numbers<[1], [0], [0], [1], [0, 0, 1, 1], [], []>} : vector<16x384xbf16>, vector<384x1536xbf16>, vector<16x1536xf32> -> vector<16x1536xf32>
    %c0_3 = arith.constant 0 : index
    %c0_4 = arith.constant 0 : index
    %3 = vector.load %arg3[%c0_3, %c0_4] : memref<1x1536xf32, #tpu.memory_space<vmem>>, vector<1x1536xf32>
    %4 = vector.broadcast %3 : vector<1x1536xf32> to vector<16x1536xf32>
    %5 = arith.addf %2, %4 : vector<16x1536xf32>
    %c0_5 = arith.constant 0 : index
    %c0_6 = arith.constant 0 : index
    %6 = vector.load %arg4[%c0_5, %c0_6] : memref<16x1536xf32, #tpu.memory_space<vmem>>, vector<16x1536xf32>
    tpu.vector_store %arg4[%c0_5, %c0_6], %5 {strides = array<i32>} : memref<16x1536xf32, #tpu.memory_space<vmem>>, vector<16x1536xf32>,
    return
  }
  func.func @transform_0(%arg0: i32) -> (i32, i32) {
    %c0_i32 = arith.constant 0 : i32
    %c0_i32_0 = arith.constant 0 : i32
    return %arg0, %c0_i32 : i32, i32
  }
  func.func @transform_1(%arg0: i32) -> (i32, i32) {
    %c0_i32 = arith.constant 0 : i32
    %c0_i32_0 = arith.constant 0 : i32
    %c0_i32_1 = arith.constant 0 : i32
    return %c0_i32, %c0_i32_0 : i32, i32
  }
  func.func @transform_2(%arg0: i32) -> (i32, i32) {
    %c0_i32 = arith.constant 0 : i32
    %c0_i32_0 = arith.constant 0 : i32
    %c0_i32_1 = arith.constant 0 : i32
    return %c0_i32, %c0_i32_0 : i32, i32
  }
  func.func @transform_3(%arg0: i32) -> (i32, i32) {
    %c0_i32 = arith.constant 0 : i32
    %c0_i32_0 = arith.constant 0 : i32
    return %arg0, %c0_i32 : i32, i32
  }
}

module attributes {stable_mosaic.version = 11 : i64} {
  func.func @_sqdist_kernel(%arg0: i32, %arg1: i32, %arg2: i32, %arg3: memref<1x16x128xf32, #tpu.memory_space<vmem>>, %arg4: memref<1x128x16xf32, #tpu.memory_space<vmem>>, %arg5: memref<1x16x16xf32, #tpu.memory_space<vmem>>) attributes {dimension_semantics = [#tpu.dimension_semantics<parallel>, #tpu.dimension_semantics<parallel>, #tpu.dimension_semantics<parallel>], iteration_bounds = array<i64: 2, 1, 1>, scalar_prefetch = 0 : i64, scratch_operands = 0 : i64, tpu.core_type = #tpu.core_type<tc>, window_params = [{transform_indices = @transform_0, window_bounds = array<i64: 1, 16, 128>}, {transform_indices = @transform_1, window_bounds = array<i64: 1, 128, 16>}, {transform_indices = @transform_2, window_bounds = array<i64: 1, 16, 16>}]} {
    %c0 = arith.constant 0 : index
    %c0_0 = arith.constant 0 : index
    %c0_1 = arith.constant 0 : index
    %0 = vector.load %arg3[%c0, %c0_0, %c0_1] : memref<1x16x128xf32, #tpu.memory_space<vmem>>, vector<1x16x128xf32>
    %1 = vector.shape_cast %0 : vector<1x16x128xf32> to vector<16x128xf32>
    %c0_2 = arith.constant 0 : index
    %c0_3 = arith.constant 0 : index
    %c0_4 = arith.constant 0 : index
    %2 = vector.load %arg4[%c0_2, %c0_3, %c0_4] : memref<1x128x16xf32, #tpu.memory_space<vmem>>, vector<1x128x16xf32>
    %3 = vector.shape_cast %2 : vector<1x128x16xf32> to vector<128x16xf32>
    %4 = arith.mulf %1, %1 : vector<16x128xf32>
    %cst = arith.constant dense<0.000000e+00> : vector<16xf32>
    %5 = vector.multi_reduction <add>, %4, %cst [1] : vector<16x128xf32> to vector<16xf32>
    %6 = vector.shape_cast %5 : vector<16xf32> to vector<16x1xf32>
    %7 = arith.mulf %3, %3 : vector<128x16xf32>
    %cst_5 = arith.constant dense<0.000000e+00> : vector<16xf32>
    %8 = vector.multi_reduction <add>, %7, %cst_5 [0] : vector<128x16xf32> to vector<16xf32>
    %9 = vector.shape_cast %8 : vector<16xf32> to vector<1x16xf32>
    %cst_6 = arith.constant dense<0.000000e+00> : vector<16x16xf32>
    %10 = tpu.matmul %1, %3, %cst_6 {dimension_numbers = #tpu.dot_dimension_numbers<[1], [0], [0], [1], [0, 0, 1, 1], [], []>} : vector<16x128xf32>, vector<128x16xf32>, vector<16x16xf32> -> vector<16x16xf32>
    %11 = vector.broadcast %6 : vector<16x1xf32> to vector<16x16xf32>
    %12 = vector.broadcast %9 : vector<1x16xf32> to vector<16x16xf32>
    %13 = arith.addf %11, %12 : vector<16x16xf32>
    %cst_7 = arith.constant 2.000000e+00 : f32
    %14 = vector.broadcast %cst_7 : f32 to vector<16x16xf32>
    %15 = arith.mulf %14, %10 : vector<16x16xf32>
    %16 = arith.subf %13, %15 : vector<16x16xf32>
    %c0_8 = arith.constant 0 : index
    %c0_9 = arith.constant 0 : index
    %c0_10 = arith.constant 0 : index
    %17 = vector.load %arg5[%c0_8, %c0_9, %c0_10] : memref<1x16x16xf32, #tpu.memory_space<vmem>>, vector<1x16x16xf32>
    %18 = vector.shape_cast %17 : vector<1x16x16xf32> to vector<16x16xf32>
    %19 = vector.shape_cast %16 : vector<16x16xf32> to vector<1x16x16xf32>
    tpu.vector_store %arg5[%c0_8, %c0_9, %c0_10], %19 {strides = array<i32>} : memref<1x16x16xf32, #tpu.memory_space<vmem>>, vector<1x16x16xf32>,
    return
  }
  func.func @transform_0(%arg0: i32, %arg1: i32, %arg2: i32) -> (i32, i32, i32) {
    %c0_i32 = arith.constant 0 : i32
    %c0_i32_0 = arith.constant 0 : i32
    return %arg0, %arg1, %c0_i32 : i32, i32, i32
  }
  func.func @transform_1(%arg0: i32, %arg1: i32, %arg2: i32) -> (i32, i32, i32) {
    %c0_i32 = arith.constant 0 : i32
    %c0_i32_0 = arith.constant 0 : i32
    return %arg0, %c0_i32, %arg2 : i32, i32, i32
  }
  func.func @transform_2(%arg0: i32, %arg1: i32, %arg2: i32) -> (i32, i32, i32) {
    %c0_i32 = arith.constant 0 : i32
    return %arg0, %arg1, %arg2 : i32, i32, i32
  }
}

module attributes {stable_mosaic.version = 11 : i64} {
  func.func @_conv_layer_kernel(%arg0: i32, %arg1: i32, %arg2: memref<1x16x2xi32, #tpu.memory_space<vmem>>, %arg3: memref<1x16x128xf32, #tpu.memory_space<vmem>>, %arg4: memref<1x16x128xf32, #tpu.memory_space<vmem>>, %arg5: memref<128x1024xf32, #tpu.memory_space<vmem>>, %arg6: memref<1x16x1024xf32, #tpu.memory_space<vmem>>, %arg7: memref<1x16x512xf32, #tpu.memory_space<vmem>>, %arg8: memref<1x16x512xf32, #tpu.memory_space<vmem>>) attributes {dimension_semantics = [#tpu.dimension_semantics<parallel>, #tpu.dimension_semantics<parallel>], iteration_bounds = array<i64: 2, 1>, scalar_prefetch = 0 : i64, scratch_operands = 0 : i64, tpu.core_type = #tpu.core_type<tc>, window_params = [{transform_indices = @transform_0, window_bounds = array<i64: 1, 16, 2>}, {transform_indices = @transform_1, window_bounds = array<i64: 1, 16, 128>}, {transform_indices = @transform_2, window_bounds = array<i64: 1, 16, 128>}, {pipeline_mode = #tpu.pipeline_mode<synchronous>, transform_indices = @transform_3, window_bounds = array<i64: 128, 1024>}, {transform_indices = @transform_4, window_bounds = array<i64: 1, 16, 1024>}, {transform_indices = @transform_5, window_bounds = array<i64: 1, 16, 512>}, {transform_indices = @transform_6, window_bounds = array<i64: 1, 16, 512>}]} {
    %c0 = arith.constant 0 : index
    %c0_0 = arith.constant 0 : index
    %c0_1 = arith.constant 0 : index
    %0 = vector.load %arg2[%c0, %c0_0, %c0_1] : memref<1x16x2xi32, #tpu.memory_space<vmem>>, vector<1x16x2xi32>
    %1 = vector.shape_cast %0 : vector<1x16x2xi32> to vector<16x2xi32>
    %c0_2 = arith.constant 0 : index
    %c0_3 = arith.constant 0 : index
    %c0_4 = arith.constant 0 : index
    %2 = vector.load %arg3[%c0_2, %c0_3, %c0_4] : memref<1x16x128xf32, #tpu.memory_space<vmem>>, vector<1x16x128xf32>
    %3 = vector.shape_cast %2 : vector<1x16x128xf32> to vector<16x128xf32>
    %c0_5 = arith.constant 0 : index
    %c0_6 = arith.constant 0 : index
    %c0_7 = arith.constant 0 : index
    %4 = vector.load %arg4[%c0_5, %c0_6, %c0_7] : memref<1x16x128xf32, #tpu.memory_space<vmem>>, vector<1x16x128xf32>
    %5 = vector.shape_cast %4 : vector<1x16x128xf32> to vector<16x128xf32>
    %c0_8 = arith.constant 0 : index
    %c0_9 = arith.constant 0 : index
    %6 = vector.load %arg5[%c0_8, %c0_9] : memref<128x1024xf32, #tpu.memory_space<vmem>>, vector<128x1024xf32>
    %c0_10 = arith.constant 0 : index
    %c0_11 = arith.constant 0 : index
    %c0_12 = arith.constant 0 : index
    %7 = vector.load %arg6[%c0_10, %c0_11, %c0_12] : memref<1x16x1024xf32, #tpu.memory_space<vmem>>, vector<1x16x1024xf32>
    %8 = vector.shape_cast %7 : vector<1x16x1024xf32> to vector<16x1024xf32>
    %c0_13 = arith.constant 0 : index
    %c0_14 = arith.constant 0 : index
    %c0_15 = arith.constant 0 : index
    %9 = vector.load %arg7[%c0_13, %c0_14, %c0_15] : memref<1x16x512xf32, #tpu.memory_space<vmem>>, vector<1x16x512xf32>
    %10 = vector.shape_cast %9 : vector<1x16x512xf32> to vector<16x512xf32>
    %11 = tpu.iota {dimensions = array<i32: 1>} : vector<1x16xi32>
    %12 = vector.extract_strided_slice %1 {offsets = [0, 0], sizes = [16, 1], strides = [1, 1]} : vector<16x2xi32> to vector<16x1xi32>
    %13 = vector.broadcast %12 : vector<16x1xi32> to vector<16x16xi32>
    %14 = vector.broadcast %11 : vector<1x16xi32> to vector<16x16xi32>
    %15 = arith.cmpi eq, %13, %14 : vector<16x16xi32>
    %cst = arith.constant 1.000000e+00 : f32
    %cst_16 = arith.constant 0.000000e+00 : f32
    %16 = vector.broadcast %cst : f32 to vector<16x16xf32>
    %17 = vector.broadcast %cst_16 : f32 to vector<16x16xf32>
    %18 = arith.select %15, %16, %17 : vector<16x16xi1>, vector<16x16xf32>
    %cst_17 = arith.constant dense<0.000000e+00> : vector<16x128xf32>
    %19 = tpu.matmul %18, %3, %cst_17 {dimension_numbers = #tpu.dot_dimension_numbers<[1], [0], [0], [1], [0, 0, 1, 1], [], []>} : vector<16x16xf32>, vector<16x128xf32>, vector<16x128xf32> -> vector<16x128xf32>
    %cst_18 = arith.constant dense<0.000000e+00> : vector<16x1024xf32>
    %20 = tpu.matmul %18, %8, %cst_18 {dimension_numbers = #tpu.dot_dimension_numbers<[1], [0], [0], [1], [0, 0, 1, 1], [], []>} : vector<16x16xf32>, vector<16x1024xf32>, vector<16x1024xf32> -> vector<16x1024xf32>
    %21 = arith.subf %19, %5 : vector<16x128xf32>
    %22 = arith.mulf %21, %21 : vector<16x128xf32>
    %cst_19 = arith.constant dense<0.000000e+00> : vector<16xf32>
    %23 = vector.multi_reduction <add>, %22, %cst_19 [1] : vector<16x128xf32> to vector<16xf32>
    %24 = vector.shape_cast %23 : vector<16xf32> to vector<16x1xf32>
    %cst_20 = arith.constant 1.000000e-24 : f32
    %25 = vector.broadcast %cst_20 : f32 to vector<16x1xf32>
    %26 = arith.maximumf %24, %25 : vector<16x1xf32>
    %27 = math.rsqrt %26 : vector<16x1xf32>
    %28 = vector.broadcast %27 : vector<16x1xf32> to vector<16x128xf32>
    %29 = arith.mulf %21, %28 : vector<16x128xf32>
    %cst_21 = arith.constant dense<0.000000e+00> : vector<16x1024xf32>
    %30 = tpu.matmul %29, %6, %cst_21 {dimension_numbers = #tpu.dot_dimension_numbers<[1], [0], [0], [1], [0, 0, 1, 1], [], []>} : vector<16x128xf32>, vector<128x1024xf32>, vector<16x1024xf32> -> vector<16x1024xf32>
    %cst_22 = arith.constant 0.000000e+00 : f32
    %31 = vector.broadcast %cst_22 : f32 to vector<16x1024xf32>
    %32 = arith.maximumf %30, %31 : vector<16x1024xf32>
    %33 = arith.mulf %32, %20 : vector<16x1024xf32>
    %34 = vector.extract_strided_slice %1 {offsets = [0, 1], sizes = [16, 1], strides = [1, 1]} : vector<16x2xi32> to vector<16x1xi32>
    %35 = vector.broadcast %34 : vector<16x1xi32> to vector<16x16xi32>
    %36 = vector.broadcast %11 : vector<1x16xi32> to vector<16x16xi32>
    %37 = arith.cmpi eq, %35, %36 : vector<16x16xi32>
    %cst_23 = arith.constant 1.000000e+00 : f32
    %cst_24 = arith.constant 0.000000e+00 : f32
    %38 = vector.broadcast %cst_23 : f32 to vector<16x16xf32>
    %39 = vector.broadcast %cst_24 : f32 to vector<16x16xf32>
    %40 = arith.select %37, %38, %39 : vector<16x16xi1>, vector<16x16xf32>
    %cst_25 = arith.constant dense<0.000000e+00> : vector<16x128xf32>
    %41 = tpu.matmul %40, %3, %cst_25 {dimension_numbers = #tpu.dot_dimension_numbers<[1], [0], [0], [1], [0, 0, 1, 1], [], []>} : vector<16x16xf32>, vector<16x128xf32>, vector<16x128xf32> -> vector<16x128xf32>
    %cst_26 = arith.constant dense<0.000000e+00> : vector<16x1024xf32>
    %42 = tpu.matmul %40, %8, %cst_26 {dimension_numbers = #tpu.dot_dimension_numbers<[1], [0], [0], [1], [0, 0, 1, 1], [], []>} : vector<16x16xf32>, vector<16x1024xf32>, vector<16x1024xf32> -> vector<16x1024xf32>
    %43 = arith.subf %41, %5 : vector<16x128xf32>
    %44 = arith.mulf %43, %43 : vector<16x128xf32>
    %cst_27 = arith.constant dense<0.000000e+00> : vector<16xf32>
    %45 = vector.multi_reduction <add>, %44, %cst_27 [1] : vector<16x128xf32> to vector<16xf32>
    %46 = vector.shape_cast %45 : vector<16xf32> to vector<16x1xf32>
    %cst_28 = arith.constant 1.000000e-24 : f32
    %47 = vector.broadcast %cst_28 : f32 to vector<16x1xf32>
    %48 = arith.maximumf %46, %47 : vector<16x1xf32>
    %49 = math.rsqrt %48 : vector<16x1xf32>
    %50 = vector.broadcast %49 : vector<16x1xf32> to vector<16x128xf32>
    %51 = arith.mulf %43, %50 : vector<16x128xf32>
    %cst_29 = arith.constant dense<0.000000e+00> : vector<16x1024xf32>
    %52 = tpu.matmul %51, %6, %cst_29 {dimension_numbers = #tpu.dot_dimension_numbers<[1], [0], [0], [1], [0, 0, 1, 1], [], []>} : vector<16x128xf32>, vector<128x1024xf32>, vector<16x1024xf32> -> vector<16x1024xf32>
    %cst_30 = arith.constant 0.000000e+00 : f32
    %53 = vector.broadcast %cst_30 : f32 to vector<16x1024xf32>
    %54 = arith.maximumf %52, %53 : vector<16x1024xf32>
    %55 = arith.mulf %54, %42 : vector<16x1024xf32>
    %56 = arith.maximumf %33, %55 : vector<16x1024xf32>
    %57 = vector.extract_strided_slice %56 {offsets = [0, 0], sizes = [16, 512], strides = [1, 1]} : vector<16x1024xf32> to vector<16x512xf32>
    %58 = vector.extract_strided_slice %56 {offsets = [0, 512], sizes = [16, 512], strides = [1, 1]} : vector<16x1024xf32> to vector<16x512xf32>
    %59 = arith.addf %57, %58 : vector<16x512xf32>
    %60 = arith.addf %10, %59 : vector<16x512xf32>
    %c0_31 = arith.constant 0 : index
    %c0_32 = arith.constant 0 : index
    %c0_33 = arith.constant 0 : index
    %61 = vector.load %arg8[%c0_31, %c0_32, %c0_33] : memref<1x16x512xf32, #tpu.memory_space<vmem>>, vector<1x16x512xf32>
    %62 = vector.shape_cast %61 : vector<1x16x512xf32> to vector<16x512xf32>
    %63 = vector.shape_cast %60 : vector<16x512xf32> to vector<1x16x512xf32>
    tpu.vector_store %arg8[%c0_31, %c0_32, %c0_33], %63 {strides = array<i32>} : memref<1x16x512xf32, #tpu.memory_space<vmem>>, vector<1x16x512xf32>,
    return
  }
  func.func @transform_0(%arg0: i32, %arg1: i32) -> (i32, i32, i32) {
    %c0_i32 = arith.constant 0 : i32
    %c0_i32_0 = arith.constant 0 : i32
    return %arg0, %arg1, %c0_i32 : i32, i32, i32
  }
  func.func @transform_1(%arg0: i32, %arg1: i32) -> (i32, i32, i32) {
    %c0_i32 = arith.constant 0 : i32
    %c0_i32_0 = arith.constant 0 : i32
    %c0_i32_1 = arith.constant 0 : i32
    return %arg0, %c0_i32, %c0_i32_0 : i32, i32, i32
  }
  func.func @transform_2(%arg0: i32, %arg1: i32) -> (i32, i32, i32) {
    %c0_i32 = arith.constant 0 : i32
    %c0_i32_0 = arith.constant 0 : i32
    return %arg0, %arg1, %c0_i32 : i32, i32, i32
  }
  func.func @transform_3(%arg0: i32, %arg1: i32) -> (i32, i32) {
    %c0_i32 = arith.constant 0 : i32
    %c0_i32_0 = arith.constant 0 : i32
    %c0_i32_1 = arith.constant 0 : i32
    return %c0_i32, %c0_i32_0 : i32, i32
  }
  func.func @transform_4(%arg0: i32, %arg1: i32) -> (i32, i32, i32) {
    %c0_i32 = arith.constant 0 : i32
    %c0_i32_0 = arith.constant 0 : i32
    %c0_i32_1 = arith.constant 0 : i32
    return %arg0, %c0_i32, %c0_i32_0 : i32, i32, i32
  }
  func.func @transform_5(%arg0: i32, %arg1: i32) -> (i32, i32, i32) {
    %c0_i32 = arith.constant 0 : i32
    %c0_i32_0 = arith.constant 0 : i32
    return %arg0, %arg1, %c0_i32 : i32, i32, i32
  }
  func.func @transform_6(%arg0: i32, %arg1: i32) -> (i32, i32, i32) {
    %c0_i32 = arith.constant 0 : i32
    %c0_i32_0 = arith.constant 0 : i32
    return %arg0, %arg1, %c0_i32 : i32, i32, i32
  }
}

module attributes {stable_mosaic.version = 11 : i64} {
  func.func @_linear_kernel(%arg0: i32, %arg1: memref<16x512xbf16, #tpu.memory_space<vmem>>, %arg2: memref<512x1536xbf16, #tpu.memory_space<vmem>>, %arg3: memref<1x1536xf32, #tpu.memory_space<vmem>>, %arg4: memref<16x1536xf32, #tpu.memory_space<vmem>>) attributes {dimension_semantics = [#tpu.dimension_semantics<parallel>], iteration_bounds = array<i64: 2>, scalar_prefetch = 0 : i64, scratch_operands = 0 : i64, tpu.core_type = #tpu.core_type<tc>, window_params = [{transform_indices = @transform_0, window_bounds = array<i64: 16, 512>}, {pipeline_mode = #tpu.pipeline_mode<synchronous>, transform_indices = @transform_1, window_bounds = array<i64: 512, 1536>}, {pipeline_mode = #tpu.pipeline_mode<synchronous>, transform_indices = @transform_2, window_bounds = array<i64: 1, 1536>}, {transform_indices = @transform_3, window_bounds = array<i64: 16, 1536>}]} {
    %c0 = arith.constant 0 : index
    %c0_0 = arith.constant 0 : index
    %0 = vector.load %arg1[%c0, %c0_0] : memref<16x512xbf16, #tpu.memory_space<vmem>>, vector<16x512xbf16>
    %c0_1 = arith.constant 0 : index
    %c0_2 = arith.constant 0 : index
    %1 = vector.load %arg2[%c0_1, %c0_2] : memref<512x1536xbf16, #tpu.memory_space<vmem>>, vector<512x1536xbf16>
    %cst = arith.constant dense<0.000000e+00> : vector<16x1536xf32>
    %2 = tpu.matmul %0, %1, %cst {dimension_numbers = #tpu.dot_dimension_numbers<[1], [0], [0], [1], [0, 0, 1, 1], [], []>} : vector<16x512xbf16>, vector<512x1536xbf16>, vector<16x1536xf32> -> vector<16x1536xf32>
    %c0_3 = arith.constant 0 : index
    %c0_4 = arith.constant 0 : index
    %3 = vector.load %arg3[%c0_3, %c0_4] : memref<1x1536xf32, #tpu.memory_space<vmem>>, vector<1x1536xf32>
    %4 = vector.broadcast %3 : vector<1x1536xf32> to vector<16x1536xf32>
    %5 = arith.addf %2, %4 : vector<16x1536xf32>
    %c0_5 = arith.constant 0 : index
    %c0_6 = arith.constant 0 : index
    %6 = vector.load %arg4[%c0_5, %c0_6] : memref<16x1536xf32, #tpu.memory_space<vmem>>, vector<16x1536xf32>
    tpu.vector_store %arg4[%c0_5, %c0_6], %5 {strides = array<i32>} : memref<16x1536xf32, #tpu.memory_space<vmem>>, vector<16x1536xf32>,
    return
  }
  func.func @transform_0(%arg0: i32) -> (i32, i32) {
    %c0_i32 = arith.constant 0 : i32
    %c0_i32_0 = arith.constant 0 : i32
    return %arg0, %c0_i32 : i32, i32
  }
  func.func @transform_1(%arg0: i32) -> (i32, i32) {
    %c0_i32 = arith.constant 0 : i32
    %c0_i32_0 = arith.constant 0 : i32
    %c0_i32_1 = arith.constant 0 : i32
    return %c0_i32, %c0_i32_0 : i32, i32
  }
  func.func @transform_2(%arg0: i32) -> (i32, i32) {
    %c0_i32 = arith.constant 0 : i32
    %c0_i32_0 = arith.constant 0 : i32
    %c0_i32_1 = arith.constant 0 : i32
    return %c0_i32, %c0_i32_0 : i32, i32
  }
  func.func @transform_3(%arg0: i32) -> (i32, i32) {
    %c0_i32 = arith.constant 0 : i32
    %c0_i32_0 = arith.constant 0 : i32
    return %arg0, %c0_i32 : i32, i32
  }
}

module attributes {stable_mosaic.version = 11 : i64} {
  func.func @_sqdist_kernel(%arg0: i32, %arg1: i32, %arg2: i32, %arg3: memref<1x256x128xf32, #tpu.memory_space<vmem>>, %arg4: memref<1x128x16xf32, #tpu.memory_space<vmem>>, %arg5: memref<1x256x16xf32, #tpu.memory_space<vmem>>) attributes {dimension_semantics = [#tpu.dimension_semantics<parallel>, #tpu.dimension_semantics<parallel>, #tpu.dimension_semantics<parallel>], iteration_bounds = array<i64: 2, 1, 1>, scalar_prefetch = 0 : i64, scratch_operands = 0 : i64, tpu.core_type = #tpu.core_type<tc>, window_params = [{transform_indices = @transform_0, window_bounds = array<i64: 1, 256, 128>}, {transform_indices = @transform_1, window_bounds = array<i64: 1, 128, 16>}, {transform_indices = @transform_2, window_bounds = array<i64: 1, 256, 16>}]} {
    %c0 = arith.constant 0 : index
    %c0_0 = arith.constant 0 : index
    %c0_1 = arith.constant 0 : index
    %0 = vector.load %arg3[%c0, %c0_0, %c0_1] : memref<1x256x128xf32, #tpu.memory_space<vmem>>, vector<1x256x128xf32>
    %1 = vector.shape_cast %0 : vector<1x256x128xf32> to vector<256x128xf32>
    %c0_2 = arith.constant 0 : index
    %c0_3 = arith.constant 0 : index
    %c0_4 = arith.constant 0 : index
    %2 = vector.load %arg4[%c0_2, %c0_3, %c0_4] : memref<1x128x16xf32, #tpu.memory_space<vmem>>, vector<1x128x16xf32>
    %3 = vector.shape_cast %2 : vector<1x128x16xf32> to vector<128x16xf32>
    %4 = arith.mulf %1, %1 : vector<256x128xf32>
    %cst = arith.constant dense<0.000000e+00> : vector<256xf32>
    %5 = vector.multi_reduction <add>, %4, %cst [1] : vector<256x128xf32> to vector<256xf32>
    %6 = vector.shape_cast %5 : vector<256xf32> to vector<256x1xf32>
    %7 = arith.mulf %3, %3 : vector<128x16xf32>
    %cst_5 = arith.constant dense<0.000000e+00> : vector<16xf32>
    %8 = vector.multi_reduction <add>, %7, %cst_5 [0] : vector<128x16xf32> to vector<16xf32>
    %9 = vector.shape_cast %8 : vector<16xf32> to vector<1x16xf32>
    %cst_6 = arith.constant dense<0.000000e+00> : vector<256x16xf32>
    %10 = tpu.matmul %1, %3, %cst_6 {dimension_numbers = #tpu.dot_dimension_numbers<[1], [0], [0], [1], [0, 0, 1, 1], [], []>} : vector<256x128xf32>, vector<128x16xf32>, vector<256x16xf32> -> vector<256x16xf32>
    %11 = vector.broadcast %6 : vector<256x1xf32> to vector<256x16xf32>
    %12 = vector.broadcast %9 : vector<1x16xf32> to vector<256x16xf32>
    %13 = arith.addf %11, %12 : vector<256x16xf32>
    %cst_7 = arith.constant 2.000000e+00 : f32
    %14 = vector.broadcast %cst_7 : f32 to vector<256x16xf32>
    %15 = arith.mulf %14, %10 : vector<256x16xf32>
    %16 = arith.subf %13, %15 : vector<256x16xf32>
    %c0_8 = arith.constant 0 : index
    %c0_9 = arith.constant 0 : index
    %c0_10 = arith.constant 0 : index
    %17 = vector.load %arg5[%c0_8, %c0_9, %c0_10] : memref<1x256x16xf32, #tpu.memory_space<vmem>>, vector<1x256x16xf32>
    %18 = vector.shape_cast %17 : vector<1x256x16xf32> to vector<256x16xf32>
    %19 = vector.shape_cast %16 : vector<256x16xf32> to vector<1x256x16xf32>
    tpu.vector_store %arg5[%c0_8, %c0_9, %c0_10], %19 {strides = array<i32>} : memref<1x256x16xf32, #tpu.memory_space<vmem>>, vector<1x256x16xf32>,
    return
  }
  func.func @transform_0(%arg0: i32, %arg1: i32, %arg2: i32) -> (i32, i32, i32) {
    %c0_i32 = arith.constant 0 : i32
    %c0_i32_0 = arith.constant 0 : i32
    return %arg0, %arg1, %c0_i32 : i32, i32, i32
  }
  func.func @transform_1(%arg0: i32, %arg1: i32, %arg2: i32) -> (i32, i32, i32) {
    %c0_i32 = arith.constant 0 : i32
    %c0_i32_0 = arith.constant 0 : i32
    return %arg0, %c0_i32, %arg2 : i32, i32, i32
  }
  func.func @transform_2(%arg0: i32, %arg1: i32, %arg2: i32) -> (i32, i32, i32) {
    %c0_i32 = arith.constant 0 : i32
    return %arg0, %arg1, %arg2 : i32, i32, i32
  }
}

module attributes {stable_mosaic.version = 11 : i64} {
  func.func @_sqdist_kernel(%arg0: i32, %arg1: i32, %arg2: i32, %arg3: memref<1x256x128xf32, #tpu.memory_space<vmem>>, %arg4: memref<1x128x64xf32, #tpu.memory_space<vmem>>, %arg5: memref<1x256x64xf32, #tpu.memory_space<vmem>>) attributes {dimension_semantics = [#tpu.dimension_semantics<parallel>, #tpu.dimension_semantics<parallel>, #tpu.dimension_semantics<parallel>], iteration_bounds = array<i64: 2, 1, 1>, scalar_prefetch = 0 : i64, scratch_operands = 0 : i64, tpu.core_type = #tpu.core_type<tc>, window_params = [{transform_indices = @transform_0, window_bounds = array<i64: 1, 256, 128>}, {transform_indices = @transform_1, window_bounds = array<i64: 1, 128, 64>}, {transform_indices = @transform_2, window_bounds = array<i64: 1, 256, 64>}]} {
    %c0 = arith.constant 0 : index
    %c0_0 = arith.constant 0 : index
    %c0_1 = arith.constant 0 : index
    %0 = vector.load %arg3[%c0, %c0_0, %c0_1] : memref<1x256x128xf32, #tpu.memory_space<vmem>>, vector<1x256x128xf32>
    %1 = vector.shape_cast %0 : vector<1x256x128xf32> to vector<256x128xf32>
    %c0_2 = arith.constant 0 : index
    %c0_3 = arith.constant 0 : index
    %c0_4 = arith.constant 0 : index
    %2 = vector.load %arg4[%c0_2, %c0_3, %c0_4] : memref<1x128x64xf32, #tpu.memory_space<vmem>>, vector<1x128x64xf32>
    %3 = vector.shape_cast %2 : vector<1x128x64xf32> to vector<128x64xf32>
    %4 = arith.mulf %1, %1 : vector<256x128xf32>
    %cst = arith.constant dense<0.000000e+00> : vector<256xf32>
    %5 = vector.multi_reduction <add>, %4, %cst [1] : vector<256x128xf32> to vector<256xf32>
    %6 = vector.shape_cast %5 : vector<256xf32> to vector<256x1xf32>
    %7 = arith.mulf %3, %3 : vector<128x64xf32>
    %cst_5 = arith.constant dense<0.000000e+00> : vector<64xf32>
    %8 = vector.multi_reduction <add>, %7, %cst_5 [0] : vector<128x64xf32> to vector<64xf32>
    %9 = vector.shape_cast %8 : vector<64xf32> to vector<1x64xf32>
    %cst_6 = arith.constant dense<0.000000e+00> : vector<256x64xf32>
    %10 = tpu.matmul %1, %3, %cst_6 {dimension_numbers = #tpu.dot_dimension_numbers<[1], [0], [0], [1], [0, 0, 1, 1], [], []>} : vector<256x128xf32>, vector<128x64xf32>, vector<256x64xf32> -> vector<256x64xf32>
    %11 = vector.broadcast %6 : vector<256x1xf32> to vector<256x64xf32>
    %12 = vector.broadcast %9 : vector<1x64xf32> to vector<256x64xf32>
    %13 = arith.addf %11, %12 : vector<256x64xf32>
    %cst_7 = arith.constant 2.000000e+00 : f32
    %14 = vector.broadcast %cst_7 : f32 to vector<256x64xf32>
    %15 = arith.mulf %14, %10 : vector<256x64xf32>
    %16 = arith.subf %13, %15 : vector<256x64xf32>
    %c0_8 = arith.constant 0 : index
    %c0_9 = arith.constant 0 : index
    %c0_10 = arith.constant 0 : index
    %17 = vector.load %arg5[%c0_8, %c0_9, %c0_10] : memref<1x256x64xf32, #tpu.memory_space<vmem>>, vector<1x256x64xf32>
    %18 = vector.shape_cast %17 : vector<1x256x64xf32> to vector<256x64xf32>
    %19 = vector.shape_cast %16 : vector<256x64xf32> to vector<1x256x64xf32>
    tpu.vector_store %arg5[%c0_8, %c0_9, %c0_10], %19 {strides = array<i32>} : memref<1x256x64xf32, #tpu.memory_space<vmem>>, vector<1x256x64xf32>,
    return
  }
  func.func @transform_0(%arg0: i32, %arg1: i32, %arg2: i32) -> (i32, i32, i32) {
    %c0_i32 = arith.constant 0 : i32
    %c0_i32_0 = arith.constant 0 : i32
    return %arg0, %arg1, %c0_i32 : i32, i32, i32
  }
  func.func @transform_1(%arg0: i32, %arg1: i32, %arg2: i32) -> (i32, i32, i32) {
    %c0_i32 = arith.constant 0 : i32
    %c0_i32_0 = arith.constant 0 : i32
    return %arg0, %c0_i32, %arg2 : i32, i32, i32
  }
  func.func @transform_2(%arg0: i32, %arg1: i32, %arg2: i32) -> (i32, i32, i32) {
    %c0_i32 = arith.constant 0 : i32
    return %arg0, %arg1, %arg2 : i32, i32, i32
  }
}

</mosaic_0001>

<bundles_post_ra>
// kernel: neg.8
= control target key start
LH: loop header
LB: loop body
LE: loop exit
PB: predicated region body
PF: predicated region fallthrough
CT: control target
= control target key end

     0   :  { %s2056_s0 = inlined_call_operand.vmem [shape: f32[2,256,256], index: 0, kind: input, shape index: {}]   ;;  %s2057_s1 = inlined_call_operand.vmem [shape: f32[2,256,256], index: 1, kind: output, shape index: {}]  }
   0x1   :  { %v2_v0 = vld [vmem:[%s2056_s0] sm:$0xff]  ;;  %v1026_v2 = vld [vmem:[%s2056_s0 + $0x10] sm:$0xff] }
   0x2   :  { %v1024_v1 = vld [vmem:[%s2056_s0 + $0x200] sm:$0xff]  ;;  %v5_v3 = vxor.u32 2147483648, %v2_v0  ;;  %v20_v5 = vxor.u32 2147483648, %v1026_v2  ;;  %v1028_v6 = vld [vmem:[%s2056_s0 + $0x210] sm:$0xff] }
   0x3   :  { %v12_v4 = vxor.u32 2147483648, %v1024_v1  ;;  %v1030_v7 = vld [vmem:[%s2056_s0 + $0x20] sm:$0xff]  ;;  %v28_v9 = vxor.u32 2147483648, %v1028_v6  ;;  %v1034_v12 = vld [vmem:[%s2056_s0 + $0x30] sm:$0xff] }
   0x4   :  { %v1032_v8 = vld [vmem:[%s2056_s0 + $0x220] sm:$0xff]  ;;  %v36_v10 = vxor.u32 2147483648, %v1030_v7  ;;  %v1036_v13 = vld [vmem:[%s2056_s0 + $0x230] sm:$0xff]  ;;  %7 = vst [vmem:[%s2057_s1] sm:$0xff] %v5_v3  ;;  %1027 = vst [vmem:[%s2057_s1 + $0x10] sm:$0xff] %v20_v5  ;;  %v52_v15 = vxor.u32 2147483648, %v1034_v12 }
   0x5   :  { %v44_v11 = vxor.u32 2147483648, %v1032_v8  ;;  %v1038_v14 = vld [vmem:[%s2056_s0 + $0x40] sm:$0xff]  ;;  %1025 = vst [vmem:[%s2057_s1 + $0x200] sm:$0xff] %v12_v4  ;;  %v60_v16 = vxor.u32 2147483648, %v1036_v13  ;;  %v1042_v19 = vld [vmem:[%s2056_s0 + $0x50] sm:$0xff]  ;;  %1029 = vst [vmem:[%s2057_s1 + $0x210] sm:$0xff] %v28_v9 }
   0x6   :  { %v68_v17 = vxor.u32 2147483648, %v1038_v14  ;;  %v1040_v18 = vld [vmem:[%s2056_s0 + $0x240] sm:$0xff]  ;;  %v1044_v20 = vld [vmem:[%s2056_s0 + $0x250] sm:$0xff]  ;;  %1031 = vst [vmem:[%s2057_s1 + $0x20] sm:$0xff] %v36_v10  ;;  %v84_v22 = vxor.u32 2147483648, %v1042_v19  ;;  %1035 = vst [vmem:[%s2057_s1 + $0x30] sm:$0xff] %v52_v15 }
   0x7   :  { %1033 = vst [vmem:[%s2057_s1 + $0x220] sm:$0xff] %v44_v11  ;;  %v76_v21 = vxor.u32 2147483648, %v1040_v18  ;;  %v92_v23 = vxor.u32 2147483648, %v1044_v20  ;;  %v1046_v24 = vld [vmem:[%s2056_s0 + $0x60] sm:$0xff]  ;;  %v1050_v26 = vld [vmem:[%s2056_s0 + $0x70] sm:$0xff]  ;;  %1037 = vst [vmem:[%s2057_s1 + $0x230] sm:$0xff] %v60_v16 }
   0x8   :  { %v1048_v25 = vld [vmem:[%s2056_s0 + $0x260] sm:$0xff]  ;;  %1039 = vst [vmem:[%s2057_s1 + $0x40] sm:$0xff] %v68_v17  ;;  %v100_v27 = vxor.u32 2147483648, %v1046_v24  ;;  %v116_v29 = vxor.u32 2147483648, %v1050_v26  ;;  %v1052_v30 = vld [vmem:[%s2056_s0 + $0x270] sm:$0xff]  ;;  %1043 = vst [vmem:[%s2057_s1 + $0x50] sm:$0xff] %v84_v22 }
   0x9   :  { %v108_v28 = vxor.u32 2147483648, %v1048_v25  ;;  %v1054_v31 = vld [vmem:[%s2056_s0 + $0x80] sm:$0xff]  ;;  %1041 = vst [vmem:[%s2057_s1 + $0x240] sm:$0xff] %v76_v21  ;;  %1045 = vst [vmem:[%s2057_s1 + $0x250] sm:$0xff] %v92_v23  ;;  %v124_v33 = vxor.u32 2147483648, %v1052_v30  ;;  %v1058_v36 = vld [vmem:[%s2056_s0 + $0x90] sm:$0xff] }
   0xa   :  { %v1056_v32 = vld [vmem:[%s2056_s0 + $0x280] sm:$0xff]  ;;  %v132_v34 = vxor.u32 2147483648, %v1054_v31  ;;  %v1060_v37 = vld [vmem:[%s2056_s0 + $0x290] sm:$0xff]  ;;  %1047 = vst [vmem:[%s2057_s1 + $0x60] sm:$0xff] %v100_v27  ;;  %1051 = vst [vmem:[%s2057_s1 + $0x70] sm:$0xff] %v116_v29  ;;  %v148_v39 = vxor.u32 2147483648, %v1058_v36 }
   0xb   :  { %v140_v35 = vxor.u32 2147483648, %v1056_v32  ;;  %v1062_v38 = vld [vmem:[%s2056_s0 + $0xa0] sm:$0xff]  ;;  %1049 = vst [vmem:[%s2057_s1 + $0x260] sm:$0xff] %v108_v28  ;;  %v156_v40 = vxor.u32 2147483648, %v1060_v37  ;;  %v1066_v43 = vld [vmem:[%s2056_s0 + $0xb0] sm:$0xff]  ;;  %1053 = vst [vmem:[%s2057_s1 + $0x270] sm:$0xff] %v124_v33 }
   0xc   :  { %v164_v41 = vxor.u32 2147483648, %v1062_v38  ;;  %v1064_v42 = vld [vmem:[%s2056_s0 + $0x2a0] sm:$0xff]  ;;  %v1068_v44 = vld [vmem:[%s2056_s0 + $0x2b0] sm:$0xff]  ;;  %1055 = vst [vmem:[%s2057_s1 + $0x80] sm:$0xff] %v132_v34  ;;  %v180_v46 = vxor.u32 2147483648, %v1066_v43  ;;  %1059 = vst [vmem:[%s2057_s1 + $0x90] sm:$0xff] %v148_v39 }
   0xd   :  { %1057 = vst [vmem:[%s2057_s1 + $0x280] sm:$0xff] %v140_v35  ;;  %v172_v45 = vxor.u32 2147483648, %v1064_v42  ;;  %v188_v47 = vxor.u32 2147483648, %v1068_v44  ;;  %v1070_v48 = vld [vmem:[%s2056_s0 + $0xc0] sm:$0xff]  ;;  %v1074_v50 = vld [vmem:[%s2056_s0 + $0xd0] sm:$0xff]  ;;  %1061 = vst [vmem:[%s2057_s1 + $0x290] sm:$0xff] %v156_v40 }
   0xe   :  { %v1072_v49 = vld [vmem:[%s2056_s0 + $0x2c0] sm:$0xff]  ;;  %1063 = vst [vmem:[%s2057_s1 + $0xa0] sm:$0xff] %v164_v41  ;;  %v196_v51 = vxor.u32 2147483648, %v1070_v48  ;;  %v212_v53 = vxor.u32 2147483648, %v1074_v50  ;;  %v1076_v54 = vld [vmem:[%s2056_s0 + $0x2d0] sm:$0xff]  ;;  %1067 = vst [vmem:[%s2057_s1 + $0xb0] sm:$0xff] %v180_v46 }
   0xf   :  { %v204_v52 = vxor.u32 2147483648, %v1072_v49  ;;  %v1078_v55 = vld [vmem:[%s2056_s0 + $0xe0] sm:$0xff]  ;;  %1065 = vst [vmem:[%s2057_s1 + $0x2a0] sm:$0xff] %v172_v45  ;;  %1069 = vst [vmem:[%s2057_s1 + $0x2b0] sm:$0xff] %v188_v47  ;;  %v220_v57 = vxor.u32 2147483648, %v1076_v54  ;;  %v1082_v60 = vld [vmem:[%s2056_s0 + $0xf0] sm:$0xff] }
  0x10   :  { %v1080_v56 = vld [vmem:[%s2056_s0 + $0x2e0] sm:$0xff]  ;;  %v228_v58 = vxor.u32 2147483648, %v1078_v55  ;;  %v1084_v61 = vld [vmem:[%s2056_s0 + $0x2f0] sm:$0xff]  ;;  %1071 = vst [vmem:[%s2057_s1 + $0xc0] sm:$0xff] %v196_v51  ;;  %1075 = vst [vmem:[%s2057_s1 + $0xd0] sm:$0xff] %v212_v53  ;;  %v244_v63 = vxor.u32 2147483648, %v1082_v60 }
  0x11   :  { %v236_v59 = vxor.u32 2147483648, %v1080_v56  ;;  %v1086_v62 = vld [vmem:[%s2056_s0 + $0x100] sm:$0xff]  ;;  %1073 = vst [vmem:[%s2057_s1 + $0x2c0] sm:$0xff] %v204_v52  ;;  %v252_v0 = vxor.u32 2147483648, %v1084_v61  ;;  %v1090_v3 = vld [vmem:[%s2056_s0 + $0x110] sm:$0xff]  ;;  %1077 = vst [vmem:[%s2057_s1 + $0x2d0] sm:$0xff] %v220_v57 }
  0x12   :  { %v260_v1 = vxor.u32 2147483648, %v1086_v62  ;;  %v1088_v2 = vld [vmem:[%s2056_s0 + $0x300] sm:$0xff]  ;;  %v1092_v4 = vld [vmem:[%s2056_s0 + $0x310] sm:$0xff]  ;;  %1079 = vst [vmem:[%s2057_s1 + $0xe0] sm:$0xff] %v228_v58  ;;  %v276_v6 = vxor.u32 2147483648, %v1090_v3  ;;  %1083 = vst [vmem:[%s2057_s1 + $0xf0] sm:$0xff] %v244_v63 }
  0x13   :  { %1081 = vst [vmem:[%s2057_s1 + $0x2e0] sm:$0xff] %v236_v59  ;;  %v268_v5 = vxor.u32 2147483648, %v1088_v2  ;;  %v284_v7 = vxor.u32 2147483648, %v1092_v4  ;;  %v1094_v8 = vld [vmem:[%s2056_s0 + $0x120] sm:$0xff]  ;;  %v1098_v10 = vld [vmem:[%s2056_s0 + $0x130] sm:$0xff]  ;;  %1085 = vst [vmem:[%s2057_s1 + $0x2f0] sm:$0xff] %v252_v0 }
  0x14   :  { %v1096_v9 = vld [vmem:[%s2056_s0 + $0x320] sm:$0xff]  ;;  %1087 = vst [vmem:[%s2057_s1 + $0x100] sm:$0xff] %v260_v1  ;;  %v292_v11 = vxor.u32 2147483648, %v1094_v8  ;;  %v308_v13 = vxor.u32 2147483648, %v1098_v10  ;;  %v1100_v14 = vld [vmem:[%s2056_s0 + $0x330] sm:$0xff]  ;;  %1091 = vst [vmem:[%s2057_s1 + $0x110] sm:$0xff] %v276_v6 }
  0x15   :  { %v300_v12 = vxor.u32 2147483648, %v1096_v9  ;;  %v1102_v15 = vld [vmem:[%s2056_s0 + $0x140] sm:$0xff]  ;;  %1089 = vst [vmem:[%s2057_s1 + $0x300] sm:$0xff] %v268_v5  ;;  %1093 = vst [vmem:[%s2057_s1 + $0x310] sm:$0xff] %v284_v7  ;;  %v316_v17 = vxor.u32 2147483648, %v1100_v14  ;;  %v1106_v20 = vld [vmem:[%s2056_s0 + $0x150] sm:$0xff] }
  0x16   :  { %v1104_v16 = vld [vmem:[%s2056_s0 + $0x340] sm:$0xff]  ;;  %v324_v18 = vxor.u32 2147483648, %v1102_v15  ;;  %v1108_v21 = vld [vmem:[%s2056_s0 + $0x350] sm:$0xff]  ;;  %1095 = vst [vmem:[%s2057_s1 + $0x120] sm:$0xff] %v292_v11  ;;  %1099 = vst [vmem:[%s2057_s1 + $0x130] sm:$0xff] %v308_v13  ;;  %v340_v23 = vxor.u32 2147483648, %v1106_v20 }
  0x17   :  { %v332_v19 = vxor.u32 2147483648, %v1104_v16  ;;  %v1110_v22 = vld [vmem:[%s2056_s0 + $0x160] sm:$0xff]  ;;  %1097 = vst [vmem:[%s2057_s1 + $0x320] sm:$0xff] %v300_v12  ;;  %v348_v24 = vxor.u32 2147483648, %v1108_v21  ;;  %v1114_v27 = vld [vmem:[%s2056_s0 + $0x170] sm:$0xff]  ;;  %1101 = vst [vmem:[%s2057_s1 + $0x330] sm:$0xff] %v316_v17 }
  0x18   :  { %v356_v25 = vxor.u32 2147483648, %v1110_v22  ;;  %v1112_v26 = vld [vmem:[%s2056_s0 + $0x360] sm:$0xff]  ;;  %v1116_v28 = vld [vmem:[%s2056_s0 + $0x370] sm:$0xff]  ;;  %1103 = vst [vmem:[%s2057_s1 + $0x140] sm:$0xff] %v324_v18  ;;  %v372_v30 = vxor.u32 2147483648, %v1114_v27  ;;  %1107 = vst [vmem:[%s2057_s1 + $0x150] sm:$0xff] %v340_v23 }
  0x19   :  { %1105 = vst [vmem:[%s2057_s1 + $0x340] sm:$0xff] %v332_v19  ;;  %v364_v29 = vxor.u32 2147483648, %v1112_v26  ;;  %v380_v31 = vxor.u32 2147483648, %v1116_v28  ;;  %v1118_v32 = vld [vmem:[%s2056_s0 + $0x180] sm:$0xff]  ;;  %v1122_v34 = vld [vmem:[%s2056_s0 + $0x190] sm:$0xff]  ;;  %1109 = vst [vmem:[%s2057_s1 + $0x350] sm:$0xff] %v348_v24 }
  0x1a   :  { %v1120_v33 = vld [vmem:[%s2056_s0 + $0x380] sm:$0xff]  ;;  %1111 = vst [vmem:[%s2057_s1 + $0x160] sm:$0xff] %v356_v25  ;;  %v388_v35 = vxor.u32 2147483648, %v1118_v32  ;;  %v404_v37 = vxor.u32 2147483648, %v1122_v34  ;;  %v1124_v38 = vld [vmem:[%s2056_s0 + $0x390] sm:$0xff]  ;;  %1115 = vst [vmem:[%s2057_s1 + $0x170] sm:$0xff] %v372_v30 }
  0x1b   :  { %v396_v36 = vxor.u32 2147483648, %v1120_v33  ;;  %v1126_v39 = vld [vmem:[%s2056_s0 + $0x1a0] sm:$0xff]  ;;  %1113 = vst [vmem:[%s2057_s1 + $0x360] sm:$0xff] %v364_v29  ;;  %1117 = vst [vmem:[%s2057_s1 + $0x370] sm:$0xff] %v380_v31  ;;  %v412_v41 = vxor.u32 2147483648, %v1124_v38  ;;  %v1130_v44 = vld [vmem:[%s2056_s0 + $0x1b0] sm:$0xff] }
  0x1c   :  { %v1128_v40 = vld [vmem:[%s2056_s0 + $0x3a0] sm:$0xff]  ;;  %v420_v42 = vxor.u32 2147483648, %v1126_v39  ;;  %v1132_v45 = vld [vmem:[%s2056_s0 + $0x3b0] sm:$0xff]  ;;  %1119 = vst [vmem:[%s2057_s1 + $0x180] sm:$0xff] %v388_v35  ;;  %1123 = vst [vmem:[%s2057_s1 + $0x190] sm:$0xff] %v404_v37  ;;  %v436_v47 = vxor.u32 2147483648, %v1130_v44 }
  0x1d   :  { %v428_v43 = vxor.u32 2147483648, %v1128_v40  ;;  %v1134_v46 = vld [vmem:[%s2056_s0 + $0x1c0] sm:$0xff]  ;;  %1121 = vst [vmem:[%s2057_s1 + $0x380] sm:$0xff] %v396_v36  ;;  %v444_v48 = vxor.u32 2147483648, %v1132_v45  ;;  %v1138_v51 = vld [vmem:[%s2056_s0 + $0x1d0] sm:$0xff]  ;;  %1125 = vst [vmem:[%s2057_s1 + $0x390] sm:$0xff] %v412_v41 }
  0x1e   :  { %v452_v49 = vxor.u32 2147483648, %v1134_v46  ;;  %v1136_v50 = vld [vmem:[%s2056_s0 + $0x3c0] sm:$0xff]  ;;  %v1140_v52 = vld [vmem:[%s2056_s0 + $0x3d0] sm:$0xff]  ;;  %1127 = vst [vmem:[%s2057_s1 + $0x1a0] sm:$0xff] %v420_v42  ;;  %v468_v54 = vxor.u32 2147483648, %v1138_v51  ;;  %1131 = vst [vmem:[%s2057_s1 + $0x1b0] sm:$0xff] %v436_v47 }
  0x1f   :  { %1129 = vst [vmem:[%s2057_s1 + $0x3a0] sm:$0xff] %v428_v43  ;;  %v460_v53 = vxor.u32 2147483648, %v1136_v50  ;;  %v476_v55 = vxor.u32 2147483648, %v1140_v52  ;;  %v1142_v56 = vld [vmem:[%s2056_s0 + $0x1e0] sm:$0xff]  ;;  %v1146_v58 = vld [vmem:[%s2056_s0 + $0x1f0] sm:$0xff]  ;;  %1133 = vst [vmem:[%s2057_s1 + $0x3b0] sm:$0xff] %v444_v48 }
  0x20   :  { %v1144_v57 = vld [vmem:[%s2056_s0 + $0x3e0] sm:$0xff]  ;;  %1135 = vst [vmem:[%s2057_s1 + $0x1c0] sm:$0xff] %v452_v49  ;;  %v484_v59 = vxor.u32 2147483648, %v1142_v56  ;;  %v500_v61 = vxor.u32 2147483648, %v1146_v58  ;;  %v1148_v62 = vld [vmem:[%s2056_s0 + $0x3f0] sm:$0xff]  ;;  %v1150_v63 = vld [vmem:[%s2056_s0 + $0x8] sm:$0xff] }
  0x21   :  { %v492_v60 = vxor.u32 2147483648, %v1144_v57  ;;  %v1152_v0 = vld [vmem:[%s2056_s0 + $0x208] sm:$0xff]  ;;  %1137 = vst [vmem:[%s2057_s1 + $0x3c0] sm:$0xff] %v460_v53  ;;  %1139 = vst [vmem:[%s2057_s1 + $0x1d0] sm:$0xff] %v468_v54  ;;  %v508_v1 = vxor.u32 2147483648, %v1148_v62  ;;  %v516_v2 = vxor.u32 2147483648, %v1150_v63 }
  0x22   :  { %1141 = vst [vmem:[%s2057_s1 + $0x3d0] sm:$0xff] %v476_v55  ;;  %v524_v3 = vxor.u32 2147483648, %v1152_v0  ;;  %v1154_v4 = vld [vmem:[%s2056_s0 + $0x18] sm:$0xff]  ;;  %v1158_v6 = vld [vmem:[%s2056_s0 + $0x28] sm:$0xff]  ;;  %1143 = vst [vmem:[%s2057_s1 + $0x1e0] sm:$0xff] %v484_v59 }
  0x23   :  { %v1156_v5 = vld [vmem:[%s2056_s0 + $0x218] sm:$0xff]  ;;  %1145 = vst [vmem:[%s2057_s1 + $0x3e0] sm:$0xff] %v492_v60  ;;  %1147 = vst [vmem:[%s2057_s1 + $0x1f0] sm:$0xff] %v500_v61  ;;  %v532_v7 = vxor.u32 2147483648, %v1154_v4  ;;  %v548_v9 = vxor.u32 2147483648, %v1158_v6  ;;  %v1160_v10 = vld [vmem:[%s2056_s0 + $0x228] sm:$0xff] }
  0x24   :  { %v540_v8 = vxor.u32 2147483648, %v1156_v5  ;;  %v1162_v11 = vld [vmem:[%s2056_s0 + $0x38] sm:$0xff]  ;;  %1149 = vst [vmem:[%s2057_s1 + $0x3f0] sm:$0xff] %v508_v1  ;;  %1151 = vst [vmem:[%s2057_s1 + $0x8] sm:$0xff] %v516_v2  ;;  %v556_v13 = vxor.u32 2147483648, %v1160_v10  ;;  %v1166_v16 = vld [vmem:[%s2056_s0 + $0x48] sm:$0xff] }
  0x25   :  { %v1164_v12 = vld [vmem:[%s2056_s0 + $0x238] sm:$0xff]  ;;  %1153 = vst [vmem:[%s2057_s1 + $0x208] sm:$0xff] %v524_v3  ;;  %v564_v14 = vxor.u32 2147483648, %v1162_v11  ;;  %v1168_v17 = vld [vmem:[%s2056_s0 + $0x248] sm:$0xff]  ;;  %1155 = vst [vmem:[%s2057_s1 + $0x18] sm:$0xff] %v532_v7  ;;  %v580_v19 = vxor.u32 2147483648, %v1166_v16 }
  0x26   :  { %v572_v15 = vxor.u32 2147483648, %v1164_v12  ;;  %v1170_v18 = vld [vmem:[%s2056_s0 + $0x58] sm:$0xff]  ;;  %1157 = vst [vmem:[%s2057_s1 + $0x218] sm:$0xff] %v540_v8  ;;  %1159 = vst [vmem:[%s2057_s1 + $0x28] sm:$0xff] %v548_v9  ;;  %v588_v20 = vxor.u32 2147483648, %v1168_v17  ;;  %v1174_v23 = vld [vmem:[%s2056_s0 + $0x68] sm:$0xff] }
  0x27   :  { %v596_v21 = vxor.u32 2147483648, %v1170_v18  ;;  %v1172_v22 = vld [vmem:[%s2056_s0 + $0x258] sm:$0xff]  ;;  %v1176_v24 = vld [vmem:[%s2056_s0 + $0x268] sm:$0xff]  ;;  %1161 = vst [vmem:[%s2057_s1 + $0x228] sm:$0xff] %v556_v13  ;;  %1163 = vst [vmem:[%s2057_s1 + $0x38] sm:$0xff] %v564_v14  ;;  %v612_v26 = vxor.u32 2147483648, %v1174_v23 }
  0x28   :  { %1165 = vst [vmem:[%s2057_s1 + $0x238] sm:$0xff] %v572_v15  ;;  %v604_v25 = vxor.u32 2147483648, %v1172_v22  ;;  %v620_v27 = vxor.u32 2147483648, %v1176_v24  ;;  %v1178_v28 = vld [vmem:[%s2056_s0 + $0x78] sm:$0xff]  ;;  %v1182_v30 = vld [vmem:[%s2056_s0 + $0x88] sm:$0xff]  ;;  %1167 = vst [vmem:[%s2057_s1 + $0x48] sm:$0xff] %v580_v19 }
  0x29   :  { %v1180_v29 = vld [vmem:[%s2056_s0 + $0x278] sm:$0xff]  ;;  %1169 = vst [vmem:[%s2057_s1 + $0x248] sm:$0xff] %v588_v20  ;;  %1171 = vst [vmem:[%s2057_s1 + $0x58] sm:$0xff] %v596_v21  ;;  %v628_v31 = vxor.u32 2147483648, %v1178_v28  ;;  %v644_v33 = vxor.u32 2147483648, %v1182_v30  ;;  %v1184_v34 = vld [vmem:[%s2056_s0 + $0x288] sm:$0xff] }
  0x2a   :  { %v636_v32 = vxor.u32 2147483648, %v1180_v29  ;;  %v1186_v35 = vld [vmem:[%s2056_s0 + $0x98] sm:$0xff]  ;;  %1173 = vst [vmem:[%s2057_s1 + $0x258] sm:$0xff] %v604_v25  ;;  %1175 = vst [vmem:[%s2057_s1 + $0x68] sm:$0xff] %v612_v26  ;;  %v652_v37 = vxor.u32 2147483648, %v1184_v34  ;;  %v1190_v40 = vld [vmem:[%s2056_s0 + $0xa8] sm:$0xff] }
  0x2b   :  { %v1188_v36 = vld [vmem:[%s2056_s0 + $0x298] sm:$0xff]  ;;  %1177 = vst [vmem:[%s2057_s1 + $0x268] sm:$0xff] %v620_v27  ;;  %v660_v38 = vxor.u32 2147483648, %v1186_v35  ;;  %v1192_v41 = vld [vmem:[%s2056_s0 + $0x2a8] sm:$0xff]  ;;  %1179 = vst [vmem:[%s2057_s1 + $0x78] sm:$0xff] %v628_v31  ;;  %v676_v43 = vxor.u32 2147483648, %v1190_v40 }
  0x2c   :  { %v668_v39 = vxor.u32 2147483648, %v1188_v36  ;;  %v1194_v42 = vld [vmem:[%s2056_s0 + $0xb8] sm:$0xff]  ;;  %1181 = vst [vmem:[%s2057_s1 + $0x278] sm:$0xff] %v636_v32  ;;  %1183 = vst [vmem:[%s2057_s1 + $0x88] sm:$0xff] %v644_v33  ;;  %v684_v44 = vxor.u32 2147483648, %v1192_v41  ;;  %v1198_v47 = vld [vmem:[%s2056_s0 + $0xc8] sm:$0xff] }
  0x2d   :  { %v692_v45 = vxor.u32 2147483648, %v1194_v42  ;;  %v1196_v46 = vld [vmem:[%s2056_s0 + $0x2b8] sm:$0xff]  ;;  %v1200_v48 = vld [vmem:[%s2056_s0 + $0x2c8] sm:$0xff]  ;;  %1185 = vst [vmem:[%s2057_s1 + $0x288] sm:$0xff] %v652_v37  ;;  %1187 = vst [vmem:[%s2057_s1 + $0x98] sm:$0xff] %v660_v38  ;;  %v708_v50 = vxor.u32 2147483648, %v1198_v47 }
  0x2e   :  { %1189 = vst [vmem:[%s2057_s1 + $0x298] sm:$0xff] %v668_v39  ;;  %v700_v49 = vxor.u32 2147483648, %v1196_v46  ;;  %v716_v51 = vxor.u32 2147483648, %v1200_v48  ;;  %v1202_v52 = vld [vmem:[%s2056_s0 + $0xd8] sm:$0xff]  ;;  %v1206_v54 = vld [vmem:[%s2056_s0 + $0xe8] sm:$0xff]  ;;  %1191 = vst [vmem:[%s2057_s1 + $0xa8] sm:$0xff] %v676_v43 }
  0x2f   :  { %v1204_v53 = vld [vmem:[%s2056_s0 + $0x2d8] sm:$0xff]  ;;  %1193 = vst [vmem:[%s2057_s1 + $0x2a8] sm:$0xff] %v684_v44  ;;  %1195 = vst [vmem:[%s2057_s1 + $0xb8] sm:$0xff] %v692_v45  ;;  %v724_v55 = vxor.u32 2147483648, %v1202_v52  ;;  %v740_v57 = vxor.u32 2147483648, %v1206_v54  ;;  %v1208_v58 = vld [vmem:[%s2056_s0 + $0x2e8] sm:$0xff] }
  0x30   :  { %v732_v56 = vxor.u32 2147483648, %v1204_v53  ;;  %v1210_v59 = vld [vmem:[%s2056_s0 + $0xf8] sm:$0xff]  ;;  %1197 = vst [vmem:[%s2057_s1 + $0x2b8] sm:$0xff] %v700_v49  ;;  %1199 = vst [vmem:[%s2057_s1 + $0xc8] sm:$0xff] %v708_v50  ;;  %v748_v61 = vxor.u32 2147483648, %v1208_v58  ;;  %v1214_v0 = vld [vmem:[%s2056_s0 + $0x108] sm:$0xff] }
  0x31   :  { %v1212_v60 = vld [vmem:[%s2056_s0 + $0x2f8] sm:$0xff]  ;;  %1201 = vst [vmem:[%s2057_s1 + $0x2c8] sm:$0xff] %v716_v51  ;;  %v756_v62 = vxor.u32 2147483648, %v1210_v59  ;;  %v1216_v1 = vld [vmem:[%s2056_s0 + $0x308] sm:$0xff]  ;;  %1203 = vst [vmem:[%s2057_s1 + $0xd8] sm:$0xff] %v724_v55  ;;  %v772_v3 = vxor.u32 2147483648, %v1214_v0 }
  0x32   :  { %v764_v63 = vxor.u32 2147483648, %v1212_v60  ;;  %v1218_v2 = vld [vmem:[%s2056_s0 + $0x118] sm:$0xff]  ;;  %1205 = vst [vmem:[%s2057_s1 + $0x2d8] sm:$0xff] %v732_v56  ;;  %1207 = vst [vmem:[%s2057_s1 + $0xe8] sm:$0xff] %v740_v57  ;;  %v780_v4 = vxor.u32 2147483648, %v1216_v1  ;;  %v1222_v7 = vld [vmem:[%s2056_s0 + $0x128] sm:$0xff] }
  0x33   :  { %v788_v5 = vxor.u32 2147483648, %v1218_v2  ;;  %v1220_v6 = vld [vmem:[%s2056_s0 + $0x318] sm:$0xff]  ;;  %v1224_v8 = vld [vmem:[%s2056_s0 + $0x328] sm:$0xff]  ;;  %1209 = vst [vmem:[%s2057_s1 + $0x2e8] sm:$0xff] %v748_v61  ;;  %1211 = vst [vmem:[%s2057_s1 + $0xf8] sm:$0xff] %v756_v62  ;;  %v804_v10 = vxor.u32 2147483648, %v1222_v7 }
  0x34   :  { %1213 = vst [vmem:[%s2057_s1 + $0x2f8] sm:$0xff] %v764_v63  ;;  %v796_v9 = vxor.u32 2147483648, %v1220_v6  ;;  %v812_v11 = vxor.u32 2147483648, %v1224_v8  ;;  %v1226_v12 = vld [vmem:[%s2056_s0 + $0x138] sm:$0xff]  ;;  %v1230_v14 = vld [vmem:[%s2056_s0 + $0x148] sm:$0xff]  ;;  %1215 = vst [vmem:[%s2057_s1 + $0x108] sm:$0xff] %v772_v3 }
  0x35   :  { %v1228_v13 = vld [vmem:[%s2056_s0 + $0x338] sm:$0xff]  ;;  %1217 = vst [vmem:[%s2057_s1 + $0x308] sm:$0xff] %v780_v4  ;;  %1219 = vst [vmem:[%s2057_s1 + $0x118] sm:$0xff] %v788_v5  ;;  %v820_v15 = vxor.u32 2147483648, %v1226_v12  ;;  %v836_v17 = vxor.u32 2147483648, %v1230_v14  ;;  %v1232_v18 = vld [vmem:[%s2056_s0 + $0x348] sm:$0xff] }
  0x36   :  { %v828_v16 = vxor.u32 2147483648, %v1228_v13  ;;  %v1234_v19 = vld [vmem:[%s2056_s0 + $0x158] sm:$0xff]  ;;  %1221 = vst [vmem:[%s2057_s1 + $0x318] sm:$0xff] %v796_v9  ;;  %1223 = vst [vmem:[%s2057_s1 + $0x128] sm:$0xff] %v804_v10  ;;  %v844_v21 = vxor.u32 2147483648, %v1232_v18  ;;  %v1238_v24 = vld [vmem:[%s2056_s0 + $0x168] sm:$0xff] }
  0x37   :  { %v1236_v20 = vld [vmem:[%s2056_s0 + $0x358] sm:$0xff]  ;;  %1225 = vst [vmem:[%s2057_s1 + $0x328] sm:$0xff] %v812_v11  ;;  %v852_v22 = vxor.u32 2147483648, %v1234_v19  ;;  %v1240_v25 = vld [vmem:[%s2056_s0 + $0x368] sm:$0xff]  ;;  %1227 = vst [vmem:[%s2057_s1 + $0x138] sm:$0xff] %v820_v15  ;;  %v868_v27 = vxor.u32 2147483648, %v1238_v24 }
  0x38   :  { %v860_v23 = vxor.u32 2147483648, %v1236_v20  ;;  %v1242_v26 = vld [vmem:[%s2056_s0 + $0x178] sm:$0xff]  ;;  %1229 = vst [vmem:[%s2057_s1 + $0x338] sm:$0xff] %v828_v16  ;;  %1231 = vst [vmem:[%s2057_s1 + $0x148] sm:$0xff] %v836_v17  ;;  %v876_v28 = vxor.u32 2147483648, %v1240_v25  ;;  %v1246_v31 = vld [vmem:[%s2056_s0 + $0x188] sm:$0xff] }
  0x39   :  { %v884_v29 = vxor.u32 2147483648, %v1242_v26  ;;  %v1244_v30 = vld [vmem:[%s2056_s0 + $0x378] sm:$0xff]  ;;  %v1248_v32 = vld [vmem:[%s2056_s0 + $0x388] sm:$0xff]  ;;  %1233 = vst [vmem:[%s2057_s1 + $0x348] sm:$0xff] %v844_v21  ;;  %1235 = vst [vmem:[%s2057_s1 + $0x158] sm:$0xff] %v852_v22  ;;  %v900_v34 = vxor.u32 2147483648, %v1246_v31 }
  0x3a   :  { %1237 = vst [vmem:[%s2057_s1 + $0x358] sm:$0xff] %v860_v23  ;;  %v892_v33 = vxor.u32 2147483648, %v1244_v30  ;;  %v908_v35 = vxor.u32 2147483648, %v1248_v32  ;;  %v1250_v36 = vld [vmem:[%s2056_s0 + $0x198] sm:$0xff]  ;;  %v1254_v38 = vld [vmem:[%s2056_s0 + $0x1a8] sm:$0xff]  ;;  %1239 = vst [vmem:[%s2057_s1 + $0x168] sm:$0xff] %v868_v27 }
  0x3b   :  { %v1252_v37 = vld [vmem:[%s2056_s0 + $0x398] sm:$0xff]  ;;  %1241 = vst [vmem:[%s2057_s1 + $0x368] sm:$0xff] %v876_v28  ;;  %1243 = vst [vmem:[%s2057_s1 + $0x178] sm:$0xff] %v884_v29  ;;  %v916_v39 = vxor.u32 2147483648, %v1250_v36  ;;  %v932_v41 = vxor.u32 2147483648, %v1254_v38  ;;  %v1256_v42 = vld [vmem:[%s2056_s0 + $0x3a8] sm:$0xff] }
  0x3c   :  { %v924_v40 = vxor.u32 2147483648, %v1252_v37  ;;  %v1258_v43 = vld [vmem:[%s2056_s0 + $0x1b8] sm:$0xff]  ;;  %1245 = vst [vmem:[%s2057_s1 + $0x378] sm:$0xff] %v892_v33  ;;  %1247 = vst [vmem:[%s2057_s1 + $0x188] sm:$0xff] %v900_v34  ;;  %v940_v45 = vxor.u32 2147483648, %v1256_v42  ;;  %v1262_v48 = vld [vmem:[%s2056_s0 + $0x1c8] sm:$0xff] }
  0x3d   :  { %v1260_v44 = vld [vmem:[%s2056_s0 + $0x3b8] sm:$0xff]  ;;  %1249 = vst [vmem:[%s2057_s1 + $0x388] sm:$0xff] %v908_v35  ;;  %v948_v46 = vxor.u32 2147483648, %v1258_v43  ;;  %v1264_v49 = vld [vmem:[%s2056_s0 + $0x3c8] sm:$0xff]  ;;  %1251 = vst [vmem:[%s2057_s1 + $0x198] sm:$0xff] %v916_v39  ;;  %v964_v51 = vxor.u32 2147483648, %v1262_v48 }
  0x3e   :  { %v956_v47 = vxor.u32 2147483648, %v1260_v44  ;;  %v1266_v50 = vld [vmem:[%s2056_s0 + $0x1d8] sm:$0xff]  ;;  %1253 = vst [vmem:[%s2057_s1 + $0x398] sm:$0xff] %v924_v40  ;;  %1255 = vst [vmem:[%s2057_s1 + $0x1a8] sm:$0xff] %v932_v41  ;;  %v972_v52 = vxor.u32 2147483648, %v1264_v49  ;;  %v1270_v55 = vld [vmem:[%s2056_s0 + $0x1e8] sm:$0xff] }
  0x3f   :  { %v980_v53 = vxor.u32 2147483648, %v1266_v50  ;;  %v1268_v54 = vld [vmem:[%s2056_s0 + $0x3d8] sm:$0xff]  ;;  %v1272_v56 = vld [vmem:[%s2056_s0 + $0x3e8] sm:$0xff]  ;;  %1257 = vst [vmem:[%s2057_s1 + $0x3a8] sm:$0xff] %v940_v45  ;;  %1259 = vst [vmem:[%s2057_s1 + $0x1b8] sm:$0xff] %v948_v46  ;;  %v996_v58 = vxor.u32 2147483648, %v1270_v55 }
  0x40   :  { %1261 = vst [vmem:[%s2057_s1 + $0x3b8] sm:$0xff] %v956_v47  ;;  %v988_v57 = vxor.u32 2147483648, %v1268_v54  ;;  %v1004_v59 = vxor.u32 2147483648, %v1272_v56  ;;  %v1274_v60 = vld [vmem:[%s2056_s0 + $0x1f8] sm:$0xff]  ;;  %1263 = vst [vmem:[%s2057_s1 + $0x1c8] sm:$0xff] %v964_v51 }
  0x41   :  { %v1276_v61 = vld [vmem:[%s2056_s0 + $0x3f8] sm:$0xff]  ;;  %1265 = vst [vmem:[%s2057_s1 + $0x3c8] sm:$0xff] %v972_v52  ;;  %1267 = vst [vmem:[%s2057_s1 + $0x1d8] sm:$0xff] %v980_v53  ;;  %v1012_v62 = vxor.u32 2147483648, %v1274_v60 }
  0x42   :  { %v1020_v63 = vxor.u32 2147483648, %v1276_v61  ;;  %1269 = vst [vmem:[%s2057_s1 + $0x3d8] sm:$0xff] %v988_v57  ;;  %1271 = vst [vmem:[%s2057_s1 + $0x1e8] sm:$0xff] %v996_v58 }
  0x43   :  { %1273 = vst [vmem:[%s2057_s1 + $0x3e8] sm:$0xff] %v1004_v59  ;;  %1275 = vst [vmem:[%s2057_s1 + $0x1f8] sm:$0xff] %v1012_v62 }
  0x44   :  { %1277 = vst [vmem:[%s2057_s1 + $0x3f8] sm:$0xff] %v1020_v63 }

// kernel: neg.11
= control target key start
LH: loop header
LB: loop body
LE: loop exit
PB: predicated region body
PF: predicated region fallthrough
CT: control target
= control target key end

     0   :  { %s264_s0 = inlined_call_operand.vmem [shape: f32[2,64,64], index: 0, kind: input, shape index: {}]   ;;  %s265_s1 = inlined_call_operand.vmem [shape: f32[2,64,64], index: 1, kind: output, shape index: {}]  }
   0x1   :  { %v2_v0 = vld [vmem:[%s264_s0] sm:$0xff]  ;;  %v130_v2 = vld [vmem:[%s264_s0 + $0x8] sm:$0xff]  ;;  %v134_v7 = vld [vmem:[%s264_s0 + $0x10] sm:$0xff] }
   0x2   :  { %v128_v1 = vld [vmem:[%s264_s0 + $0x40] sm:$0xff]  ;;  %v5_v3 = vxor.u32 2147483648, %v2_v0  ;;  %v20_v5 = vxor.u32 2147483648, %v130_v2  ;;  %v132_v6 = vld [vmem:[%s264_s0 + $0x48] sm:$0xff]  ;;  %v136_v8 = vld [vmem:[%s264_s0 + $0x50] sm:$0xff]  ;;  %v36_v10 = vxor.u32 2147483648, %v134_v7 }
   0x3   :  { %v12_v4 = vxor.u32 2147483648, %v128_v1  ;;  %v28_v9 = vxor.u32 2147483648, %v132_v6  ;;  %v44_v11 = vxor.u32 2147483648, %v136_v8  ;;  %v138_v12 = vld [vmem:[%s264_s0 + $0x18] sm:$0xff]  ;;  %v142_v14 = vld [vmem:[%s264_s0 + $0x20] sm:$0xff]  ;;  %v146_v19 = vld [vmem:[%s264_s0 + $0x28] sm:$0xff] }
   0x4   :  { %v140_v13 = vld [vmem:[%s264_s0 + $0x58] sm:$0xff]  ;;  %7 = vst [vmem:[%s265_s1] sm:$0xff] %v5_v3  ;;  %131 = vst [vmem:[%s265_s1 + $0x8] sm:$0xff] %v20_v5  ;;  %v52_v15 = vxor.u32 2147483648, %v138_v12  ;;  %v68_v17 = vxor.u32 2147483648, %v142_v14  ;;  %v144_v18 = vld [vmem:[%s264_s0 + $0x60] sm:$0xff]  ;;  %v84_v22 = vxor.u32 2147483648, %v146_v19 }
   0x5   :  { %129 = vst [vmem:[%s265_s1 + $0x40] sm:$0xff] %v12_v4  ;;  %v60_v16 = vxor.u32 2147483648, %v140_v13  ;;  %v148_v20 = vld [vmem:[%s264_s0 + $0x68] sm:$0xff]  ;;  %133 = vst [vmem:[%s265_s1 + $0x48] sm:$0xff] %v28_v9  ;;  %v76_v21 = vxor.u32 2147483648, %v144_v18  ;;  %v150_v24 = vld [vmem:[%s264_s0 + $0x30] sm:$0xff] }
   0x6   :  { %135 = vst [vmem:[%s265_s1 + $0x10] sm:$0xff] %v36_v10  ;;  %137 = vst [vmem:[%s265_s1 + $0x50] sm:$0xff] %v44_v11  ;;  %v92_v23 = vxor.u32 2147483648, %v148_v20  ;;  %v152_v25 = vld [vmem:[%s264_s0 + $0x70] sm:$0xff]  ;;  %v154_v26 = vld [vmem:[%s264_s0 + $0x38] sm:$0xff]  ;;  %v100_v27 = vxor.u32 2147483648, %v150_v24 }
   0x7   :  { %139 = vst [vmem:[%s265_s1 + $0x18] sm:$0xff] %v52_v15  ;;  %141 = vst [vmem:[%s265_s1 + $0x58] sm:$0xff] %v60_v16  ;;  %v108_v28 = vxor.u32 2147483648, %v152_v25  ;;  %v116_v29 = vxor.u32 2147483648, %v154_v26  ;;  %v156_v30 = vld [vmem:[%s264_s0 + $0x78] sm:$0xff] }
   0x8   :  { %143 = vst [vmem:[%s265_s1 + $0x20] sm:$0xff] %v68_v17  ;;  %145 = vst [vmem:[%s265_s1 + $0x60] sm:$0xff] %v76_v21  ;;  %v124_v31 = vxor.u32 2147483648, %v156_v30 }
   0x9   :  { %147 = vst [vmem:[%s265_s1 + $0x28] sm:$0xff] %v84_v22  ;;  %149 = vst [vmem:[%s265_s1 + $0x68] sm:$0xff] %v92_v23 }
   0xa   :  { %151 = vst [vmem:[%s265_s1 + $0x30] sm:$0xff] %v100_v27  ;;  %153 = vst [vmem:[%s265_s1 + $0x70] sm:$0xff] %v108_v28 }
   0xb   :  { %155 = vst [vmem:[%s265_s1 + $0x38] sm:$0xff] %v116_v29  ;;  %157 = vst [vmem:[%s265_s1 + $0x78] sm:$0xff] %v124_v31 }

// kernel: neg.13
= control target key start
LH: loop header
LB: loop body
LE: loop exit
PB: predicated region body
PF: predicated region fallthrough
CT: control target
= control target key end

     0   :  { %s72_s0 = inlined_call_operand.vmem [shape: f32[2,16,16], index: 0, kind: input, shape index: {}]   ;;  %s73_s1 = inlined_call_operand.vmem [shape: f32[2,16,16], index: 1, kind: output, shape index: {}]  }
   0x1   :  { %v2_v0 = vld [vmem:[%s72_s0] sm:$0xff]  ;;  %v32_v1 = vld [vmem:[%s72_s0 + $0x10] sm:$0xff]  ;;  %v34_v2 = vld [vmem:[%s72_s0 + $0x8] sm:$0xff] }
   0x2   :  { %v5_v3 = vxor.u32 2147483648, %v2_v0  ;;  %v12_v4 = vxor.u32 2147483648, %v32_v1  ;;  %v20_v5 = vxor.u32 2147483648, %v34_v2  ;;  %v36_v6 = vld [vmem:[%s72_s0 + $0x18] sm:$0xff] }
   0x3   :  { %v28_v7 = vxor.u32 2147483648, %v36_v6 }
   0x4   :  { %7 = vst [vmem:[%s73_s1] sm:$0xff] %v5_v3  ;;  %33 = vst [vmem:[%s73_s1 + $0x10] sm:$0xff] %v12_v4 }
   0x5   :  { %35 = vst [vmem:[%s73_s1 + $0x8] sm:$0xff] %v20_v5  ;;  %37 = vst [vmem:[%s73_s1 + $0x18] sm:$0xff] %v28_v7 }

</bundles_post_ra>
